<compile_context>
chip_gen: v6e
topology: v6e:2x2x1
jax: 0.10.0
libtpu: 0.0.40
codegen_flags: <defaults>
</compile_context>

<pallas_src>
import math
from functools import partial

import jax
import jax.numpy as jnp
from jax import lax
from jax.experimental import pallas as pl
from jax.experimental.pallas import tpu as pltpu


def _resolve_vmem_limit():
    # ~75% of physical VMEM: ~96 MiB on v5e/v6e (128 MiB), ~48 MiB on v7x (64 MiB).
    try:
        cap = int(pltpu.get_tpu_info().vmem_capacity_bytes)
        return min(cap * 3 // 4, 96 * 1024 * 1024)
    except Exception:
        return 48 * 1024 * 1024  # safe on every generation


_VMEM_LIMIT = _resolve_vmem_limit()


def _pick_tile(dim, target, granule, prefer_split=False):
    """Largest multiple of `granule` dividing `dim`, <= target.  With
    prefer_split, also cap at dim//2 so a 'parallel' grid axis has >=2 steps
    (keeps both v7x TensorCores busy).  Falls back to the full dim."""
    if dim <= granule:
        return dim
    cap = min(target, dim)
    if prefer_split and dim >= 2 * granule:
        cap = min(cap, dim // 2)
    t = max((cap // granule) * granule, granule)
    while t > granule:
        if dim % t == 0:
            return t
        t -= granule
    return granule if dim % granule == 0 else dim


# --------------------------------------------------------------------------
# In-kernel helpers (traced inside pallas kernels)
# --------------------------------------------------------------------------

def _mha_heads(q, k, v, bias, num_heads, head_dim):
    """q [Sq, H*dk] (already scaled), k/v [Sk, H*dk], bias broadcastable to
    [Sq, Sk] (additive, 0 / -1e9).  Returns f32 context [Sq, H*dk].

    Heads are static lane slices of the D-wide slab, so no [S,H,dk]
    reshape/transpose relayouts.  All dots are bf16 in / f32 out."""
    ctx_parts = []
    for h in range(num_heads):
        sl = slice(h * head_dim, (h + 1) * head_dim)
        qh = q[:, sl].astype(jnp.bfloat16)
        kh = k[:, sl].astype(jnp.bfloat16)
        vh = v[:, sl].astype(jnp.bfloat16)
        # Q @ K^T without an explicit transpose (NT dot_general).
        s = lax.dot_general(qh, kh, (((1,), (1,)), ((), ())),
                            preferred_element_type=jnp.float32)      # [Sq, Sk]
        s = s + bias
        s = s - jnp.max(s, axis=-1, keepdims=True)
        p = jnp.exp(s)
        p = p * pl.reciprocal(jnp.sum(p, axis=-1, keepdims=True), approx=True)
        ctx_parts.append(jnp.dot(p.astype(jnp.bfloat16), vh,
                                 preferred_element_type=jnp.float32))  # [Sq, dk]
    return jnp.concatenate(ctx_parts, axis=-1)                         # [Sq, D]


def _layernorm(y, g, b):
    mean = jnp.mean(y, axis=-1, keepdims=True)
    var = jnp.mean((y - mean) ** 2, axis=-1, keepdims=True)
    return (y - mean) * lax.rsqrt(var + 1e-5) * g + b


# --------------------------------------------------------------------------
# Fused self-attention block: QKV proj + MHA + out proj + residual + LN
# --------------------------------------------------------------------------

def _self_attn_block_kernel(x_ref, bias_ref, wqkv_ref, bqkv_ref, wo_ref, bo_ref,
                            g_ref, be_ref, o_ref, *, num_heads, head_dim, scale):
    D = num_heads * head_dim
    x = x_ref[0]                                        # [S, D] f32
    xb = x.astype(jnp.bfloat16)
    qkv = jnp.dot(xb, wqkv_ref[...],
                  preferred_element_type=jnp.float32) + bqkv_ref[...]   # [S, 3D]
    q = qkv[:, :D] * scale                              # scale folded into Q
    k = qkv[:, D:2 * D]
    v = qkv[:, 2 * D:]

    bias = bias_ref[0]                                  # [1, Sk] additive padding bias
    ctx = _mha_heads(q, k, v, bias, num_heads, head_dim).astype(jnp.bfloat16)

    y = (jnp.dot(ctx, wo_ref[...], preferred_element_type=jnp.float32)
         + bo_ref[...] + x)                             # residual = block input
    o_ref[0] = _layernorm(y, g_ref[...], be_ref[...])


def self_attention_block(p, x, pad_bias, num_heads, head_dim):
    B, S, D = x.shape
    scale = 1.0 / math.sqrt(head_dim)
    kernel = partial(_self_attn_block_kernel, num_heads=num_heads,
                     head_dim=head_dim, scale=scale)
    return pl.pallas_call(
        kernel,
        out_shape=jax.ShapeDtypeStruct((B, S, D), jnp.float32),
        grid=(B,),
        in_specs=[
            pl.BlockSpec((1, S, D), lambda b: (b, 0, 0)),
            pl.BlockSpec((1, 1, S), lambda b: (b, 0, 0)),
            pl.BlockSpec((D, 3 * D), lambda b: (0, 0)),
            pl.BlockSpec((1, 3 * D), lambda b: (0, 0)),
            pl.BlockSpec((D, D), lambda b: (0, 0)),
            pl.BlockSpec((1, D), lambda b: (0, 0)),
            pl.BlockSpec((1, D), lambda b: (0, 0)),
            pl.BlockSpec((1, D), lambda b: (0, 0)),
        ],
        out_specs=pl.BlockSpec((1, S, D), lambda b: (b, 0, 0)),
        compiler_params=pltpu.CompilerParams(
            dimension_semantics=("parallel",),
            vmem_limit_bytes=_VMEM_LIMIT),
    )(x, pad_bias, p["w_qkv"], p["b_qkv"].reshape(1, 3 * D), p["wo"],
      p["bo"].reshape(1, D), p["ln_g"].reshape(1, D), p["ln_b"].reshape(1, D))


# --------------------------------------------------------------------------
# Fused decoder-encoder attention block: Q/KV proj + MHA (causal mask built
# in-kernel) + out proj + residual + LN
# --------------------------------------------------------------------------

def _cross_attn_block_kernel(x_ref, e_ref, wq_ref, bq_ref, wkv_ref, bkv_ref,
                             wo_ref, bo_ref, g_ref, be_ref, o_ref,
                             *, num_heads, head_dim, scale):
    D = num_heads * head_dim
    x = x_ref[0]                                        # [Sq, D] f32
    e = e_ref[0]                                        # [Sk, D] f32
    Sq, Sk = x.shape[0], e.shape[0]

    q = (jnp.dot(x.astype(jnp.bfloat16), wq_ref[...],
                 preferred_element_type=jnp.float32) + bq_ref[...]) * scale
    kv = jnp.dot(e.astype(jnp.bfloat16), wkv_ref[...],
                 preferred_element_type=jnp.float32) + bkv_ref[...]     # [Sk, 2D]
    k = kv[:, :D]
    v = kv[:, D:]

    # Causal (future-position) mask generated in-kernel -- no HBM mask traffic.
    # As in the reference module this mask shape requires Sq == Sk.
    row = lax.broadcasted_iota(jnp.int32, (Sq, Sk), 0)
    col = lax.broadcasted_iota(jnp.int32, (Sq, Sk), 1)
    bias = jnp.where(col > row, jnp.float32(-1e9), jnp.float32(0.0))

    ctx = _mha_heads(q, k, v, bias, num_heads, head_dim).astype(jnp.bfloat16)
    y = (jnp.dot(ctx, wo_ref[...], preferred_element_type=jnp.float32)
         + bo_ref[...] + x)
    o_ref[0] = _layernorm(y, g_ref[...], be_ref[...])


def cross_attention_block(p, x, enc, num_heads, head_dim):
    B, Sq, D = x.shape
    Sk = enc.shape[1]
    scale = 1.0 / math.sqrt(head_dim)
    kernel = partial(_cross_attn_block_kernel, num_heads=num_heads,
                     head_dim=head_dim, scale=scale)
    return pl.pallas_call(
        kernel,
        out_shape=jax.ShapeDtypeStruct((B, Sq, D), jnp.float32),
        grid=(B,),
        in_specs=[
            pl.BlockSpec((1, Sq, D), lambda b: (b, 0, 0)),
            pl.BlockSpec((1, Sk, D), lambda b: (b, 0, 0)),
            pl.BlockSpec((D, D), lambda b: (0, 0)),
            pl.BlockSpec((1, D), lambda b: (0, 0)),
            pl.BlockSpec((D, 2 * D), lambda b: (0, 0)),
            pl.BlockSpec((1, 2 * D), lambda b: (0, 0)),
            pl.BlockSpec((D, D), lambda b: (0, 0)),
            pl.BlockSpec((1, D), lambda b: (0, 0)),
            pl.BlockSpec((1, D), lambda b: (0, 0)),
            pl.BlockSpec((1, D), lambda b: (0, 0)),
        ],
        out_specs=pl.BlockSpec((1, Sq, D), lambda b: (b, 0, 0)),
        compiler_params=pltpu.CompilerParams(
            dimension_semantics=("parallel",),
            vmem_limit_bytes=_VMEM_LIMIT),
    )(x, enc, p["wq"], p["bq"].reshape(1, D), p["w_kv"], p["b_kv"].reshape(1, 2 * D),
      p["wo"], p["bo"].reshape(1, D), p["ln_g"].reshape(1, D), p["ln_b"].reshape(1, D))


# --------------------------------------------------------------------------
# Fused FFN (relu(x@w1+b1)@w2+b2) + residual + LayerNorm, tiled over hidden dim
# --------------------------------------------------------------------------

def _ffn_ln_kernel(x_ref, w1_ref, b1_ref, w2_ref, b2_ref, g_ref, be_ref,
                   o_ref, acc_ref):
    j = pl.program_id(1)

    @pl.when(j == 0)
    def _():
        acc_ref[...] = jnp.zeros_like(acc_ref)

    xb = x_ref[...].astype(jnp.bfloat16)
    h = jnp.dot(xb, w1_ref[...], preferred_element_type=jnp.float32) + b1_ref[...]
    h = jnp.maximum(h, 0.0).astype(jnp.bfloat16)
    acc_ref[...] += jnp.dot(h, w2_ref[...], preferred_element_type=jnp.float32)

    @pl.when(j == pl.num_programs(1) - 1)
    def _():
        y = acc_ref[...] + b2_ref[...] + x_ref[...]        # residual = FFN input
        o_ref[...] = _layernorm(y, g_ref[...], be_ref[...])


def ffn_add_layernorm(x, w1, b1, w2, b2, gamma, beta, *, tm=256, tf=512):
    M, D = x.shape
    F = w1.shape[1]
    tm = _pick_tile(M, tm, 8, prefer_split=True)    # >=2 parallel steps for megacore
    tf = _pick_tile(F, tf, 128)                     # 256-aligned where possible
    grid = (M // tm, F // tf)
    return pl.pallas_call(
        _ffn_ln_kernel,
        out_shape=jax.ShapeDtypeStruct((M, D), jnp.float32),
        grid=grid,
        in_specs=[
            pl.BlockSpec((tm, D), lambda i, j: (i, 0)),
            pl.BlockSpec((D, tf), lambda i, j: (0, j)),
            pl.BlockSpec((1, tf), lambda i, j: (0, j)),
            pl.BlockSpec((tf, D), lambda i, j: (j, 0)),
            pl.BlockSpec((1, D), lambda i, j: (0, 0)),
            pl.BlockSpec((1, D), lambda i, j: (0, 0)),
            pl.BlockSpec((1, D), lambda i, j: (0, 0)),
        ],
        out_specs=pl.BlockSpec((tm, D), lambda i, j: (i, 0)),
        scratch_shapes=[pltpu.VMEM((tm, D), jnp.float32)],
        compiler_params=pltpu.CompilerParams(
            dimension_semantics=("parallel", "arbitrary"),
            vmem_limit_bytes=_VMEM_LIMIT),
    )(x, w1, b1.reshape(1, F), w2, b2.reshape(1, D),
      gamma.reshape(1, D), beta.reshape(1, D))


def ffn_block(p, x):
    B, S, D = x.shape
    xf = x.reshape(B * S, D)
    out = ffn_add_layernorm(xf, p["w1"], p["b1"], p["w2"], p["b2"],
                            p["ln_g"], p["ln_b"])
    return out.reshape(B, S, D)


# --------------------------------------------------------------------------
# Model glue (embedding gather, positional encoding, padding bias) stays in JAX
# --------------------------------------------------------------------------

def padding_bias(seq_k):
    """Additive key-padding bias: -1e9 where key token id == 0.  [B, 1, Lk]."""
    return jnp.where(seq_k == 0, jnp.float32(-1e9), jnp.float32(0.0))[:, None, :]


def sinusoidal_pos_emb(max_len, model_dim):
    pos = jnp.arange(max_len, dtype=jnp.float32)[:, None]
    i = jnp.arange(model_dim, dtype=jnp.float32)[None, :]
    angle = pos / jnp.power(10000.0, (2.0 * jnp.floor(i / 2.0)) / model_dim)
    return jnp.where(jnp.mod(jnp.arange(model_dim), 2) == 0,
                     jnp.sin(angle), jnp.cos(angle)).astype(jnp.float32)


def decoder_forward(params, decoder_inputs, encoder_outputs, *, num_heads, head_dim):
    B, S = decoder_inputs.shape
    x = params["vocab_emb"][decoder_inputs]              # [B, S, D] embedding lookup
    x = x + params["pos_emb"][:S][None, :, :]            # positional embeddings

    # Mask wiring mirrors the reference forward: self-attention gets the
    # key-padding mask, decoder-encoder attention gets the future-position mask
    # (built in-kernel; requires S_dec == S_enc as in the reference).
    self_bias = padding_bias(decoder_inputs)             # [B, 1, S] additive f32

    for lp in params["layers"]:
        x = self_attention_block(lp["self_attn"], x, self_bias, num_heads, head_dim)
        x = cross_attention_block(lp["enc_attn"], x, encoder_outputs,
                                  num_heads, head_dim)
        x = ffn_block(lp["ffn"], x)
    return x


def init_params(key, vocab_size, model_dim, head_dim, max_len, ffn_dim, n_layers=6):
    num_heads = model_dim // head_dim
    D = model_dim
    keys = jax.random.split(key, 1 + n_layers)

    def lin(kk, din, dout):
        # Weights stored bf16 in HBM (halves weight DMA); biases stay f32.
        w = (0.02 * jax.random.normal(kk, (din, dout), jnp.float32)).astype(jnp.bfloat16)
        return w, jnp.zeros((dout,), jnp.float32)

    def self_attn_params(k):
        ks = jax.random.split(k, 4)
        wq, bq = lin(ks[0], D, D)
        wk, bk = lin(ks[1], D, D)
        wv, bv = lin(ks[2], D, D)
        wo, bo = lin(ks[3], D, D)
        return dict(w_qkv=jnp.concatenate([wq, wk, wv], axis=1),
                    b_qkv=jnp.concatenate([bq, bk, bv]),
                    wo=wo, bo=bo,
                    ln_g=jnp.ones((D,), jnp.float32),
                    ln_b=jnp.zeros((D,), jnp.float32))

    def cross_attn_params(k):
        ks = jax.random.split(k, 4)
        wq, bq = lin(ks[0], D, D)
        wk, bk = lin(ks[1], D, D)
        wv, bv = lin(ks[2], D, D)
        wo, bo = lin(ks[3], D, D)
        return dict(wq=wq, bq=bq,
                    w_kv=jnp.concatenate([wk, wv], axis=1),
                    b_kv=jnp.concatenate([bk, bv]),
                    wo=wo, bo=bo,
                    ln_g=jnp.ones((D,), jnp.float32),
                    ln_b=jnp.zeros((D,), jnp.float32))

    def ffn_params(k):
        k1, k2 = jax.random.split(k)
        w1, b1 = lin(k1, D, ffn_dim)
        w2, b2 = lin(k2, ffn_dim, D)
        return dict(w1=w1, b1=b1, w2=w2, b2=b2,
                    ln_g=jnp.ones((D,), jnp.float32),
                    ln_b=jnp.zeros((D,), jnp.float32))

    layers = []
    for li in range(n_layers):
        ka, kb, kc = jax.random.split(keys[1 + li], 3)
        layers.append(dict(self_attn=self_attn_params(ka),
                           enc_attn=cross_attn_params(kb),
                           ffn=ffn_params(kc)))

    return dict(
        vocab_emb=0.02 * jax.random.normal(keys[0], (vocab_size, D), jnp.float32),
        pos_emb=sinusoidal_pos_emb(max_len, D),
        layers=layers,
    ), num_heads


# --------------------------------------------------------------------------

if __name__ == "__main__":
    vocab_size, model_dim, head_dim, max_len = 64, 128, 32, 32
    ffn_dim = 4 * model_dim
    B, S_dec, S_enc = 2, 16, 16   # reference mask wiring requires S_dec == S_enc

    key = jax.random.PRNGKey(0)
    kp, ki, ke = jax.random.split(key, 3)
    params, num_heads = init_params(kp, vocab_size, model_dim, head_dim,
                                    max_len, ffn_dim)

    decoder_inputs = jax.random.randint(ki, (B, S_dec), 1, vocab_size, dtype=jnp.int32)
    decoder_inputs = decoder_inputs.at[:, -1].set(0)  # one padding token per sequence
    encoder_outputs = jax.random.normal(ke, (B, S_enc, model_dim), jnp.float32)

    fwd = jax.jit(partial(decoder_forward, num_heads=num_heads, head_dim=head_dim))
    out = jax.block_until_ready(fwd(params, decoder_inputs, encoder_outputs))

    assert out.shape == (B, S_dec, model_dim)
    assert bool(jnp.all(jnp.isfinite(out)))
    print("KERNEL_OK")
</pallas_src>

<mosaic_0001>
module attributes {stable_mosaic.version = 11 : i64} {
  func.func @_ffn_ln_kernel(%arg0: i32, %arg1: i32, %arg2: memref<16x128xf32, #tpu.memory_space<vmem>>, %arg3: memref<128x512xbf16, #tpu.memory_space<vmem>>, %arg4: memref<1x512xf32, #tpu.memory_space<vmem>>, %arg5: memref<512x128xbf16, #tpu.memory_space<vmem>>, %arg6: memref<1x128xf32, #tpu.memory_space<vmem>>, %arg7: memref<1x128xf32, #tpu.memory_space<vmem>>, %arg8: memref<1x128xf32, #tpu.memory_space<vmem>>, %arg9: memref<16x128xf32, #tpu.memory_space<vmem>>, %arg10: memref<16x128xf32, #tpu.memory_space<vmem>>) attributes {dimension_semantics = [#tpu.dimension_semantics<parallel>, #tpu.dimension_semantics<arbitrary>], iteration_bounds = array<i64: 2, 1>, scalar_prefetch = 0 : i64, scratch_operands = 1 : i64, tpu.core_type = #tpu.core_type<tc>, window_params = [{transform_indices = @transform_0, window_bounds = array<i64: 16, 128>}, {transform_indices = @transform_1, window_bounds = array<i64: 128, 512>}, {transform_indices = @transform_2, window_bounds = array<i64: 1, 512>}, {transform_indices = @transform_3, window_bounds = array<i64: 512, 128>}, {pipeline_mode = #tpu.pipeline_mode<synchronous>, transform_indices = @transform_4, window_bounds = array<i64: 1, 128>}, {pipeline_mode = #tpu.pipeline_mode<synchronous>, transform_indices = @transform_5, window_bounds = array<i64: 1, 128>}, {pipeline_mode = #tpu.pipeline_mode<synchronous>, transform_indices = @transform_6, window_bounds = array<i64: 1, 128>}, {transform_indices = @transform_7, window_bounds = array<i64: 16, 128>}]} {
    %c0_i32 = arith.constant 0 : i32
    %0 = arith.cmpi eq, %arg1, %c0_i32 : i32
    %1 = arith.extui %0 : i1 to i32
    %c0_i32_0 = arith.constant 0 : i32
    %2 = arith.cmpi ne, %1, %c0_i32_0 : i32
    scf.if %2 {
      %cst_16 = arith.constant 0.000000e+00 : f32
      %21 = vector.broadcast %cst_16 : f32 to vector<16x128xf32>
      %c0_17 = arith.constant 0 : index
      %c0_18 = arith.constant 0 : index
      %22 = vector.load %arg10[%c0_17, %c0_18] : memref<16x128xf32, #tpu.memory_space<vmem>>, vector<16x128xf32>
      tpu.vector_store %arg10[%c0_17, %c0_18], %21 {strides = array<i32>} : memref<16x128xf32, #tpu.memory_space<vmem>>, vector<16x128xf32>,
    } else {
    }
    %c0 = arith.constant 0 : index
    %c0_1 = arith.constant 0 : index
    %3 = vector.load %arg2[%c0, %c0_1] : memref<16x128xf32, #tpu.memory_space<vmem>>, vector<16x128xf32>
    %4 = arith.truncf %3 : vector<16x128xf32> to vector<16x128xbf16>
    %c0_2 = arith.constant 0 : index
    %c0_3 = arith.constant 0 : index
    %5 = vector.load %arg3[%c0_2, %c0_3] : memref<128x512xbf16, #tpu.memory_space<vmem>>, vector<128x512xbf16>
    %cst = arith.constant dense<0.000000e+00> : vector<16x512xf32>
    %6 = tpu.matmul %4, %5, %cst {dimension_numbers = #tpu.dot_dimension_numbers<[1], [0], [0], [1], [0, 0, 1, 1], [], []>} : vector<16x128xbf16>, vector<128x512xbf16>, vector<16x512xf32> -> vector<16x512xf32>
    %c0_4 = arith.constant 0 : index
    %c0_5 = arith.constant 0 : index
    %7 = vector.load %arg4[%c0_4, %c0_5] : memref<1x512xf32, #tpu.memory_space<vmem>>, vector<1x512xf32>
    %8 = vector.broadcast %7 : vector<1x512xf32> to vector<16x512xf32>
    %9 = arith.addf %6, %8 : vector<16x512xf32>
    %cst_6 = arith.constant 0.000000e+00 : f32
    %10 = vector.broadcast %cst_6 : f32 to vector<16x512xf32>
    %11 = arith.maximumf %9, %10 : vector<16x512xf32>
    %12 = arith.truncf %11 : vector<16x512xf32> to vector<16x512xbf16>
    %c0_7 = arith.constant 0 : index
    %c0_8 = arith.constant 0 : index
    %13 = vector.load %arg10[%c0_7, %c0_8] : memref<16x128xf32, #tpu.memory_space<vmem>>, vector<16x128xf32>
    %c0_9 = arith.constant 0 : index
    %c0_10 = arith.constant 0 : index
    %14 = vector.load %arg5[%c0_9, %c0_10] : memref<512x128xbf16, #tpu.memory_space<vmem>>, vector<512x128xbf16>
    %cst_11 = arith.constant dense<0.000000e+00> : vector<16x128xf32>
    %15 = tpu.matmul %12, %14, %cst_11 {dimension_numbers = #tpu.dot_dimension_numbers<[1], [0], [0], [1], [0, 0, 1, 1], [], []>} : vector<16x512xbf16>, vector<512x128xbf16>, vector<16x128xf32> -> vector<16x128xf32>
    %16 = arith.addf %13, %15 : vector<16x128xf32>
    %c0_12 = arith.constant 0 : index
    %c0_13 = arith.constant 0 : index
    %17 = vector.load %arg10[%c0_12, %c0_13] : memref<16x128xf32, #tpu.memory_space<vmem>>, vector<16x128xf32>
    tpu.vector_store %arg10[%c0_12, %c0_13], %16 {strides = array<i32>} : memref<16x128xf32, #tpu.memory_space<vmem>>, vector<16x128xf32>,
    %c0_i32_14 = arith.constant 0 : i32
    %18 = arith.cmpi eq, %arg1, %c0_i32_14 : i32
    %19 = arith.extui %18 : i1 to i32
    %c0_i32_15 = arith.constant 0 : i32
    %20 = arith.cmpi ne, %19, %c0_i32_15 : i32
    scf.if %20 {
      %c0_16 = arith.constant 0 : index
      %c0_17 = arith.constant 0 : index
      %21 = vector.load %arg10[%c0_16, %c0_17] : memref<16x128xf32, #tpu.memory_space<vmem>>, vector<16x128xf32>
      %c0_18 = arith.constant 0 : index
      %c0_19 = arith.constant 0 : index
      %22 = vector.load %arg6[%c0_18, %c0_19] : memref<1x128xf32, #tpu.memory_space<vmem>>, vector<1x128xf32>
      %23 = vector.broadcast %22 : vector<1x128xf32> to vector<16x128xf32>
      %24 = arith.addf %21, %23 : vector<16x128xf32>
      %c0_20 = arith.constant 0 : index
      %c0_21 = arith.constant 0 : index
      %25 = vector.load %arg2[%c0_20, %c0_21] : memref<16x128xf32, #tpu.memory_space<vmem>>, vector<16x128xf32>
      %26 = arith.addf %24, %25 : vector<16x128xf32>
      %c0_22 = arith.constant 0 : index
      %c0_23 = arith.constant 0 : index
      %27 = vector.load %arg7[%c0_22, %c0_23] : memref<1x128xf32, #tpu.memory_space<vmem>>, vector<1x128xf32>
      %c0_24 = arith.constant 0 : index
      %c0_25 = arith.constant 0 : index
      %28 = vector.load %arg8[%c0_24, %c0_25] : memref<1x128xf32, #tpu.memory_space<vmem>>, vector<1x128xf32>
      %cst_26 = arith.constant dense<0.000000e+00> : vector<16xf32>
      %29 = vector.multi_reduction <add>, %26, %cst_26 [1] : vector<16x128xf32> to vector<16xf32>
      %30 = vector.shape_cast %29 : vector<16xf32> to vector<16x1xf32>
      %cst_27 = arith.constant 1.280000e+02 : f32
      %31 = vector.broadcast %cst_27 : f32 to vector<16x1xf32>
      %32 = arith.divf %30, %31 : vector<16x1xf32>
      %33 = vector.broadcast %32 : vector<16x1xf32> to vector<16x128xf32>
      %34 = arith.subf %26, %33 : vector<16x128xf32>
      %35 = arith.mulf %34, %34 : vector<16x128xf32>
      %cst_28 = arith.constant dense<0.000000e+00> : vector<16xf32>
      %36 = vector.multi_reduction <add>, %35, %cst_28 [1] : vector<16x128xf32> to vector<16xf32>
      %37 = vector.shape_cast %36 : vector<16xf32> to vector<16x1xf32>
      %cst_29 = arith.constant 1.280000e+02 : f32
      %38 = vector.broadcast %cst_29 : f32 to vector<16x1xf32>
      %39 = arith.divf %37, %38 : vector<16x1xf32>
      %40 = vector.broadcast %32 : vector<16x1xf32> to vector<16x128xf32>
      %41 = arith.subf %26, %40 : vector<16x128xf32>
      %cst_30 = arith.constant 9.99999974E-6 : f32
      %42 = vector.broadcast %cst_30 : f32 to vector<16x1xf32>
      %43 = arith.addf %39, %42 : vector<16x1xf32>
      %44 = math.rsqrt %43 : vector<16x1xf32>
      %45 = vector.broadcast %44 : vector<16x1xf32> to vector<16x128xf32>
      %46 = arith.mulf %41, %45 : vector<16x128xf32>
      %47 = vector.broadcast %27 : vector<1x128xf32> to vector<16x128xf32>
      %48 = arith.mulf %46, %47 : vector<16x128xf32>
      %49 = vector.broadcast %28 : vector<1x128xf32> to vector<16x128xf32>
      %50 = arith.addf %48, %49 : vector<16x128xf32>
      %c0_31 = arith.constant 0 : index
      %c0_32 = arith.constant 0 : index
      %51 = vector.load %arg9[%c0_31, %c0_32] : memref<16x128xf32, #tpu.memory_space<vmem>>, vector<16x128xf32>
      tpu.vector_store %arg9[%c0_31, %c0_32], %50 {strides = array<i32>} : memref<16x128xf32, #tpu.memory_space<vmem>>, vector<16x128xf32>,
    } else {
    }
    return
  }
  func.func @transform_0(%arg0: i32, %arg1: i32) -> (i32, i32) {
    %c0_i32 = arith.constant 0 : i32
    %c0_i32_0 = arith.constant 0 : i32
    return %arg0, %c0_i32 : i32, i32
  }
  func.func @transform_1(%arg0: i32, %arg1: i32) -> (i32, i32) {
    %c0_i32 = arith.constant 0 : i32
    %c0_i32_0 = arith.constant 0 : i32
    return %c0_i32, %arg1 : i32, i32
  }
  func.func @transform_2(%arg0: i32, %arg1: i32) -> (i32, i32) {
    %c0_i32 = arith.constant 0 : i32
    %c0_i32_0 = arith.constant 0 : i32
    return %c0_i32, %arg1 : i32, i32
  }
  func.func @transform_3(%arg0: i32, %arg1: i32) -> (i32, i32) {
    %c0_i32 = arith.constant 0 : i32
    %c0_i32_0 = arith.constant 0 : i32
    return %arg1, %c0_i32 : i32, i32
  }
  func.func @transform_4(%arg0: i32, %arg1: i32) -> (i32, i32) {
    %c0_i32 = arith.constant 0 : i32
    %c0_i32_0 = arith.constant 0 : i32
    %c0_i32_1 = arith.constant 0 : i32
    return %c0_i32, %c0_i32_0 : i32, i32
  }
  func.func @transform_5(%arg0: i32, %arg1: i32) -> (i32, i32) {
    %c0_i32 = arith.constant 0 : i32
    %c0_i32_0 = arith.constant 0 : i32
    %c0_i32_1 = arith.constant 0 : i32
    return %c0_i32, %c0_i32_0 : i32, i32
  }
  func.func @transform_6(%arg0: i32, %arg1: i32) -> (i32, i32) {
    %c0_i32 = arith.constant 0 : i32
    %c0_i32_0 = arith.constant 0 : i32
    %c0_i32_1 = arith.constant 0 : i32
    return %c0_i32, %c0_i32_0 : i32, i32
  }
  func.func @transform_7(%arg0: i32, %arg1: i32) -> (i32, i32) {
    %c0_i32 = arith.constant 0 : i32
    %c0_i32_0 = arith.constant 0 : i32
    return %arg0, %c0_i32 : i32, i32
  }
}

module attributes {stable_mosaic.version = 11 : i64} {
  func.func @_cross_attn_block_kernel(%arg0: i32, %arg1: memref<1x16x128xf32, #tpu.memory_space<vmem>>, %arg2: memref<1x16x128xf32, #tpu.memory_space<vmem>>, %arg3: memref<128x128xbf16, #tpu.memory_space<vmem>>, %arg4: memref<1x128xf32, #tpu.memory_space<vmem>>, %arg5: memref<128x256xbf16, #tpu.memory_space<vmem>>, %arg6: memref<1x256xf32, #tpu.memory_space<vmem>>, %arg7: memref<128x128xbf16, #tpu.memory_space<vmem>>, %arg8: memref<1x128xf32, #tpu.memory_space<vmem>>, %arg9: memref<1x128xf32, #tpu.memory_space<vmem>>, %arg10: memref<1x128xf32, #tpu.memory_space<vmem>>, %arg11: memref<1x16x128xf32, #tpu.memory_space<vmem>>) attributes {dimension_semantics = [#tpu.dimension_semantics<parallel>], iteration_bounds = array<i64: 2>, scalar_prefetch = 0 : i64, scratch_operands = 0 : i64, tpu.core_type = #tpu.core_type<tc>, window_params = [{transform_indices = @transform_0, window_bounds = array<i64: 1, 16, 128>}, {transform_indices = @transform_1, window_bounds = array<i64: 1, 16, 128>}, {pipeline_mode = #tpu.pipeline_mode<synchronous>, transform_indices = @transform_2, window_bounds = array<i64: 128, 128>}, {pipeline_mode = #tpu.pipeline_mode<synchronous>, transform_indices = @transform_3, window_bounds = array<i64: 1, 128>}, {pipeline_mode = #tpu.pipeline_mode<synchronous>, transform_indices = @transform_4, window_bounds = array<i64: 128, 256>}, {pipeline_mode = #tpu.pipeline_mode<synchronous>, transform_indices = @transform_5, window_bounds = array<i64: 1, 256>}, {pipeline_mode = #tpu.pipeline_mode<synchronous>, transform_indices = @transform_6, window_bounds = array<i64: 128, 128>}, {pipeline_mode = #tpu.pipeline_mode<synchronous>, transform_indices = @transform_7, window_bounds = array<i64: 1, 128>}, {pipeline_mode = #tpu.pipeline_mode<synchronous>, transform_indices = @transform_8, window_bounds = array<i64: 1, 128>}, {pipeline_mode = #tpu.pipeline_mode<synchronous>, transform_indices = @transform_9, window_bounds = array<i64: 1, 128>}, {transform_indices = @transform_10, window_bounds = array<i64: 1, 16, 128>}]} {
    %c0 = arith.constant 0 : index
    %c0_0 = arith.constant 0 : index
    %c0_1 = arith.constant 0 : index
    %0 = vector.load %arg1[%c0, %c0_0, %c0_1] : memref<1x16x128xf32, #tpu.memory_space<vmem>>, vector<1x16x128xf32>
    %1 = vector.shape_cast %0 : vector<1x16x128xf32> to vector<16x128xf32>
    %c0_2 = arith.constant 0 : index
    %c0_3 = arith.constant 0 : index
    %c0_4 = arith.constant 0 : index
    %2 = vector.load %arg2[%c0_2, %c0_3, %c0_4] : memref<1x16x128xf32, #tpu.memory_space<vmem>>, vector<1x16x128xf32>
    %3 = vector.shape_cast %2 : vector<1x16x128xf32> to vector<16x128xf32>
    %4 = arith.truncf %1 : vector<16x128xf32> to vector<16x128xbf16>
    %c0_5 = arith.constant 0 : index
    %c0_6 = arith.constant 0 : index
    %5 = vector.load %arg3[%c0_5, %c0_6] : memref<128x128xbf16, #tpu.memory_space<vmem>>, vector<128x128xbf16>
    %cst = arith.constant dense<0.000000e+00> : vector<16x128xf32>
    %6 = tpu.matmul %4, %5, %cst {dimension_numbers = #tpu.dot_dimension_numbers<[1], [0], [0], [1], [0, 0, 1, 1], [], []>} : vector<16x128xbf16>, vector<128x128xbf16>, vector<16x128xf32> -> vector<16x128xf32>
    %c0_7 = arith.constant 0 : index
    %c0_8 = arith.constant 0 : index
    %7 = vector.load %arg4[%c0_7, %c0_8] : memref<1x128xf32, #tpu.memory_space<vmem>>, vector<1x128xf32>
    %8 = vector.broadcast %7 : vector<1x128xf32> to vector<16x128xf32>
    %9 = arith.addf %6, %8 : vector<16x128xf32>
    %cst_9 = arith.constant 0.176776692 : f32
    %10 = vector.broadcast %cst_9 : f32 to vector<16x128xf32>
    %11 = arith.mulf %9, %10 : vector<16x128xf32>
    %12 = arith.truncf %3 : vector<16x128xf32> to vector<16x128xbf16>
    %c0_10 = arith.constant 0 : index
    %c0_11 = arith.constant 0 : index
    %13 = vector.load %arg5[%c0_10, %c0_11] : memref<128x256xbf16, #tpu.memory_space<vmem>>, vector<128x256xbf16>
    %cst_12 = arith.constant dense<0.000000e+00> : vector<16x256xf32>
    %14 = tpu.matmul %12, %13, %cst_12 {dimension_numbers = #tpu.dot_dimension_numbers<[1], [0], [0], [1], [0, 0, 1, 1], [], []>} : vector<16x128xbf16>, vector<128x256xbf16>, vector<16x256xf32> -> vector<16x256xf32>
    %c0_13 = arith.constant 0 : index
    %c0_14 = arith.constant 0 : index
    %15 = vector.load %arg6[%c0_13, %c0_14] : memref<1x256xf32, #tpu.memory_space<vmem>>, vector<1x256xf32>
    %16 = vector.broadcast %15 : vector<1x256xf32> to vector<16x256xf32>
    %17 = arith.addf %14, %16 : vector<16x256xf32>
    %18 = vector.extract_strided_slice %17 {offsets = [0, 0], sizes = [16, 128], strides = [1, 1]} : vector<16x256xf32> to vector<16x128xf32>
    %19 = vector.extract_strided_slice %17 {offsets = [0, 128], sizes = [16, 128], strides = [1, 1]} : vector<16x256xf32> to vector<16x128xf32>
    %20 = tpu.iota {dimensions = array<i32: 0>} : vector<16x16xi32>
    %21 = tpu.iota {dimensions = array<i32: 1>} : vector<16x16xi32>
    %22 = arith.cmpi sgt, %21, %20 : vector<16x16xi32>
    %cst_15 = arith.constant -1.000000e+09 : f32
    %cst_16 = arith.constant 0.000000e+00 : f32
    %23 = vector.broadcast %cst_15 : f32 to vector<16x16xf32>
    %24 = vector.broadcast %cst_16 : f32 to vector<16x16xf32>
    %25 = arith.select %22, %23, %24 : vector<16x16xi1>, vector<16x16xf32>
    %26 = vector.extract_strided_slice %11 {offsets = [0, 0], sizes = [16, 32], strides = [1, 1]} : vector<16x128xf32> to vector<16x32xf32>
    %27 = arith.truncf %26 : vector<16x32xf32> to vector<16x32xbf16>
    %28 = vector.extract_strided_slice %18 {offsets = [0, 0], sizes = [16, 32], strides = [1, 1]} : vector<16x128xf32> to vector<16x32xf32>
    %29 = arith.truncf %28 : vector<16x32xf32> to vector<16x32xbf16>
    %30 = vector.extract_strided_slice %19 {offsets = [0, 0], sizes = [16, 32], strides = [1, 1]} : vector<16x128xf32> to vector<16x32xf32>
    %31 = arith.truncf %30 : vector<16x32xf32> to vector<16x32xbf16>
    %cst_17 = arith.constant dense<0.000000e+00> : vector<16x16xf32>
    %32 = tpu.matmul %27, %29, %cst_17 {dimension_numbers = #tpu.dot_dimension_numbers<[1], [1], [0], [0], [0, 0, 1, 0], [], []>} : vector<16x32xbf16>, vector<16x32xbf16>, vector<16x16xf32> -> vector<16x16xf32>
    %33 = arith.addf %32, %25 : vector<16x16xf32>
    %cst_18 = arith.constant dense<0xFF800000> : vector<16xf32>
    %34 = vector.multi_reduction <maximumf>, %33, %cst_18 [1] : vector<16x16xf32> to vector<16xf32>
    %35 = vector.shape_cast %34 : vector<16xf32> to vector<16x1xf32>
    %36 = vector.broadcast %35 : vector<16x1xf32> to vector<16x16xf32>
    %37 = arith.subf %33, %36 : vector<16x16xf32>
    %38 = math.exp %37 : vector<16x16xf32>
    %cst_19 = arith.constant dense<0.000000e+00> : vector<16xf32>
    %39 = vector.multi_reduction <add>, %38, %cst_19 [1] : vector<16x16xf32> to vector<16xf32>
    %40 = vector.shape_cast %39 : vector<16xf32> to vector<16x1xf32>
    %41 = tpu.reciprocal %40 {approx = true} : vector<16x1xf32> -> vector<16x1xf32>
    %42 = vector.broadcast %41 : vector<16x1xf32> to vector<16x16xf32>
    %43 = arith.mulf %38, %42 : vector<16x16xf32>
    %44 = arith.truncf %43 : vector<16x16xf32> to vector<16x16xbf16>
    %cst_20 = arith.constant dense<0.000000e+00> : vector<16x32xf32>
    %45 = tpu.matmul %44, %31, %cst_20 {dimension_numbers = #tpu.dot_dimension_numbers<[1], [0], [0], [1], [0, 0, 1, 1], [], []>} : vector<16x16xbf16>, vector<16x32xbf16>, vector<16x32xf32> -> vector<16x32xf32>
    %46 = vector.extract_strided_slice %11 {offsets = [0, 32], sizes = [16, 32], strides = [1, 1]} : vector<16x128xf32> to vector<16x32xf32>
    %47 = arith.truncf %46 : vector<16x32xf32> to vector<16x32xbf16>
    %48 = vector.extract_strided_slice %18 {offsets = [0, 32], sizes = [16, 32], strides = [1, 1]} : vector<16x128xf32> to vector<16x32xf32>
    %49 = arith.truncf %48 : vector<16x32xf32> to vector<16x32xbf16>
    %50 = vector.extract_strided_slice %19 {offsets = [0, 32], sizes = [16, 32], strides = [1, 1]} : vector<16x128xf32> to vector<16x32xf32>
    %51 = arith.truncf %50 : vector<16x32xf32> to vector<16x32xbf16>
    %cst_21 = arith.constant dense<0.000000e+00> : vector<16x16xf32>
    %52 = tpu.matmul %47, %49, %cst_21 {dimension_numbers = #tpu.dot_dimension_numbers<[1], [1], [0], [0], [0, 0, 1, 0], [], []>} : vector<16x32xbf16>, vector<16x32xbf16>, vector<16x16xf32> -> vector<16x16xf32>
    %53 = arith.addf %52, %25 : vector<16x16xf32>
    %cst_22 = arith.constant dense<0xFF800000> : vector<16xf32>
    %54 = vector.multi_reduction <maximumf>, %53, %cst_22 [1] : vector<16x16xf32> to vector<16xf32>
    %55 = vector.shape_cast %54 : vector<16xf32> to vector<16x1xf32>
    %56 = vector.broadcast %55 : vector<16x1xf32> to vector<16x16xf32>
    %57 = arith.subf %53, %56 : vector<16x16xf32>
    %58 = math.exp %57 : vector<16x16xf32>
    %cst_23 = arith.constant dense<0.000000e+00> : vector<16xf32>
    %59 = vector.multi_reduction <add>, %58, %cst_23 [1] : vector<16x16xf32> to vector<16xf32>
    %60 = vector.shape_cast %59 : vector<16xf32> to vector<16x1xf32>
    %61 = tpu.reciprocal %60 {approx = true} : vector<16x1xf32> -> vector<16x1xf32>
    %62 = vector.broadcast %61 : vector<16x1xf32> to vector<16x16xf32>
    %63 = arith.mulf %58, %62 : vector<16x16xf32>
    %64 = arith.truncf %63 : vector<16x16xf32> to vector<16x16xbf16>
    %cst_24 = arith.constant dense<0.000000e+00> : vector<16x32xf32>
    %65 = tpu.matmul %64, %51, %cst_24 {dimension_numbers = #tpu.dot_dimension_numbers<[1], [0], [0], [1], [0, 0, 1, 1], [], []>} : vector<16x16xbf16>, vector<16x32xbf16>, vector<16x32xf32> -> vector<16x32xf32>
    %66 = vector.extract_strided_slice %11 {offsets = [0, 64], sizes = [16, 32], strides = [1, 1]} : vector<16x128xf32> to vector<16x32xf32>
    %67 = arith.truncf %66 : vector<16x32xf32> to vector<16x32xbf16>
    %68 = vector.extract_strided_slice %18 {offsets = [0, 64], sizes = [16, 32], strides = [1, 1]} : vector<16x128xf32> to vector<16x32xf32>
    %69 = arith.truncf %68 : vector<16x32xf32> to vector<16x32xbf16>
    %70 = vector.extract_strided_slice %19 {offsets = [0, 64], sizes = [16, 32], strides = [1, 1]} : vector<16x128xf32> to vector<16x32xf32>
    %71 = arith.truncf %70 : vector<16x32xf32> to vector<16x32xbf16>
    %cst_25 = arith.constant dense<0.000000e+00> : vector<16x16xf32>
    %72 = tpu.matmul %67, %69, %cst_25 {dimension_numbers = #tpu.dot_dimension_numbers<[1], [1], [0], [0], [0, 0, 1, 0], [], []>} : vector<16x32xbf16>, vector<16x32xbf16>, vector<16x16xf32> -> vector<16x16xf32>
    %73 = arith.addf %72, %25 : vector<16x16xf32>
    %cst_26 = arith.constant dense<0xFF800000> : vector<16xf32>
    %74 = vector.multi_reduction <maximumf>, %73, %cst_26 [1] : vector<16x16xf32> to vector<16xf32>
    %75 = vector.shape_cast %74 : vector<16xf32> to vector<16x1xf32>
    %76 = vector.broadcast %75 : vector<16x1xf32> to vector<16x16xf32>
    %77 = arith.subf %73, %76 : vector<16x16xf32>
    %78 = math.exp %77 : vector<16x16xf32>
    %cst_27 = arith.constant dense<0.000000e+00> : vector<16xf32>
    %79 = vector.multi_reduction <add>, %78, %cst_27 [1] : vector<16x16xf32> to vector<16xf32>
    %80 = vector.shape_cast %79 : vector<16xf32> to vector<16x1xf32>
    %81 = tpu.reciprocal %80 {approx = true} : vector<16x1xf32> -> vector<16x1xf32>
    %82 = vector.broadcast %81 : vector<16x1xf32> to vector<16x16xf32>
    %83 = arith.mulf %78, %82 : vector<16x16xf32>
    %84 = arith.truncf %83 : vector<16x16xf32> to vector<16x16xbf16>
    %cst_28 = arith.constant dense<0.000000e+00> : vector<16x32xf32>
    %85 = tpu.matmul %84, %71, %cst_28 {dimension_numbers = #tpu.dot_dimension_numbers<[1], [0], [0], [1], [0, 0, 1, 1], [], []>} : vector<16x16xbf16>, vector<16x32xbf16>, vector<16x32xf32> -> vector<16x32xf32>
    %86 = vector.extract_strided_slice %11 {offsets = [0, 96], sizes = [16, 32], strides = [1, 1]} : vector<16x128xf32> to vector<16x32xf32>
    %87 = arith.truncf %86 : vector<16x32xf32> to vector<16x32xbf16>
    %88 = vector.extract_strided_slice %18 {offsets = [0, 96], sizes = [16, 32], strides = [1, 1]} : vector<16x128xf32> to vector<16x32xf32>
    %89 = arith.truncf %88 : vector<16x32xf32> to vector<16x32xbf16>
    %90 = vector.extract_strided_slice %19 {offsets = [0, 96], sizes = [16, 32], strides = [1, 1]} : vector<16x128xf32> to vector<16x32xf32>
    %91 = arith.truncf %90 : vector<16x32xf32> to vector<16x32xbf16>
    %cst_29 = arith.constant dense<0.000000e+00> : vector<16x16xf32>
    %92 = tpu.matmul %87, %89, %cst_29 {dimension_numbers = #tpu.dot_dimension_numbers<[1], [1], [0], [0], [0, 0, 1, 0], [], []>} : vector<16x32xbf16>, vector<16x32xbf16>, vector<16x16xf32> -> vector<16x16xf32>
    %93 = arith.addf %92, %25 : vector<16x16xf32>
    %cst_30 = arith.constant dense<0xFF800000> : vector<16xf32>
    %94 = vector.multi_reduction <maximumf>, %93, %cst_30 [1] : vector<16x16xf32> to vector<16xf32>
    %95 = vector.shape_cast %94 : vector<16xf32> to vector<16x1xf32>
    %96 = vector.broadcast %95 : vector<16x1xf32> to vector<16x16xf32>
    %97 = arith.subf %93, %96 : vector<16x16xf32>
    %98 = math.exp %97 : vector<16x16xf32>
    %cst_31 = arith.constant dense<0.000000e+00> : vector<16xf32>
    %99 = vector.multi_reduction <add>, %98, %cst_31 [1] : vector<16x16xf32> to vector<16xf32>
    %100 = vector.shape_cast %99 : vector<16xf32> to vector<16x1xf32>
    %101 = tpu.reciprocal %100 {approx = true} : vector<16x1xf32> -> vector<16x1xf32>
    %102 = vector.broadcast %101 : vector<16x1xf32> to vector<16x16xf32>
    %103 = arith.mulf %98, %102 : vector<16x16xf32>
    %104 = arith.truncf %103 : vector<16x16xf32> to vector<16x16xbf16>
    %cst_32 = arith.constant dense<0.000000e+00> : vector<16x32xf32>
    %105 = tpu.matmul %104, %91, %cst_32 {dimension_numbers = #tpu.dot_dimension_numbers<[1], [0], [0], [1], [0, 0, 1, 1], [], []>} : vector<16x16xbf16>, vector<16x32xbf16>, vector<16x32xf32> -> vector<16x32xf32>
    %106 = tpu.concatenate %45, %65, %85, %105 in 1 : vector<16x32xf32>, vector<16x32xf32>, vector<16x32xf32>, vector<16x32xf32> -> vector<16x128xf32>
    %107 = arith.truncf %106 : vector<16x128xf32> to vector<16x128xbf16>
    %c0_33 = arith.constant 0 : index
    %c0_34 = arith.constant 0 : index
    %108 = vector.load %arg7[%c0_33, %c0_34] : memref<128x128xbf16, #tpu.memory_space<vmem>>, vector<128x128xbf16>
    %cst_35 = arith.constant dense<0.000000e+00> : vector<16x128xf32>
    %109 = tpu.matmul %107, %108, %cst_35 {dimension_numbers = #tpu.dot_dimension_numbers<[1], [0], [0], [1], [0, 0, 1, 1], [], []>} : vector<16x128xbf16>, vector<128x128xbf16>, vector<16x128xf32> -> vector<16x128xf32>
    %c0_36 = arith.constant 0 : index
    %c0_37 = arith.constant 0 : index
    %110 = vector.load %arg8[%c0_36, %c0_37] : memref<1x128xf32, #tpu.memory_space<vmem>>, vector<1x128xf32>
    %111 = vector.broadcast %110 : vector<1x128xf32> to vector<16x128xf32>
    %112 = arith.addf %109, %111 : vector<16x128xf32>
    %113 = arith.addf %112, %1 : vector<16x128xf32>
    %c0_38 = arith.constant 0 : index
    %c0_39 = arith.constant 0 : index
    %114 = vector.load %arg9[%c0_38, %c0_39] : memref<1x128xf32, #tpu.memory_space<vmem>>, vector<1x128xf32>
    %c0_40 = arith.constant 0 : index
    %c0_41 = arith.constant 0 : index
    %115 = vector.load %arg10[%c0_40, %c0_41] : memref<1x128xf32, #tpu.memory_space<vmem>>, vector<1x128xf32>
    %cst_42 = arith.constant dense<0.000000e+00> : vector<16xf32>
    %116 = vector.multi_reduction <add>, %113, %cst_42 [1] : vector<16x128xf32> to vector<16xf32>
    %117 = vector.shape_cast %116 : vector<16xf32> to vector<16x1xf32>
    %cst_43 = arith.constant 1.280000e+02 : f32
    %118 = vector.broadcast %cst_43 : f32 to vector<16x1xf32>
    %119 = arith.divf %117, %118 : vector<16x1xf32>
    %120 = vector.broadcast %119 : vector<16x1xf32> to vector<16x128xf32>
    %121 = arith.subf %113, %120 : vector<16x128xf32>
    %122 = arith.mulf %121, %121 : vector<16x128xf32>
    %cst_44 = arith.constant dense<0.000000e+00> : vector<16xf32>
    %123 = vector.multi_reduction <add>, %122, %cst_44 [1] : vector<16x128xf32> to vector<16xf32>
    %124 = vector.shape_cast %123 : vector<16xf32> to vector<16x1xf32>
    %cst_45 = arith.constant 1.280000e+02 : f32
    %125 = vector.broadcast %cst_45 : f32 to vector<16x1xf32>
    %126 = arith.divf %124, %125 : vector<16x1xf32>
    %127 = vector.broadcast %119 : vector<16x1xf32> to vector<16x128xf32>
    %128 = arith.subf %113, %127 : vector<16x128xf32>
    %cst_46 = arith.constant 9.99999974E-6 : f32
    %129 = vector.broadcast %cst_46 : f32 to vector<16x1xf32>
    %130 = arith.addf %126, %129 : vector<16x1xf32>
    %131 = math.rsqrt %130 : vector<16x1xf32>
    %132 = vector.broadcast %131 : vector<16x1xf32> to vector<16x128xf32>
    %133 = arith.mulf %128, %132 : vector<16x128xf32>
    %134 = vector.broadcast %114 : vector<1x128xf32> to vector<16x128xf32>
    %135 = arith.mulf %133, %134 : vector<16x128xf32>
    %136 = vector.broadcast %115 : vector<1x128xf32> to vector<16x128xf32>
    %137 = arith.addf %135, %136 : vector<16x128xf32>
    %c0_47 = arith.constant 0 : index
    %c0_48 = arith.constant 0 : index
    %c0_49 = arith.constant 0 : index
    %138 = vector.load %arg11[%c0_47, %c0_48, %c0_49] : memref<1x16x128xf32, #tpu.memory_space<vmem>>, vector<1x16x128xf32>
    %139 = vector.shape_cast %138 : vector<1x16x128xf32> to vector<16x128xf32>
    %140 = vector.shape_cast %137 : vector<16x128xf32> to vector<1x16x128xf32>
    tpu.vector_store %arg11[%c0_47, %c0_48, %c0_49], %140 {strides = array<i32>} : memref<1x16x128xf32, #tpu.memory_space<vmem>>, vector<1x16x128xf32>,
    return
  }
  func.func @transform_0(%arg0: i32) -> (i32, i32, i32) {
    %c0_i32 = arith.constant 0 : i32
    %c0_i32_0 = arith.constant 0 : i32
    %c0_i32_1 = arith.constant 0 : i32
    return %arg0, %c0_i32, %c0_i32_0 : i32, i32, i32
  }
  func.func @transform_1(%arg0: i32) -> (i32, i32, i32) {
    %c0_i32 = arith.constant 0 : i32
    %c0_i32_0 = arith.constant 0 : i32
    %c0_i32_1 = arith.constant 0 : i32
    return %arg0, %c0_i32, %c0_i32_0 : i32, i32, i32
  }
  func.func @transform_2(%arg0: i32) -> (i32, i32) {
    %c0_i32 = arith.constant 0 : i32
    %c0_i32_0 = arith.constant 0 : i32
    %c0_i32_1 = arith.constant 0 : i32
    return %c0_i32, %c0_i32_0 : i32, i32
  }
  func.func @transform_3(%arg0: i32) -> (i32, i32) {
    %c0_i32 = arith.constant 0 : i32
    %c0_i32_0 = arith.constant 0 : i32
    %c0_i32_1 = arith.constant 0 : i32
    return %c0_i32, %c0_i32_0 : i32, i32
  }
  func.func @transform_4(%arg0: i32) -> (i32, i32) {
    %c0_i32 = arith.constant 0 : i32
    %c0_i32_0 = arith.constant 0 : i32
    %c0_i32_1 = arith.constant 0 : i32
    return %c0_i32, %c0_i32_0 : i32, i32
  }
  func.func @transform_5(%arg0: i32) -> (i32, i32) {
    %c0_i32 = arith.constant 0 : i32
    %c0_i32_0 = arith.constant 0 : i32
    %c0_i32_1 = arith.constant 0 : i32
    return %c0_i32, %c0_i32_0 : i32, i32
  }
  func.func @transform_6(%arg0: i32) -> (i32, i32) {
    %c0_i32 = arith.constant 0 : i32
    %c0_i32_0 = arith.constant 0 : i32
    %c0_i32_1 = arith.constant 0 : i32
    return %c0_i32, %c0_i32_0 : i32, i32
  }
  func.func @transform_7(%arg0: i32) -> (i32, i32) {
    %c0_i32 = arith.constant 0 : i32
    %c0_i32_0 = arith.constant 0 : i32
    %c0_i32_1 = arith.constant 0 : i32
    return %c0_i32, %c0_i32_0 : i32, i32
  }
  func.func @transform_8(%arg0: i32) -> (i32, i32) {
    %c0_i32 = arith.constant 0 : i32
    %c0_i32_0 = arith.constant 0 : i32
    %c0_i32_1 = arith.constant 0 : i32
    return %c0_i32, %c0_i32_0 : i32, i32
  }
  func.func @transform_9(%arg0: i32) -> (i32, i32) {
    %c0_i32 = arith.constant 0 : i32
    %c0_i32_0 = arith.constant 0 : i32
    %c0_i32_1 = arith.constant 0 : i32
    return %c0_i32, %c0_i32_0 : i32, i32
  }
  func.func @transform_10(%arg0: i32) -> (i32, i32, i32) {
    %c0_i32 = arith.constant 0 : i32
    %c0_i32_0 = arith.constant 0 : i32
    %c0_i32_1 = arith.constant 0 : i32
    return %arg0, %c0_i32, %c0_i32_0 : i32, i32, i32
  }
}

module attributes {stable_mosaic.version = 11 : i64} {
  func.func @_self_attn_block_kernel(%arg0: i32, %arg1: memref<1x16x128xf32, #tpu.memory_space<vmem>>, %arg2: memref<1x1x16xf32, #tpu.memory_space<vmem>>, %arg3: memref<128x384xbf16, #tpu.memory_space<vmem>>, %arg4: memref<1x384xf32, #tpu.memory_space<vmem>>, %arg5: memref<128x128xbf16, #tpu.memory_space<vmem>>, %arg6: memref<1x128xf32, #tpu.memory_space<vmem>>, %arg7: memref<1x128xf32, #tpu.memory_space<vmem>>, %arg8: memref<1x128xf32, #tpu.memory_space<vmem>>, %arg9: memref<1x16x128xf32, #tpu.memory_space<vmem>>) attributes {dimension_semantics = [#tpu.dimension_semantics<parallel>], iteration_bounds = array<i64: 2>, scalar_prefetch = 0 : i64, scratch_operands = 0 : i64, tpu.core_type = #tpu.core_type<tc>, window_params = [{transform_indices = @transform_0, window_bounds = array<i64: 1, 16, 128>}, {transform_indices = @transform_1, window_bounds = array<i64: 1, 1, 16>}, {pipeline_mode = #tpu.pipeline_mode<synchronous>, transform_indices = @transform_2, window_bounds = array<i64: 128, 384>}, {pipeline_mode = #tpu.pipeline_mode<synchronous>, transform_indices = @transform_3, window_bounds = array<i64: 1, 384>}, {pipeline_mode = #tpu.pipeline_mode<synchronous>, transform_indices = @transform_4, window_bounds = array<i64: 128, 128>}, {pipeline_mode = #tpu.pipeline_mode<synchronous>, transform_indices = @transform_5, window_bounds = array<i64: 1, 128>}, {pipeline_mode = #tpu.pipeline_mode<synchronous>, transform_indices = @transform_6, window_bounds = array<i64: 1, 128>}, {pipeline_mode = #tpu.pipeline_mode<synchronous>, transform_indices = @transform_7, window_bounds = array<i64: 1, 128>}, {transform_indices = @transform_8, window_bounds = array<i64: 1, 16, 128>}]} {
    %c0 = arith.constant 0 : index
    %c0_0 = arith.constant 0 : index
    %c0_1 = arith.constant 0 : index
    %0 = vector.load %arg1[%c0, %c0_0, %c0_1] : memref<1x16x128xf32, #tpu.memory_space<vmem>>, vector<1x16x128xf32>
    %1 = vector.shape_cast %0 : vector<1x16x128xf32> to vector<16x128xf32>
    %2 = arith.truncf %1 : vector<16x128xf32> to vector<16x128xbf16>
    %c0_2 = arith.constant 0 : index
    %c0_3 = arith.constant 0 : index
    %3 = vector.load %arg3[%c0_2, %c0_3] : memref<128x384xbf16, #tpu.memory_space<vmem>>, vector<128x384xbf16>
    %cst = arith.constant dense<0.000000e+00> : vector<16x384xf32>
    %4 = tpu.matmul %2, %3, %cst {dimension_numbers = #tpu.dot_dimension_numbers<[1], [0], [0], [1], [0, 0, 1, 1], [], []>} : vector<16x128xbf16>, vector<128x384xbf16>, vector<16x384xf32> -> vector<16x384xf32>
    %c0_4 = arith.constant 0 : index
    %c0_5 = arith.constant 0 : index
    %5 = vector.load %arg4[%c0_4, %c0_5] : memref<1x384xf32, #tpu.memory_space<vmem>>, vector<1x384xf32>
    %6 = vector.broadcast %5 : vector<1x384xf32> to vector<16x384xf32>
    %7 = arith.addf %4, %6 : vector<16x384xf32>
    %8 = vector.extract_strided_slice %7 {offsets = [0, 0], sizes = [16, 128], strides = [1, 1]} : vector<16x384xf32> to vector<16x128xf32>
    %cst_6 = arith.constant 0.176776692 : f32
    %9 = vector.broadcast %cst_6 : f32 to vector<16x128xf32>
    %10 = arith.mulf %8, %9 : vector<16x128xf32>
    %11 = vector.extract_strided_slice %7 {offsets = [0, 128], sizes = [16, 128], strides = [1, 1]} : vector<16x384xf32> to vector<16x128xf32>
    %12 = vector.extract_strided_slice %7 {offsets = [0, 256], sizes = [16, 128], strides = [1, 1]} : vector<16x384xf32> to vector<16x128xf32>
    %c0_7 = arith.constant 0 : index
    %c0_8 = arith.constant 0 : index
    %c0_9 = arith.constant 0 : index
    %13 = vector.load %arg2[%c0_7, %c0_8, %c0_9] : memref<1x1x16xf32, #tpu.memory_space<vmem>>, vector<1x1x16xf32>
    %14 = vector.shape_cast %13 : vector<1x1x16xf32> to vector<1x16xf32>
    %15 = vector.extract_strided_slice %10 {offsets = [0, 0], sizes = [16, 32], strides = [1, 1]} : vector<16x128xf32> to vector<16x32xf32>
    %16 = arith.truncf %15 : vector<16x32xf32> to vector<16x32xbf16>
    %17 = vector.extract_strided_slice %11 {offsets = [0, 0], sizes = [16, 32], strides = [1, 1]} : vector<16x128xf32> to vector<16x32xf32>
    %18 = arith.truncf %17 : vector<16x32xf32> to vector<16x32xbf16>
    %19 = vector.extract_strided_slice %12 {offsets = [0, 0], sizes = [16, 32], strides = [1, 1]} : vector<16x128xf32> to vector<16x32xf32>
    %20 = arith.truncf %19 : vector<16x32xf32> to vector<16x32xbf16>
    %cst_10 = arith.constant dense<0.000000e+00> : vector<16x16xf32>
    %21 = tpu.matmul %16, %18, %cst_10 {dimension_numbers = #tpu.dot_dimension_numbers<[1], [1], [0], [0], [0, 0, 1, 0], [], []>} : vector<16x32xbf16>, vector<16x32xbf16>, vector<16x16xf32> -> vector<16x16xf32>
    %22 = vector.broadcast %14 : vector<1x16xf32> to vector<16x16xf32>
    %23 = arith.addf %21, %22 : vector<16x16xf32>
    %cst_11 = arith.constant dense<0xFF800000> : vector<16xf32>
    %24 = vector.multi_reduction <maximumf>, %23, %cst_11 [1] : vector<16x16xf32> to vector<16xf32>
    %25 = vector.shape_cast %24 : vector<16xf32> to vector<16x1xf32>
    %26 = vector.broadcast %25 : vector<16x1xf32> to vector<16x16xf32>
    %27 = arith.subf %23, %26 : vector<16x16xf32>
    %28 = math.exp %27 : vector<16x16xf32>
    %cst_12 = arith.constant dense<0.000000e+00> : vector<16xf32>
    %29 = vector.multi_reduction <add>, %28, %cst_12 [1] : vector<16x16xf32> to vector<16xf32>
    %30 = vector.shape_cast %29 : vector<16xf32> to vector<16x1xf32>
    %31 = tpu.reciprocal %30 {approx = true} : vector<16x1xf32> -> vector<16x1xf32>
    %32 = vector.broadcast %31 : vector<16x1xf32> to vector<16x16xf32>
    %33 = arith.mulf %28, %32 : vector<16x16xf32>
    %34 = arith.truncf %33 : vector<16x16xf32> to vector<16x16xbf16>
    %cst_13 = arith.constant dense<0.000000e+00> : vector<16x32xf32>
    %35 = tpu.matmul %34, %20, %cst_13 {dimension_numbers = #tpu.dot_dimension_numbers<[1], [0], [0], [1], [0, 0, 1, 1], [], []>} : vector<16x16xbf16>, vector<16x32xbf16>, vector<16x32xf32> -> vector<16x32xf32>
    %36 = vector.extract_strided_slice %10 {offsets = [0, 32], sizes = [16, 32], strides = [1, 1]} : vector<16x128xf32> to vector<16x32xf32>
    %37 = arith.truncf %36 : vector<16x32xf32> to vector<16x32xbf16>
    %38 = vector.extract_strided_slice %11 {offsets = [0, 32], sizes = [16, 32], strides = [1, 1]} : vector<16x128xf32> to vector<16x32xf32>
    %39 = arith.truncf %38 : vector<16x32xf32> to vector<16x32xbf16>
    %40 = vector.extract_strided_slice %12 {offsets = [0, 32], sizes = [16, 32], strides = [1, 1]} : vector<16x128xf32> to vector<16x32xf32>
    %41 = arith.truncf %40 : vector<16x32xf32> to vector<16x32xbf16>
    %cst_14 = arith.constant dense<0.000000e+00> : vector<16x16xf32>
    %42 = tpu.matmul %37, %39, %cst_14 {dimension_numbers = #tpu.dot_dimension_numbers<[1], [1], [0], [0], [0, 0, 1, 0], [], []>} : vector<16x32xbf16>, vector<16x32xbf16>, vector<16x16xf32> -> vector<16x16xf32>
    %43 = vector.broadcast %14 : vector<1x16xf32> to vector<16x16xf32>
    %44 = arith.addf %42, %43 : vector<16x16xf32>
    %cst_15 = arith.constant dense<0xFF800000> : vector<16xf32>
    %45 = vector.multi_reduction <maximumf>, %44, %cst_15 [1] : vector<16x16xf32> to vector<16xf32>
    %46 = vector.shape_cast %45 : vector<16xf32> to vector<16x1xf32>
    %47 = vector.broadcast %46 : vector<16x1xf32> to vector<16x16xf32>
    %48 = arith.subf %44, %47 : vector<16x16xf32>
    %49 = math.exp %48 : vector<16x16xf32>
    %cst_16 = arith.constant dense<0.000000e+00> : vector<16xf32>
    %50 = vector.multi_reduction <add>, %49, %cst_16 [1] : vector<16x16xf32> to vector<16xf32>
    %51 = vector.shape_cast %50 : vector<16xf32> to vector<16x1xf32>
    %52 = tpu.reciprocal %51 {approx = true} : vector<16x1xf32> -> vector<16x1xf32>
    %53 = vector.broadcast %52 : vector<16x1xf32> to vector<16x16xf32>
    %54 = arith.mulf %49, %53 : vector<16x16xf32>
    %55 = arith.truncf %54 : vector<16x16xf32> to vector<16x16xbf16>
    %cst_17 = arith.constant dense<0.000000e+00> : vector<16x32xf32>
    %56 = tpu.matmul %55, %41, %cst_17 {dimension_numbers = #tpu.dot_dimension_numbers<[1], [0], [0], [1], [0, 0, 1, 1], [], []>} : vector<16x16xbf16>, vector<16x32xbf16>, vector<16x32xf32> -> vector<16x32xf32>
    %57 = vector.extract_strided_slice %10 {offsets = [0, 64], sizes = [16, 32], strides = [1, 1]} : vector<16x128xf32> to vector<16x32xf32>
    %58 = arith.truncf %57 : vector<16x32xf32> to vector<16x32xbf16>
    %59 = vector.extract_strided_slice %11 {offsets = [0, 64], sizes = [16, 32], strides = [1, 1]} : vector<16x128xf32> to vector<16x32xf32>
    %60 = arith.truncf %59 : vector<16x32xf32> to vector<16x32xbf16>
    %61 = vector.extract_strided_slice %12 {offsets = [0, 64], sizes = [16, 32], strides = [1, 1]} : vector<16x128xf32> to vector<16x32xf32>
    %62 = arith.truncf %61 : vector<16x32xf32> to vector<16x32xbf16>
    %cst_18 = arith.constant dense<0.000000e+00> : vector<16x16xf32>
    %63 = tpu.matmul %58, %60, %cst_18 {dimension_numbers = #tpu.dot_dimension_numbers<[1], [1], [0], [0], [0, 0, 1, 0], [], []>} : vector<16x32xbf16>, vector<16x32xbf16>, vector<16x16xf32> -> vector<16x16xf32>
    %64 = vector.broadcast %14 : vector<1x16xf32> to vector<16x16xf32>
    %65 = arith.addf %63, %64 : vector<16x16xf32>
    %cst_19 = arith.constant dense<0xFF800000> : vector<16xf32>
    %66 = vector.multi_reduction <maximumf>, %65, %cst_19 [1] : vector<16x16xf32> to vector<16xf32>
    %67 = vector.shape_cast %66 : vector<16xf32> to vector<16x1xf32>
    %68 = vector.broadcast %67 : vector<16x1xf32> to vector<16x16xf32>
    %69 = arith.subf %65, %68 : vector<16x16xf32>
    %70 = math.exp %69 : vector<16x16xf32>
    %cst_20 = arith.constant dense<0.000000e+00> : vector<16xf32>
    %71 = vector.multi_reduction <add>, %70, %cst_20 [1] : vector<16x16xf32> to vector<16xf32>
    %72 = vector.shape_cast %71 : vector<16xf32> to vector<16x1xf32>
    %73 = tpu.reciprocal %72 {approx = true} : vector<16x1xf32> -> vector<16x1xf32>
    %74 = vector.broadcast %73 : vector<16x1xf32> to vector<16x16xf32>
    %75 = arith.mulf %70, %74 : vector<16x16xf32>
    %76 = arith.truncf %75 : vector<16x16xf32> to vector<16x16xbf16>
    %cst_21 = arith.constant dense<0.000000e+00> : vector<16x32xf32>
    %77 = tpu.matmul %76, %62, %cst_21 {dimension_numbers = #tpu.dot_dimension_numbers<[1], [0], [0], [1], [0, 0, 1, 1], [], []>} : vector<16x16xbf16>, vector<16x32xbf16>, vector<16x32xf32> -> vector<16x32xf32>
    %78 = vector.extract_strided_slice %10 {offsets = [0, 96], sizes = [16, 32], strides = [1, 1]} : vector<16x128xf32> to vector<16x32xf32>
    %79 = arith.truncf %78 : vector<16x32xf32> to vector<16x32xbf16>
    %80 = vector.extract_strided_slice %11 {offsets = [0, 96], sizes = [16, 32], strides = [1, 1]} : vector<16x128xf32> to vector<16x32xf32>
    %81 = arith.truncf %80 : vector<16x32xf32> to vector<16x32xbf16>
    %82 = vector.extract_strided_slice %12 {offsets = [0, 96], sizes = [16, 32], strides = [1, 1]} : vector<16x128xf32> to vector<16x32xf32>
    %83 = arith.truncf %82 : vector<16x32xf32> to vector<16x32xbf16>
    %cst_22 = arith.constant dense<0.000000e+00> : vector<16x16xf32>
    %84 = tpu.matmul %79, %81, %cst_22 {dimension_numbers = #tpu.dot_dimension_numbers<[1], [1], [0], [0], [0, 0, 1, 0], [], []>} : vector<16x32xbf16>, vector<16x32xbf16>, vector<16x16xf32> -> vector<16x16xf32>
    %85 = vector.broadcast %14 : vector<1x16xf32> to vector<16x16xf32>
    %86 = arith.addf %84, %85 : vector<16x16xf32>
    %cst_23 = arith.constant dense<0xFF800000> : vector<16xf32>
    %87 = vector.multi_reduction <maximumf>, %86, %cst_23 [1] : vector<16x16xf32> to vector<16xf32>
    %88 = vector.shape_cast %87 : vector<16xf32> to vector<16x1xf32>
    %89 = vector.broadcast %88 : vector<16x1xf32> to vector<16x16xf32>
    %90 = arith.subf %86, %89 : vector<16x16xf32>
    %91 = math.exp %90 : vector<16x16xf32>
    %cst_24 = arith.constant dense<0.000000e+00> : vector<16xf32>
    %92 = vector.multi_reduction <add>, %91, %cst_24 [1] : vector<16x16xf32> to vector<16xf32>
    %93 = vector.shape_cast %92 : vector<16xf32> to vector<16x1xf32>
    %94 = tpu.reciprocal %93 {approx = true} : vector<16x1xf32> -> vector<16x1xf32>
    %95 = vector.broadcast %94 : vector<16x1xf32> to vector<16x16xf32>
    %96 = arith.mulf %91, %95 : vector<16x16xf32>
    %97 = arith.truncf %96 : vector<16x16xf32> to vector<16x16xbf16>
    %cst_25 = arith.constant dense<0.000000e+00> : vector<16x32xf32>
    %98 = tpu.matmul %97, %83, %cst_25 {dimension_numbers = #tpu.dot_dimension_numbers<[1], [0], [0], [1], [0, 0, 1, 1], [], []>} : vector<16x16xbf16>, vector<16x32xbf16>, vector<16x32xf32> -> vector<16x32xf32>
    %99 = tpu.concatenate %35, %56, %77, %98 in 1 : vector<16x32xf32>, vector<16x32xf32>, vector<16x32xf32>, vector<16x32xf32> -> vector<16x128xf32>
    %100 = arith.truncf %99 : vector<16x128xf32> to vector<16x128xbf16>
    %c0_26 = arith.constant 0 : index
    %c0_27 = arith.constant 0 : index
    %101 = vector.load %arg5[%c0_26, %c0_27] : memref<128x128xbf16, #tpu.memory_space<vmem>>, vector<128x128xbf16>
    %cst_28 = arith.constant dense<0.000000e+00> : vector<16x128xf32>
    %102 = tpu.matmul %100, %101, %cst_28 {dimension_numbers = #tpu.dot_dimension_numbers<[1], [0], [0], [1], [0, 0, 1, 1], [], []>} : vector<16x128xbf16>, vector<128x128xbf16>, vector<16x128xf32> -> vector<16x128xf32>
    %c0_29 = arith.constant 0 : index
    %c0_30 = arith.constant 0 : index
    %103 = vector.load %arg6[%c0_29, %c0_30] : memref<1x128xf32, #tpu.memory_space<vmem>>, vector<1x128xf32>
    %104 = vector.broadcast %103 : vector<1x128xf32> to vector<16x128xf32>
    %105 = arith.addf %102, %104 : vector<16x128xf32>
    %106 = arith.addf %105, %1 : vector<16x128xf32>
    %c0_31 = arith.constant 0 : index
    %c0_32 = arith.constant 0 : index
    %107 = vector.load %arg7[%c0_31, %c0_32] : memref<1x128xf32, #tpu.memory_space<vmem>>, vector<1x128xf32>
    %c0_33 = arith.constant 0 : index
    %c0_34 = arith.constant 0 : index
    %108 = vector.load %arg8[%c0_33, %c0_34] : memref<1x128xf32, #tpu.memory_space<vmem>>, vector<1x128xf32>
    %cst_35 = arith.constant dense<0.000000e+00> : vector<16xf32>
    %109 = vector.multi_reduction <add>, %106, %cst_35 [1] : vector<16x128xf32> to vector<16xf32>
    %110 = vector.shape_cast %109 : vector<16xf32> to vector<16x1xf32>
    %cst_36 = arith.constant 1.280000e+02 : f32
    %111 = vector.broadcast %cst_36 : f32 to vector<16x1xf32>
    %112 = arith.divf %110, %111 : vector<16x1xf32>
    %113 = vector.broadcast %112 : vector<16x1xf32> to vector<16x128xf32>
    %114 = arith.subf %106, %113 : vector<16x128xf32>
    %115 = arith.mulf %114, %114 : vector<16x128xf32>
    %cst_37 = arith.constant dense<0.000000e+00> : vector<16xf32>
    %116 = vector.multi_reduction <add>, %115, %cst_37 [1] : vector<16x128xf32> to vector<16xf32>
    %117 = vector.shape_cast %116 : vector<16xf32> to vector<16x1xf32>
    %cst_38 = arith.constant 1.280000e+02 : f32
    %118 = vector.broadcast %cst_38 : f32 to vector<16x1xf32>
    %119 = arith.divf %117, %118 : vector<16x1xf32>
    %120 = vector.broadcast %112 : vector<16x1xf32> to vector<16x128xf32>
    %121 = arith.subf %106, %120 : vector<16x128xf32>
    %cst_39 = arith.constant 9.99999974E-6 : f32
    %122 = vector.broadcast %cst_39 : f32 to vector<16x1xf32>
    %123 = arith.addf %119, %122 : vector<16x1xf32>
    %124 = math.rsqrt %123 : vector<16x1xf32>
    %125 = vector.broadcast %124 : vector<16x1xf32> to vector<16x128xf32>
    %126 = arith.mulf %121, %125 : vector<16x128xf32>
    %127 = vector.broadcast %107 : vector<1x128xf32> to vector<16x128xf32>
    %128 = arith.mulf %126, %127 : vector<16x128xf32>
    %129 = vector.broadcast %108 : vector<1x128xf32> to vector<16x128xf32>
    %130 = arith.addf %128, %129 : vector<16x128xf32>
    %c0_40 = arith.constant 0 : index
    %c0_41 = arith.constant 0 : index
    %c0_42 = arith.constant 0 : index
    %131 = vector.load %arg9[%c0_40, %c0_41, %c0_42] : memref<1x16x128xf32, #tpu.memory_space<vmem>>, vector<1x16x128xf32>
    %132 = vector.shape_cast %131 : vector<1x16x128xf32> to vector<16x128xf32>
    %133 = vector.shape_cast %130 : vector<16x128xf32> to vector<1x16x128xf32>
    tpu.vector_store %arg9[%c0_40, %c0_41, %c0_42], %133 {strides = array<i32>} : memref<1x16x128xf32, #tpu.memory_space<vmem>>, vector<1x16x128xf32>,
    return
  }
  func.func @transform_0(%arg0: i32) -> (i32, i32, i32) {
    %c0_i32 = arith.constant 0 : i32
    %c0_i32_0 = arith.constant 0 : i32
    %c0_i32_1 = arith.constant 0 : i32
    return %arg0, %c0_i32, %c0_i32_0 : i32, i32, i32
  }
  func.func @transform_1(%arg0: i32) -> (i32, i32, i32) {
    %c0_i32 = arith.constant 0 : i32
    %c0_i32_0 = arith.constant 0 : i32
    %c0_i32_1 = arith.constant 0 : i32
    return %arg0, %c0_i32, %c0_i32_0 : i32, i32, i32
  }
  func.func @transform_2(%arg0: i32) -> (i32, i32) {
    %c0_i32 = arith.constant 0 : i32
    %c0_i32_0 = arith.constant 0 : i32
    %c0_i32_1 = arith.constant 0 : i32
    return %c0_i32, %c0_i32_0 : i32, i32
  }
  func.func @transform_3(%arg0: i32) -> (i32, i32) {
    %c0_i32 = arith.constant 0 : i32
    %c0_i32_0 = arith.constant 0 : i32
    %c0_i32_1 = arith.constant 0 : i32
    return %c0_i32, %c0_i32_0 : i32, i32
  }
  func.func @transform_4(%arg0: i32) -> (i32, i32) {
    %c0_i32 = arith.constant 0 : i32
    %c0_i32_0 = arith.constant 0 : i32
    %c0_i32_1 = arith.constant 0 : i32
    return %c0_i32, %c0_i32_0 : i32, i32
  }
  func.func @transform_5(%arg0: i32) -> (i32, i32) {
    %c0_i32 = arith.constant 0 : i32
    %c0_i32_0 = arith.constant 0 : i32
    %c0_i32_1 = arith.constant 0 : i32
    return %c0_i32, %c0_i32_0 : i32, i32
  }
  func.func @transform_6(%arg0: i32) -> (i32, i32) {
    %c0_i32 = arith.constant 0 : i32
    %c0_i32_0 = arith.constant 0 : i32
    %c0_i32_1 = arith.constant 0 : i32
    return %c0_i32, %c0_i32_0 : i32, i32
  }
  func.func @transform_7(%arg0: i32) -> (i32, i32) {
    %c0_i32 = arith.constant 0 : i32
    %c0_i32_0 = arith.constant 0 : i32
    %c0_i32_1 = arith.constant 0 : i32
    return %c0_i32, %c0_i32_0 : i32, i32
  }
  func.func @transform_8(%arg0: i32) -> (i32, i32, i32) {
    %c0_i32 = arith.constant 0 : i32
    %c0_i32_0 = arith.constant 0 : i32
    %c0_i32_1 = arith.constant 0 : i32
    return %arg0, %c0_i32, %c0_i32_0 : i32, i32, i32
  }
}

module attributes {stable_mosaic.version = 11 : i64} {
  func.func @_ffn_ln_kernel(%arg0: i32, %arg1: i32, %arg2: memref<16x128xf32, #tpu.memory_space<vmem>>, %arg3: memref<128x512xbf16, #tpu.memory_space<vmem>>, %arg4: memref<1x512xf32, #tpu.memory_space<vmem>>, %arg5: memref<512x128xbf16, #tpu.memory_space<vmem>>, %arg6: memref<1x128xf32, #tpu.memory_space<vmem>>, %arg7: memref<1x128xf32, #tpu.memory_space<vmem>>, %arg8: memref<1x128xf32, #tpu.memory_space<vmem>>, %arg9: memref<16x128xf32, #tpu.memory_space<vmem>>, %arg10: memref<16x128xf32, #tpu.memory_space<vmem>>) attributes {dimension_semantics = [#tpu.dimension_semantics<parallel>, #tpu.dimension_semantics<arbitrary>], iteration_bounds = array<i64: 2, 1>, scalar_prefetch = 0 : i64, scratch_operands = 1 : i64, tpu.core_type = #tpu.core_type<tc>, window_params = [{transform_indices = @transform_0, window_bounds = array<i64: 16, 128>}, {transform_indices = @transform_1, window_bounds = array<i64: 128, 512>}, {transform_indices = @transform_2, window_bounds = array<i64: 1, 512>}, {transform_indices = @transform_3, window_bounds = array<i64: 512, 128>}, {pipeline_mode = #tpu.pipeline_mode<synchronous>, transform_indices = @transform_4, window_bounds = array<i64: 1, 128>}, {pipeline_mode = #tpu.pipeline_mode<synchronous>, transform_indices = @transform_5, window_bounds = array<i64: 1, 128>}, {pipeline_mode = #tpu.pipeline_mode<synchronous>, transform_indices = @transform_6, window_bounds = array<i64: 1, 128>}, {transform_indices = @transform_7, window_bounds = array<i64: 16, 128>}]} {
    %c0_i32 = arith.constant 0 : i32
    %0 = arith.cmpi eq, %arg1, %c0_i32 : i32
    %1 = arith.extui %0 : i1 to i32
    %c0_i32_0 = arith.constant 0 : i32
    %2 = arith.cmpi ne, %1, %c0_i32_0 : i32
    scf.if %2 {
      %cst_16 = arith.constant 0.000000e+00 : f32
      %21 = vector.broadcast %cst_16 : f32 to vector<16x128xf32>
      %c0_17 = arith.constant 0 : index
      %c0_18 = arith.constant 0 : index
      %22 = vector.load %arg10[%c0_17, %c0_18] : memref<16x128xf32, #tpu.memory_space<vmem>>, vector<16x128xf32>
      tpu.vector_store %arg10[%c0_17, %c0_18], %21 {strides = array<i32>} : memref<16x128xf32, #tpu.memory_space<vmem>>, vector<16x128xf32>,
    } else {
    }
    %c0 = arith.constant 0 : index
    %c0_1 = arith.constant 0 : index
    %3 = vector.load %arg2[%c0, %c0_1] : memref<16x128xf32, #tpu.memory_space<vmem>>, vector<16x128xf32>
    %4 = arith.truncf %3 : vector<16x128xf32> to vector<16x128xbf16>
    %c0_2 = arith.constant 0 : index
    %c0_3 = arith.constant 0 : index
    %5 = vector.load %arg3[%c0_2, %c0_3] : memref<128x512xbf16, #tpu.memory_space<vmem>>, vector<128x512xbf16>
    %cst = arith.constant dense<0.000000e+00> : vector<16x512xf32>
    %6 = tpu.matmul %4, %5, %cst {dimension_numbers = #tpu.dot_dimension_numbers<[1], [0], [0], [1], [0, 0, 1, 1], [], []>} : vector<16x128xbf16>, vector<128x512xbf16>, vector<16x512xf32> -> vector<16x512xf32>
    %c0_4 = arith.constant 0 : index
    %c0_5 = arith.constant 0 : index
    %7 = vector.load %arg4[%c0_4, %c0_5] : memref<1x512xf32, #tpu.memory_space<vmem>>, vector<1x512xf32>
    %8 = vector.broadcast %7 : vector<1x512xf32> to vector<16x512xf32>
    %9 = arith.addf %6, %8 : vector<16x512xf32>
    %cst_6 = arith.constant 0.000000e+00 : f32
    %10 = vector.broadcast %cst_6 : f32 to vector<16x512xf32>
    %11 = arith.maximumf %9, %10 : vector<16x512xf32>
    %12 = arith.truncf %11 : vector<16x512xf32> to vector<16x512xbf16>
    %c0_7 = arith.constant 0 : index
    %c0_8 = arith.constant 0 : index
    %13 = vector.load %arg10[%c0_7, %c0_8] : memref<16x128xf32, #tpu.memory_space<vmem>>, vector<16x128xf32>
    %c0_9 = arith.constant 0 : index
    %c0_10 = arith.constant 0 : index
    %14 = vector.load %arg5[%c0_9, %c0_10] : memref<512x128xbf16, #tpu.memory_space<vmem>>, vector<512x128xbf16>
    %cst_11 = arith.constant dense<0.000000e+00> : vector<16x128xf32>
    %15 = tpu.matmul %12, %14, %cst_11 {dimension_numbers = #tpu.dot_dimension_numbers<[1], [0], [0], [1], [0, 0, 1, 1], [], []>} : vector<16x512xbf16>, vector<512x128xbf16>, vector<16x128xf32> -> vector<16x128xf32>
    %16 = arith.addf %13, %15 : vector<16x128xf32>
    %c0_12 = arith.constant 0 : index
    %c0_13 = arith.constant 0 : index
    %17 = vector.load %arg10[%c0_12, %c0_13] : memref<16x128xf32, #tpu.memory_space<vmem>>, vector<16x128xf32>
    tpu.vector_store %arg10[%c0_12, %c0_13], %16 {strides = array<i32>} : memref<16x128xf32, #tpu.memory_space<vmem>>, vector<16x128xf32>,
    %c0_i32_14 = arith.constant 0 : i32
    %18 = arith.cmpi eq, %arg1, %c0_i32_14 : i32
    %19 = arith.extui %18 : i1 to i32
    %c0_i32_15 = arith.constant 0 : i32
    %20 = arith.cmpi ne, %19, %c0_i32_15 : i32
    scf.if %20 {
      %c0_16 = arith.constant 0 : index
      %c0_17 = arith.constant 0 : index
      %21 = vector.load %arg10[%c0_16, %c0_17] : memref<16x128xf32, #tpu.memory_space<vmem>>, vector<16x128xf32>
      %c0_18 = arith.constant 0 : index
      %c0_19 = arith.constant 0 : index
      %22 = vector.load %arg6[%c0_18, %c0_19] : memref<1x128xf32, #tpu.memory_space<vmem>>, vector<1x128xf32>
      %23 = vector.broadcast %22 : vector<1x128xf32> to vector<16x128xf32>
      %24 = arith.addf %21, %23 : vector<16x128xf32>
      %c0_20 = arith.constant 0 : index
      %c0_21 = arith.constant 0 : index
      %25 = vector.load %arg2[%c0_20, %c0_21] : memref<16x128xf32, #tpu.memory_space<vmem>>, vector<16x128xf32>
      %26 = arith.addf %24, %25 : vector<16x128xf32>
      %c0_22 = arith.constant 0 : index
      %c0_23 = arith.constant 0 : index
      %27 = vector.load %arg7[%c0_22, %c0_23] : memref<1x128xf32, #tpu.memory_space<vmem>>, vector<1x128xf32>
      %c0_24 = arith.constant 0 : index
      %c0_25 = arith.constant 0 : index
      %28 = vector.load %arg8[%c0_24, %c0_25] : memref<1x128xf32, #tpu.memory_space<vmem>>, vector<1x128xf32>
      %cst_26 = arith.constant dense<0.000000e+00> : vector<16xf32>
      %29 = vector.multi_reduction <add>, %26, %cst_26 [1] : vector<16x128xf32> to vector<16xf32>
      %30 = vector.shape_cast %29 : vector<16xf32> to vector<16x1xf32>
      %cst_27 = arith.constant 1.280000e+02 : f32
      %31 = vector.broadcast %cst_27 : f32 to vector<16x1xf32>
      %32 = arith.divf %30, %31 : vector<16x1xf32>
      %33 = vector.broadcast %32 : vector<16x1xf32> to vector<16x128xf32>
      %34 = arith.subf %26, %33 : vector<16x128xf32>
      %35 = arith.mulf %34, %34 : vector<16x128xf32>
      %cst_28 = arith.constant dense<0.000000e+00> : vector<16xf32>
      %36 = vector.multi_reduction <add>, %35, %cst_28 [1] : vector<16x128xf32> to vector<16xf32>
      %37 = vector.shape_cast %36 : vector<16xf32> to vector<16x1xf32>
      %cst_29 = arith.constant 1.280000e+02 : f32
      %38 = vector.broadcast %cst_29 : f32 to vector<16x1xf32>
      %39 = arith.divf %37, %38 : vector<16x1xf32>
      %40 = vector.broadcast %32 : vector<16x1xf32> to vector<16x128xf32>
      %41 = arith.subf %26, %40 : vector<16x128xf32>
      %cst_30 = arith.constant 9.99999974E-6 : f32
      %42 = vector.broadcast %cst_30 : f32 to vector<16x1xf32>
      %43 = arith.addf %39, %42 : vector<16x1xf32>
      %44 = math.rsqrt %43 : vector<16x1xf32>
      %45 = vector.broadcast %44 : vector<16x1xf32> to vector<16x128xf32>
      %46 = arith.mulf %41, %45 : vector<16x128xf32>
      %47 = vector.broadcast %27 : vector<1x128xf32> to vector<16x128xf32>
      %48 = arith.mulf %46, %47 : vector<16x128xf32>
      %49 = vector.broadcast %28 : vector<1x128xf32> to vector<16x128xf32>
      %50 = arith.addf %48, %49 : vector<16x128xf32>
      %c0_31 = arith.constant 0 : index
      %c0_32 = arith.constant 0 : index
      %51 = vector.load %arg9[%c0_31, %c0_32] : memref<16x128xf32, #tpu.memory_space<vmem>>, vector<16x128xf32>
      tpu.vector_store %arg9[%c0_31, %c0_32], %50 {strides = array<i32>} : memref<16x128xf32, #tpu.memory_space<vmem>>, vector<16x128xf32>,
    } else {
    }
    return
  }
  func.func @transform_0(%arg0: i32, %arg1: i32) -> (i32, i32) {
    %c0_i32 = arith.constant 0 : i32
    %c0_i32_0 = arith.constant 0 : i32
    return %arg0, %c0_i32 : i32, i32
  }
  func.func @transform_1(%arg0: i32, %arg1: i32) -> (i32, i32) {
    %c0_i32 = arith.constant 0 : i32
    %c0_i32_0 = arith.constant 0 : i32
    return %c0_i32, %arg1 : i32, i32
  }
  func.func @transform_2(%arg0: i32, %arg1: i32) -> (i32, i32) {
    %c0_i32 = arith.constant 0 : i32
    %c0_i32_0 = arith.constant 0 : i32
    return %c0_i32, %arg1 : i32, i32
  }
  func.func @transform_3(%arg0: i32, %arg1: i32) -> (i32, i32) {
    %c0_i32 = arith.constant 0 : i32
    %c0_i32_0 = arith.constant 0 : i32
    return %arg1, %c0_i32 : i32, i32
  }
  func.func @transform_4(%arg0: i32, %arg1: i32) -> (i32, i32) {
    %c0_i32 = arith.constant 0 : i32
    %c0_i32_0 = arith.constant 0 : i32
    %c0_i32_1 = arith.constant 0 : i32
    return %c0_i32, %c0_i32_0 : i32, i32
  }
  func.func @transform_5(%arg0: i32, %arg1: i32) -> (i32, i32) {
    %c0_i32 = arith.constant 0 : i32
    %c0_i32_0 = arith.constant 0 : i32
    %c0_i32_1 = arith.constant 0 : i32
    return %c0_i32, %c0_i32_0 : i32, i32
  }
  func.func @transform_6(%arg0: i32, %arg1: i32) -> (i32, i32) {
    %c0_i32 = arith.constant 0 : i32
    %c0_i32_0 = arith.constant 0 : i32
    %c0_i32_1 = arith.constant 0 : i32
    return %c0_i32, %c0_i32_0 : i32, i32
  }
  func.func @transform_7(%arg0: i32, %arg1: i32) -> (i32, i32) {
    %c0_i32 = arith.constant 0 : i32
    %c0_i32_0 = arith.constant 0 : i32
    return %arg0, %c0_i32 : i32, i32
  }
}

</mosaic_0001>

<bundles_post_ra>
// kernel: decoder_forward.35
= control target key start
LH: loop header
LB: loop body
LE: loop exit
PB: predicated region body
PF: predicated region fallthrough
CT: control target
= control target key end

     0   :  { %12 = vsyncpa [#allocation4], 0  ;;  %s1925_s0 = inlined_call_operand.vmem [shape: f32[32,128], index: 0, kind: input, shape index: {}]   ;;  %s1926_s1 = inlined_call_operand.vmem [shape: bf16[128,512], index: 1, kind: input, shape index: {}]   ;;  %s1927_s2 = inlined_call_operand.vmem [shape: f32[1,512], index: 2, kind: input, shape index: {}]   ;;  %s1928_s3 = inlined_call_operand.vmem [shape: bf16[512,128], index: 3, kind: input, shape index: {}]   ;;  %s1929_s4 = inlined_call_operand.vmem [shape: f32[1,128], index: 4, kind: input, shape index: {}]   ;;  %s1930_s5 = inlined_call_operand.vmem [shape: f32[1,128], index: 5, kind: input, shape index: {}]   ;;  %s1931_s6 = inlined_call_operand.vmem [shape: f32[1,128], index: 6, kind: input, shape index: {}]   ;;  %s1932_s7 = inlined_call_operand.hbm [shape: f32[32,128], index: 7, kind: output, shape index: {}]  }
   0x1   :  { %14 = vsyncpa [#allocation4 + $0x1], 0  ;;  %s1600_s24 = smov 0   ;;  %s1602_s25 = smov 0  }
   0x2   :  { %s1604_s26 = smov 0   ;;  %s1606_s27 = smov 0  }
   0x3   :  { %s1608_s28 = smov 0   ;;  %s1610_s29 = smov 0  }
   0x4 LB: > { %s1208_s30 = sadd.s32 4294967295, %s1554_s29   ;;  %s1209_s8 = sadd.s32 4294967294, %s1554_s29   ;;  %s1554_s29 = sphi %s1610_s29, %s20_s29   ;;  %s1550_s28 = sphi %s1608_s28, %s1939_s28   ;;  %s1546_s27 = sphi %s1606_s27, %s1938_s27   ;;  %s1542_s26 = sphi %s1604_s26, %s1937_s26   ;;  %s1538_s25 = sphi %s1602_s25, %s1936_s25   ;;  %s1534_s24 = sphi %s1600_s24, %s1935_s24  }
   0x5   : > { %s32_s9 = sadd.s32 1, %s1550_s28  ;;  %s206_s10 = sadd.s32 1, %s1542_s26 }
   0x6   : > { %p34_p0 = scmp.ge.s32.totalorder %s32_s9, 2  ;;  %p216_p1 = scmp.ne.s32.totalorder %s1542_s26, %s1538_s25 }
   0x7   : > { %p217_p2 = scmp.eq.s32.totalorder %s1208_s30, 1  ;;  %p222_p3 = scmp.ne.s32.totalorder %s1538_s25, %s1534_s24 }
   0x8   : > { %s1941_s9 = smov (%p34_p0, %s32_s9), 0  ;;  %p223_p5 = scmp.eq.s32.totalorder %s1209_s8, 1 }
   0x9   : > { %p1640_p4 = por %p217_p2, %p216_p1  ;;  %s203_s12 = ssub.s32 %s1550_s28, %s1941_s9 }
   0xa   : > { %p1215_p6 = scmp.ge.s32.totalorder %s1554_s29, 1  ;;  %p204_p7 = scmp.eq.s32.totalorder %s203_s12, 0 }
   0xb   : > { %p1647_p8 = por %p223_p5, %p222_p3  ;;  %p285_p9 = scmp.lt.s32.totalorder %s1554_s29, 3 }
   0xc   : > { %s1653_s14 = scalar_select %p204_p7, %s1542_s26, %s206_s10  }
   0xd   : > { %p286_p10 = pnand %p1215_p6, %p285_p9 }
   0xe   : > { %s1217_s17 = sshll.u32 (!%p286_p10), %s1546_s27, 1  ;;  %s1291_s18 = sshll.u32 (!%p286_p10), %s1546_s27, 8 }
   0xf   : > { %289 = sbr.rel (%p286_p10) target bundleno = 787 (0x313), region = 48  ;;  %p332_p11 = scmp.lt.s32.totalorder (!%p286_p10), %s1217_s17, 3 }
  0x10   : > { %s1876_s22 = scalar_lea.hbm (!%p286_p10), %s1932_s7, %s1291_s18  ;;  %s1557_s27 = smov (!%p286_p10), [#allocation3]  }
  0x11   : > { %s1482_s12 = sshll.u32 (!%p286_p10), %s1557_s27, 4  ;;  %s1483_s12 = int_to_ptr.vmem [resolvable:$false] %s1482_s12 }
  0x14   : > { %v1394_v0 = vld [vmem:[%s1926_s1 + $0xe4] ss:$16 sps:$4 sm:$0xff]   ;;  %v1396_v1 = vld [vmem:[%s1926_s1 + $0xec] ss:$16 sps:$4 sm:$0xff]   ;;  %v1556_v2 = vmov 0   ;;  %s1943_s17 = smov (!%p332_p11, %s1217_s17), 3 }
  0x15   : > { %611 = vmatprep.mubr.bf16.mxu0 %v1556_v2  ;;  %654 = vmatprep.mubr.bf16.mxu1 %v1556_v2  ;;  %v1398_v3 = vld [vmem:[%s1926_s1 + $0xe0] ss:$16 sps:$4 sm:$0xff]   ;;  %v1399_v4 = vld [vmem:[%s1926_s1 + $0xe8] ss:$16 sps:$4 sm:$0xff]   ;;  %v1400_v5 = vld [vmem:[%s1926_s1 + $0xc4] ss:$16 sps:$4 sm:$0xff]  }
  0x16   : > { %579 = vmatprep.subr.bf16.mxu0 %v1394_v0  ;;  %622 = vmatprep.subr.bf16.mxu1 %v1396_v1  ;;  %v1402_v6 = vld [vmem:[%s1926_s1 + $0xcc] ss:$16 sps:$4 sm:$0xff]   ;;  %v1404_v7 = vld [vmem:[%s1926_s1 + $0xc0] ss:$16 sps:$4 sm:$0xff]   ;;  %v1405_v8 = vld [vmem:[%s1926_s1 + $0xc8] ss:$16 sps:$4 sm:$0xff]  }
  0x17   : > { %580 = vmatpush1.bf16.msra.mxu0 %v1398_v3  ;;  %623 = vmatpush1.bf16.msra.mxu1 %v1399_v4  ;;  %v1406_v9 = vld [vmem:[%s1926_s1 + $0xa4] ss:$16 sps:$4 sm:$0xff]   ;;  %v1408_v10 = vld [vmem:[%s1926_s1 + $0xac] ss:$16 sps:$4 sm:$0xff]   ;;  %v1410_v11 = vld [vmem:[%s1926_s1 + $0xa0] ss:$16 sps:$4 sm:$0xff]   ;;  %v399_v4 = vlaneseq }
  0x18   : > { %581 = vmatprep.subr.bf16.mxu0 %v1400_v5  ;;  %624 = vmatprep.subr.bf16.mxu1 %v1402_v6  ;;  %v1411_v12 = vld [vmem:[%s1926_s1 + $0xa8] ss:$16 sps:$4 sm:$0xff]   ;;  %v1412_v13 = vld [vmem:[%s1926_s1 + $0x84] ss:$16 sps:$4 sm:$0xff]   ;;  %v1414_v14 = vld [vmem:[%s1926_s1 + $0x8c] ss:$16 sps:$4 sm:$0xff]  }
  0x19   : > { %v1416_v15 = vld [vmem:[%s1926_s1 + $0x80] ss:$16 sps:$4 sm:$0xff]   ;;  %v1417_v16 = vld [vmem:[%s1926_s1 + $0x88] ss:$16 sps:$4 sm:$0xff]   ;;  %v1418_v17 = vld [vmem:[%s1926_s1 + $0x64] ss:$16 sps:$4 sm:$0xff]  }
  0x1a   : > { %v1420_v18 = vld [vmem:[%s1926_s1 + $0x6c] ss:$16 sps:$4 sm:$0xff]   ;;  %v1422_v19 = vld [vmem:[%s1926_s1 + $0x60] ss:$16 sps:$4 sm:$0xff]   ;;  %v1423_v20 = vld [vmem:[%s1926_s1 + $0x68] ss:$16 sps:$4 sm:$0xff]  }
  0x1b   : > { %582 = vmatpush1.bf16.msra.mxu0 %v1404_v7  ;;  %625 = vmatpush1.bf16.msra.mxu1 %v1405_v8  ;;  %v1424_v21 = vld [vmem:[%s1926_s1 + $0x44] ss:$16 sps:$4 sm:$0xff]   ;;  %v1426_v22 = vld [vmem:[%s1926_s1 + $0x4c] ss:$16 sps:$4 sm:$0xff]   ;;  %v1428_v23 = vld [vmem:[%s1926_s1 + $0x40] ss:$16 sps:$4 sm:$0xff]  }
  0x1c   : > { %583 = vmatprep.subr.bf16.mxu0 %v1406_v9  ;;  %626 = vmatprep.subr.bf16.mxu1 %v1408_v10  ;;  %v1429_v24 = vld [vmem:[%s1926_s1 + $0x48] ss:$16 sps:$4 sm:$0xff]   ;;  %s1218_s10 = sshll.u32 %s1943_s17, 3  ;;  %v1430_v25 = vld [vmem:[%s1926_s1 + $0x24] ss:$16 sps:$4 sm:$0xff]   ;;  %v400_v5 = vshrl.u32 %v399_v4, 7 }
  0x1d   : > { %v1432_v26 = vld [vmem:[%s1926_s1 + $0x2c] ss:$16 sps:$4 sm:$0xff]   ;;  %v1434_v27 = vld [vmem:[%s1926_s1 + $0x20] ss:$16 sps:$4 sm:$0xff]   ;;  %v1435_v28 = vld [vmem:[%s1926_s1 + $0x28] ss:$16 sps:$4 sm:$0xff]   ;;  %s335_s30 = scalar_lea.vmem %s1925_s0, %s1218_s10 }
  0x1e   : > { %v1436_v29 = vld [vmem:[%s1926_s1 + $0x4] ss:$16 sps:$4 sm:$0xff]   ;;  %v1438_v30 = vld [vmem:[%s1926_s1 + $0xc] ss:$16 sps:$4 sm:$0xff]   ;;  %v1440_v31 = vld [vmem:[%s1926_s1] ss:$16 sps:$4 sm:$0xff]  }
  0x1f   : > { %584 = vmatpush1.bf16.msra.mxu0 %v1410_v11  ;;  %627 = vmatpush1.bf16.msra.mxu1 %v1411_v12  ;;  %v1441_v32 = vld [vmem:[%s1926_s1 + $0x8] ss:$16 sps:$4 sm:$0xff]   ;;  %v1755_v33 = vld [vmem:[%s335_s30] sm:$0xff]  ;;  %v1446_v40 = vld [vmem:[%s1928_s3 + $0x70] sm:$0xff]   ;;  %v405_v6 = vsub.s32 1, %v400_v5  ;;  %v413_v7 = vsub.s32 3, %v400_v5 }
  0x20   : > { %585 = vmatprep.subr.bf16.mxu0 %v1412_v13  ;;  %628 = vmatprep.subr.bf16.mxu1 %v1414_v14  ;;  %v1757_v34 = vld [vmem:[%s335_s30 + $0x8] sm:$0xff]  ;;  %v1442_v35 = vld [vmem:[%s1928_s3 + $0x78] sm:$0xff]   ;;  %v1447_v41 = vld [vmem:[%s1928_s3 + $0xf0] sm:$0xff]   ;;  %v401_v8 = vsub.s32 0, %v400_v5  ;;  %v409_v9 = vsub.s32 2, %v400_v5  ;;  %s328_s17 = sand.u32 1, %s1538_s25  }
  0x21   : > { %v1443_v36 = vld [vmem:[%s1928_s3 + $0xf8] sm:$0xff]   ;;  %v364_v38 = vpack.c.bf16 %v1757_v34, %v1755_v33  ;;  %v1448_v42 = vld [vmem:[%s1928_s3 + $0x30] sm:$0xff]   ;;  %v1450_v44 = vld [vmem:[%s1928_s3 + $0x68] sm:$0xff]   ;;  %s1216_s30 = sshll.u32 %s328_s17, 4  ;;  %s1880_s23 = scalar_lea.sflag [#allocation4], %s328_s17 }
  0x22   : > { %v1444_v37 = vld [vmem:[%s1928_s3 + $0x38] sm:$0xff]   ;;  %v1449_v43 = vld [vmem:[%s1928_s3 + $0xb0] sm:$0xff]   ;;  %v1451_v45 = vld [vmem:[%s1928_s3 + $0xe8] sm:$0xff]   ;;  %s330_s19 = scalar_lea.vmem [#allocation3], %s1216_s30  ;;  %s1484_s30 = scalar_lea.vmem %s1483_s12, 512 }
  0x23   : > { %586 = vmatpush1.bf16.msra.mxu0 %v1416_v15  ;;  %629 = vmatpush1.bf16.msra.mxu1 %v1417_v16  ;;  %v1445_v39 = vld [vmem:[%s1928_s3 + $0xb8] sm:$0xff]   ;;  %v1452_v46 = vld [vmem:[%s1928_s3 + $0x28] sm:$0xff]   ;;  %v1454_v48 = vld [vmem:[%s1928_s3 + $0x60] sm:$0xff]   ;;  %s1096_s20 = sshll.u32 %s330_s19, 4  ;;  %s1878_s20 = int_to_ptr.vmem [resolvable:$true] %s1096_s20 }
  0x24   : > { %587 = vmatprep.subr.bf16.mxu0 %v1418_v17  ;;  %630 = vmatprep.subr.bf16.mxu1 %v1420_v18  ;;  %v1453_v47 = vld [vmem:[%s1928_s3 + $0xa8] sm:$0xff]   ;;  %v1455_v49 = vld [vmem:[%s1928_s3 + $0xe0] sm:$0xff]   ;;  %v1458_v52 = vld [vmem:[%s1928_s3 + $0x58] sm:$0xff]   ;;  %s1478_s8 = scalar_lea.vmem %s1878_s20, 256  ;;  %p1485_p1 = scmp.lt.s32.totalorder %s1878_s20, %s1483_s12 }
  0x25   : > { %v1456_v50 = vld [vmem:[%s1928_s3 + $0x20] sm:$0xff]   ;;  %v1459_v53 = vld [vmem:[%s1928_s3 + $0xd8] sm:$0xff]   ;;  %v1462_v56 = vld [vmem:[%s1928_s3 + $0x50] sm:$0xff]   ;;  %p1479_p12 = scmp.ne.s32.totalorder %s1878_s20, %s1478_s8  ;;  %p1486_p2 = scmp.lt.s32.totalorder %s1484_s30, %s1478_s8 }
  0x26   : > { %v1457_v51 = vld [vmem:[%s1928_s3 + $0xa0] sm:$0xff]   ;;  %v1460_v54 = vld [vmem:[%s1928_s3 + $0x18] sm:$0xff]   ;;  %v1463_v57 = vld [vmem:[%s1928_s3 + $0xd0] sm:$0xff]  }
  0x27   : > { %588 = vmatpush1.bf16.msra.mxu0 %v1422_v19  ;;  %631 = vmatpush1.bf16.msra.mxu1 %v1423_v20  ;;  %v1461_v55 = vld [vmem:[%s1928_s3 + $0x98] sm:$0xff]   ;;  %v1464_v58 = vld [vmem:[%s1928_s3 + $0x10] sm:$0xff]   ;;  %v1466_v60 = vld [vmem:[%s1928_s3 + $0x48] sm:$0xff]   ;;  %p1480_p13 = pnand %p1479_p12, %p1640_p4  ;;  %p1487_p3 = por %p1486_p2, %p1485_p1 }
  0x28   : > { %589 = vmatprep.subr.bf16.mxu0 %v1424_v21  ;;  %632 = vmatprep.subr.bf16.mxu1 %v1426_v22  ;;  %v1465_v59 = vld [vmem:[%s1928_s3 + $0x90] sm:$0xff]   ;;  %v1467_v61 = vld [vmem:[%s1928_s3 + $0xc8] sm:$0xff]   ;;  %v1470_v0 = vld [vmem:[%s1928_s3 + $0x40] sm:$0xff]  }
  0x29   : > { %v1468_v62 = vld [vmem:[%s1928_s3 + $0x8] sm:$0xff]   ;;  %v1471_v1 = vld [vmem:[%s1928_s3 + $0xc0] sm:$0xff]   ;;  %p1481_p0 = pneg %p1480_p13 }
  0x2a   : > { %v1469_v63 = vld [vmem:[%s1928_s3 + $0x88] sm:$0xff]   ;;  %v1472_v2 = vld [vmem:[%s1928_s3] sm:$0xff]  }
  0x2b   : > { %590 = vmatpush1.bf16.msra.mxu0 %v1428_v23  ;;  %633 = vmatpush1.bf16.msra.mxu1 %v1429_v24  ;;  %v1473_v3 = vld [vmem:[%s1928_s3 + $0x80] sm:$0xff]   ;;  %p1488_p5 = pnand %p1487_p3, %p1481_p0 }
  0x2c   : > { %591 = vmatprep.subr.bf16.mxu0 %v1430_v25  ;;  %634 = vmatprep.subr.bf16.mxu1 %v1432_v26  ;;  %v397_v10 = vld [vmem:[%s1927_s2] sm:$0xf] }
  0x2d   : > { %v406_v13 = vrot.slane %v397_v10, %v405_v6  ;;  %v414_v14 = vrot.slane %v397_v10, %v413_v7  ;;  %v402_v15 = vrot.slane %v397_v10, %v401_v8  ;;  %v410_v16 = vrot.slane %v397_v10, %v409_v9 }
  0x2f   : > { %592 = vmatpush1.bf16.msra.mxu0 %v1434_v27  ;;  %635 = vmatpush1.bf16.msra.mxu1 %v1435_v28 }
  0x30   : > { %593 = vmatprep.subr.bf16.mxu0 %v1436_v29  ;;  %636 = vmatprep.subr.bf16.mxu1 %v1438_v30 }
  0x33   : > { %594 = vmatpush1.bf16.msra.mxu0 %v1440_v31  ;;  %637 = vmatpush1.bf16.msra.mxu1 %v1441_v32 }
  0x34   : > { %1292 = vmatprep.subr.bf16.mxu0 %v1442_v35  ;;  %1314 = vmatprep.subr.bf16.mxu1 %v1443_v36 }
  0x36   : > { %612 = vmatmul.mubr.bf16.vlgmr.msra.gmra.mxu0 %v364_v38  ;;  %655 = vmatmul.mubr.bf16.vlgmr.msra.gmra.mxu1 %v364_v38 }
  0x37   : > { %1293 = vmatpush3.bf16.msra.mxu0 %v1444_v37  ;;  %1315 = vmatpush3.bf16.msra.mxu1 %v1445_v39 }
  0x38   : > { %1294 = vmatprep.subr.bf16.mxu0 %v1446_v40  ;;  %1316 = vmatprep.subr.bf16.mxu1 %v1447_v41 }
  0x3b   : > { %1295 = vmatpush3.bf16.msra.mxu0 %v1448_v42  ;;  %1317 = vmatpush3.bf16.msra.mxu1 %v1449_v43 }
  0x3c   : > { %1296 = vmatprep.subr.bf16.mxu0 %v1450_v44  ;;  %1318 = vmatprep.subr.bf16.mxu1 %v1451_v45 }
  0x3f   : > { %1297 = vmatpush3.bf16.msra.mxu0 %v1452_v46  ;;  %1319 = vmatpush3.bf16.msra.mxu1 %v1453_v47 }
  0x40   : > { %1298 = vmatprep.subr.bf16.mxu0 %v1454_v48  ;;  %1320 = vmatprep.subr.bf16.mxu1 %v1455_v49 }
  0x43   : > { %1299 = vmatpush3.bf16.msra.mxu0 %v1456_v50  ;;  %1321 = vmatpush3.bf16.msra.mxu1 %v1457_v51 }
  0x44   : > { %1300 = vmatprep.subr.bf16.mxu0 %v1458_v52  ;;  %1322 = vmatprep.subr.bf16.mxu1 %v1459_v53  ;;  %v1283_v53 = vld [vmem:[%s1929_s4] ss:$0 sm:$0xff] }
  0x47   : > { %1301 = vmatpush3.bf16.msra.mxu0 %v1460_v54  ;;  %1323 = vmatpush3.bf16.msra.mxu1 %v1461_v55 }
  0x48   : > { %1302 = vmatprep.subr.bf16.mxu0 %v1462_v56  ;;  %1324 = vmatprep.subr.bf16.mxu1 %v1463_v57 }
  0x4b   : > { %1303 = vmatpush3.bf16.msra.mxu0 %v1464_v58  ;;  %1325 = vmatpush3.bf16.msra.mxu1 %v1465_v59 }
  0x4c   : > { %1304 = vmatprep.subr.bf16.mxu0 %v1466_v60  ;;  %1326 = vmatprep.subr.bf16.mxu1 %v1467_v61 }
  0x4f   : > { %1305 = vmatpush3.bf16.msra.mxu0 %v1468_v62  ;;  %1327 = vmatpush3.bf16.msra.mxu1 %v1469_v63 }
  0x50   : > { %1306 = vmatprep.subr.bf16.mxu0 %v1470_v0  ;;  %1328 = vmatprep.subr.bf16.mxu1 %v1471_v1 }
  0x53   : > { %1307 = vmatpush3.bf16.msra.mxu0 %v1472_v2  ;;  %1329 = vmatpush3.bf16.msra.mxu1 %v1473_v3 }
  0xf6   : > { %v613_v11 = vpop.f32.mrf.mxu0  ;;  %v656_v12 = vpop.f32.mrf.mxu1 }
  0xf7   : > { %v614_v25 = vadd.f32 %v613_v11, %v402_v15  ;;  %v657_v26 = vadd.f32 %v656_v12, %v410_v16 }
  0xf8   : > { %v615_v17 = vpop.f32.mrf.mxu0  ;;  %v658_v18 = vpop.f32.mrf.mxu1 }
  0xf9   : > { %v616_v21 = vadd.f32 %v615_v17, %v406_v13  ;;  %v659_v22 = vadd.f32 %v658_v18, %v414_v14  ;;  %v665_v39 = vmax.f32 %v614_v25, 0.0  ;;  %v667_v40 = vmax.f32 %v657_v26, 0.0 }
  0xfa   : > { %v617_v19 = vpop.f32.mrf.mxu0  ;;  %v660_v20 = vpop.f32.mrf.mxu1 }
  0xfb   : > { %v618_v23 = vadd.f32 %v617_v19, %v402_v15  ;;  %v661_v24 = vadd.f32 %v660_v20, %v410_v16  ;;  %v666_v35 = vmax.f32 %v616_v21, 0.0  ;;  %v668_v36 = vmax.f32 %v659_v22, 0.0  ;;  %v1285_v15 = vld [vmem:[%s1931_s6] ss:$0 sm:$0xff] }
  0xfc   : > { %v619_v27 = vpop.f32.mrf.mxu0  ;;  %v662_v28 = vpop.f32.mrf.mxu1 }
  0xfd   : > { %v620_v29 = vadd.f32 %v619_v27, %v406_v13  ;;  %v663_v30 = vadd.f32 %v662_v28, %v414_v14  ;;  %v669_v31 = vmax.f32 %v618_v23, 0.0  ;;  %v671_v32 = vmax.f32 %v661_v24, 0.0  ;;  %v1284_v13 = vld [vmem:[%s1930_s5] ss:$0 sm:$0xff] }
  0xff   : > { %v670_v37 = vmax.f32 %v620_v29, 0.0  ;;  %v672_v38 = vmax.f32 %v663_v30, 0.0  ;;  %v673_v43 = vpack.c.bf16 %v669_v31, %v665_v39  ;;  %v675_v44 = vpack.c.bf16 %v671_v32, %v667_v40 }
 0x101   : > { %v674_v41 = vpack.c.bf16 %v670_v37, %v666_v35  ;;  %v676_v42 = vpack.c.bf16 %v672_v38, %v668_v36 }
 0x103   : > { %967 = vmatprep.mubr.bf16.mxu0 %v674_v41  ;;  %1008 = vmatprep.mubr.bf16.mxu1 %v676_v42 }
 0x104   : > { %968 = vmatmul.mubr.bf16.vlgmr.msra.gmra.mxu0 %v673_v43  ;;  %1009 = vmatmul.mubr.bf16.vlgmr.msra.gmra.mxu1 %v675_v44 }
 0x1c4   : > { %v1308_v45 = vpop.f32.mrf.mxu0  ;;  %v1330_v46 = vpop.f32.mrf.mxu1 }
 0x1c6   : > { %v1309_v47 = vpop.f32.mrf.mxu0  ;;  %v1331_v48 = vpop.f32.mrf.mxu1 }
 0x1c7   : > { %v1310_v49 = vadd.f32 %v1309_v47, %v1308_v45  ;;  %v1332_v50 = vadd.f32 %v1331_v48, %v1330_v46 }
 0x1c8   : > { %v1311_v51 = vpop.f32.mrf.mxu0  ;;  %v1333_v52 = vpop.f32.mrf.mxu1 }
 0x1c9   : > { %v1011_v54 = vadd.f32 %v1332_v50, %v1310_v49 }
 0x1ca   : > { %v1312_v55 = vpop.f32.mrf.mxu0  ;;  %v1334_v56 = vpop.f32.mrf.mxu1 }
 0x1cb   : > { %v1313_v57 = vadd.f32 %v1312_v55, %v1311_v51  ;;  %v1335_v58 = vadd.f32 %v1334_v56, %v1333_v52  ;;  %v1033_v59 = vadd.f32 %v1283_v53, %v1011_v54 }
 0x1cd   : > { %v1014_v60 = vadd.f32 %v1335_v58, %v1313_v57  ;;  %v1037_v61 = vadd.f32 %v1033_v59, %v1755_v33 }
 0x1cf   : > { %1041 = vadd.xlane.f32.xlu0 %v1037_v61  ;;  %v1034_v62 = vadd.f32 %v1283_v53, %v1014_v60 }
 0x1d1   : > { %v1038_v63 = vadd.f32 %v1034_v62, %v1757_v34 }
 0x1d3   : > { %1043 = vadd.xlane.f32.xlu0 %v1038_v63 }
 0x258   : > { %v1042_v0 = vpop.xlane.xlu0 %1041 }
 0x259   : > { %v1046_v1 = vmul.f32 0.0078125, %v1042_v0 }
 0x25b   : > { %v1048_v2 = vsub.f32 %v1037_v61, %v1046_v1 }
 0x25c   : > { %v1044_v3 = vpop.xlane.xlu0 %1043 }
 0x25d   : > { %v1047_v4 = vmul.f32 0.0078125, %v1044_v3  ;;  %v1050_v5 = vmul.f32 %v1048_v2, %v1048_v2 }
 0x25f   : > { %v1049_v6 = vsub.f32 %v1038_v63, %v1047_v4  ;;  %1052 = vadd.xlane.f32.xlu1 %v1050_v5 }
 0x261   : > { %v1051_v7 = vmul.f32 %v1049_v6, %v1049_v6 }
 0x263   : > { %1054 = vadd.xlane.f32.xlu1 %v1051_v7 }
 0x2e8   : > { %v1053_v8 = vpop.xlane.xlu1 %1052 }
 0x2e9   : > { %v1056_v9 = vmul.f32 0.0078125, %v1053_v8 }
 0x2eb   : > { %v1058_v10 = vadd.f32 1e-05, %v1056_v9 }
 0x2ec   : > { %v1055_v33 = vpop.xlane.xlu1 %1054 }
 0x2ed   : > { %1474 = vrsqrt.f32 %v1058_v10  ;;  %v1057_v11 = vmul.f32 0.0078125, %v1055_v33 }
 0x2ef   : > { %v1059_v34 = vadd.f32 1e-05, %v1057_v11 }
 0x2f1   : > { %1476 = vrsqrt.f32 %v1059_v34 }
 0x2fa   : > { %v1475_v12 = vpop.eup %1474 }
 0x2fb   : > { %v1062_v14 = vmul.f32 %v1475_v12, %v1048_v2 }
 0x2fd   : > { %v1070_v16 = vmul.f32 %v1284_v13, %v1062_v14 }
 0x2fe   : > { %v1477_v17 = vpop.eup %1476 }
 0x2ff   : > { %v1063_v18 = vmul.f32 %v1477_v17, %v1049_v6  ;;  %v1078_v19 = vadd.f32 %v1285_v15, %v1070_v16 }
 0x301   : > { %v1071_v20 = vmul.f32 %v1284_v13, %v1063_v18  ;;  %1080 = vst [vmem:[%s330_s19] sm:$0xff] %v1078_v19 }
 0x303   : > { %v1079_v21 = vadd.f32 %v1285_v15, %v1071_v20 }
 0x305   : > { %1081 = vst [vmem:[%s330_s19 + $0x8] sm:$0xff] %v1079_v21 }
 0x306   : > { %1491 = shalt.err (!%p1488_p5)
}
 0x307   : > { %s1492_s17 = scalar_lea.hbm %s1876_s22, 256  ;;  %s1496_s18 = scalar_lea.hbm %s1932_s7, 512 }
 0x308   : > { %p1493_p6 = scmp.ne.s32.totalorder %s1876_s22, %s1492_s17  ;;  %p1497_p10 = scmp.lt.s32.totalorder %s1876_s22, %s1932_s7 }
 0x309   : > { %p1498_p11 = scmp.lt.s32.totalorder %s1496_s18, %s1492_s17 }
 0x30a   : > { %p1494_p7 = pnand %p1493_p6, %p1640_p4 }
 0x30b   : > { %p1499_p12 = por %p1498_p11, %p1497_p10 }
 0x30c   : > { %p1495_p9 = pneg %p1494_p7 }
 0x30e   : > { %p1500_p13 = pnand %p1499_p12, %p1495_p9 }
 0x310   : > { %1503 = shalt.err (!%p1500_p13)
}
 0x311   : > { %s1558_s10 = smov 128   ;;  %s1559_s8 = smov 8  }
 0x312   : > { %1336 = dma.vmem_to_hbm [thread:$0]  (%p1640_p4), %s1878_s20, 256, %s1876_s22, %s1880_s23, %s1558_s10, %s1558_s10, %s1559_s8  }
 0x313 PF: > { %p1342_p0 = scmp.ge.s32.totalorder %s1554_s29, 2  ;;  %s1111_s27 = sand.u32 1, %s1534_s24  }
 0x314   : > { %s1112_s12 = scalar_lea.sflag [#allocation4], %s1111_s27 }
 0x315   : > { %p1339_p1 = pnand %p1342_p0, %p1647_p8 }
 0x317   : > { %p1340_p2 = pneg %p1339_p1 }
 0x319   : > { %1529 = dma.done.wait (%p1340_p2), %s1112_s12, 256  }
 0x31a   : > { %1531 = vsyncadd (%p1340_p2), %s1112_s12, 4294967040  ;;  %s20_s29 = sadd.s32 1, %s1554_s29   ;;  %s1935_s24 = smov %s1538_s25 }
 0x31b   : > { %p17_p3 = scmp.ge.s32.totalorder %s20_s29, 4   ;;  %s1936_s25 = smov %s1542_s26 }
 0x31c   : > { %s1937_s26 = smov %s1653_s14  ;;  %s1938_s27 = smov %s1550_s28 }
 0x31d   : > { %s1939_s28 = smov %s1941_s9  ;;  %19 = sbr.rel (!%p17_p3) target bundleno = 4 (0x4), region = 100 }
 0x322   :  { %1117 = vsyncpa [#allocation4], 1 }
 0x323   :  { %1119 = vsyncpa [#allocation4 + $0x1], 1 }

// kernel: decoder_forward.20
= control target key start
LH: loop header
LB: loop body
LE: loop exit
PB: predicated region body
PF: predicated region fallthrough
CT: control target
= control target key end

     0   :  { %s1490_s24 = smov 0   ;;  %s1492_s25 = smov 0   ;;  %s1745_s0 = inlined_call_operand.vmem [shape: f32[32,128], index: 0, kind: input, shape index: {}]   ;;  %s1746_s1 = inlined_call_operand.vmem [shape: bf16[128,512], index: 1, kind: input, shape index: {}]   ;;  %s1747_s2 = inlined_call_operand.vmem [shape: f32[1,512], index: 2, kind: input, shape index: {}]   ;;  %s1748_s3 = inlined_call_operand.vmem [shape: bf16[512,128], index: 3, kind: input, shape index: {}]   ;;  %s1749_s4 = inlined_call_operand.vmem [shape: f32[1,128], index: 4, kind: input, shape index: {}]   ;;  %s1750_s5 = inlined_call_operand.vmem [shape: f32[1,128], index: 5, kind: input, shape index: {}]   ;;  %s1751_s6 = inlined_call_operand.vmem [shape: f32[1,128], index: 6, kind: input, shape index: {}]   ;;  %s1752_s7 = inlined_call_operand.vmem [shape: f32[32,128], index: 7, kind: output, shape index: {}]  }
   0x1   :  { %s1494_s26 = smov 0  }
   0x2 LB: > { %s29_s27 = sadd.s32 1, %s1443_s25  ;;  %p1198_p0 = scmp.ge.s32.totalorder %s1447_s26, 1  ;;  %s1447_s26 = sphi %s1494_s26, %s17_s26   ;;  %s1443_s25 = sphi %s1492_s25, %s1754_s25   ;;  %s1439_s24 = sphi %s1490_s24, %s1753_s24  }
   0x3   : > { %p31_p1 = scmp.ge.s32.totalorder %s29_s27, 2  ;;  %p282_p2 = scmp.lt.s32.totalorder %s1447_s26, 3 }
   0x5   : > { %s1756_s27 = smov (%p31_p1, %s29_s27), 0  ;;  %p283_p3 = pnand %p1198_p0, %p282_p2 }
   0x6   : > { %s1199_s14 = sshll.u32 (!%p283_p3), %s1439_s24, 1 }
   0x7   : > { %286 = sbr.rel (%p283_p3) target bundleno = 766 (0x2fe), region = 48  ;;  %p329_p4 = scmp.lt.s32.totalorder (!%p283_p3), %s1199_s14, 3 }
   0xc   : > { %v1341_v0 = vld [vmem:[%s1746_s1 + $0xe4] ss:$16 sps:$4 sm:$0xff]   ;;  %v1343_v1 = vld [vmem:[%s1746_s1 + $0xec] ss:$16 sps:$4 sm:$0xff]   ;;  %v1449_v2 = vmov 0   ;;  %s1758_s14 = smov (!%p329_p4, %s1199_s14), 3 }
   0xd   : > { %613 = vmatprep.mubr.bf16.mxu0 %v1449_v2  ;;  %656 = vmatprep.mubr.bf16.mxu1 %v1449_v2  ;;  %v1345_v3 = vld [vmem:[%s1746_s1 + $0xe0] ss:$16 sps:$4 sm:$0xff]   ;;  %v1346_v4 = vld [vmem:[%s1746_s1 + $0xe8] ss:$16 sps:$4 sm:$0xff]   ;;  %v1347_v5 = vld [vmem:[%s1746_s1 + $0xc4] ss:$16 sps:$4 sm:$0xff]  }
   0xe   : > { %581 = vmatprep.subr.bf16.mxu0 %v1341_v0  ;;  %624 = vmatprep.subr.bf16.mxu1 %v1343_v1  ;;  %v1349_v6 = vld [vmem:[%s1746_s1 + $0xcc] ss:$16 sps:$4 sm:$0xff]   ;;  %v1351_v7 = vld [vmem:[%s1746_s1 + $0xc0] ss:$16 sps:$4 sm:$0xff]   ;;  %v1352_v8 = vld [vmem:[%s1746_s1 + $0xc8] ss:$16 sps:$4 sm:$0xff]  }
   0xf   : > { %582 = vmatpush1.bf16.msra.mxu0 %v1345_v3  ;;  %625 = vmatpush1.bf16.msra.mxu1 %v1346_v4  ;;  %v1353_v9 = vld [vmem:[%s1746_s1 + $0xa4] ss:$16 sps:$4 sm:$0xff]   ;;  %v1355_v10 = vld [vmem:[%s1746_s1 + $0xac] ss:$16 sps:$4 sm:$0xff]   ;;  %v1357_v11 = vld [vmem:[%s1746_s1 + $0xa0] ss:$16 sps:$4 sm:$0xff]   ;;  %v401_v4 = vlaneseq }
  0x10   : > { %583 = vmatprep.subr.bf16.mxu0 %v1347_v5  ;;  %626 = vmatprep.subr.bf16.mxu1 %v1349_v6  ;;  %v1358_v12 = vld [vmem:[%s1746_s1 + $0xa8] ss:$16 sps:$4 sm:$0xff]   ;;  %v1359_v13 = vld [vmem:[%s1746_s1 + $0x84] ss:$16 sps:$4 sm:$0xff]   ;;  %v1361_v14 = vld [vmem:[%s1746_s1 + $0x8c] ss:$16 sps:$4 sm:$0xff]  }
  0x11   : > { %v1363_v15 = vld [vmem:[%s1746_s1 + $0x80] ss:$16 sps:$4 sm:$0xff]   ;;  %v1364_v16 = vld [vmem:[%s1746_s1 + $0x88] ss:$16 sps:$4 sm:$0xff]   ;;  %v1365_v17 = vld [vmem:[%s1746_s1 + $0x64] ss:$16 sps:$4 sm:$0xff]  }
  0x12   : > { %v1367_v18 = vld [vmem:[%s1746_s1 + $0x6c] ss:$16 sps:$4 sm:$0xff]   ;;  %v1369_v19 = vld [vmem:[%s1746_s1 + $0x60] ss:$16 sps:$4 sm:$0xff]   ;;  %v1370_v20 = vld [vmem:[%s1746_s1 + $0x68] ss:$16 sps:$4 sm:$0xff]  }
  0x13   : > { %584 = vmatpush1.bf16.msra.mxu0 %v1351_v7  ;;  %627 = vmatpush1.bf16.msra.mxu1 %v1352_v8  ;;  %v1371_v21 = vld [vmem:[%s1746_s1 + $0x44] ss:$16 sps:$4 sm:$0xff]   ;;  %v1373_v22 = vld [vmem:[%s1746_s1 + $0x4c] ss:$16 sps:$4 sm:$0xff]   ;;  %v1375_v23 = vld [vmem:[%s1746_s1 + $0x40] ss:$16 sps:$4 sm:$0xff]  }
  0x14   : > { %585 = vmatprep.subr.bf16.mxu0 %v1353_v9  ;;  %628 = vmatprep.subr.bf16.mxu1 %v1355_v10  ;;  %v1376_v24 = vld [vmem:[%s1746_s1 + $0x48] ss:$16 sps:$4 sm:$0xff]   ;;  %s1200_s16 = sshll.u32 %s1758_s14, 3  ;;  %v1377_v25 = vld [vmem:[%s1746_s1 + $0x24] ss:$16 sps:$4 sm:$0xff]   ;;  %v402_v5 = vshrl.u32 %v401_v4, 7 }
  0x15   : > { %v1379_v26 = vld [vmem:[%s1746_s1 + $0x2c] ss:$16 sps:$4 sm:$0xff]   ;;  %v1381_v27 = vld [vmem:[%s1746_s1 + $0x20] ss:$16 sps:$4 sm:$0xff]   ;;  %v1382_v28 = vld [vmem:[%s1746_s1 + $0x28] ss:$16 sps:$4 sm:$0xff]   ;;  %s332_s30 = scalar_lea.vmem %s1745_s0, %s1200_s16  ;;  %s355_s20 = scalar_lea.vmem %s1752_s7, %s1200_s16 }
  0x16   : > { %v1383_v29 = vld [vmem:[%s1746_s1 + $0x4] ss:$16 sps:$4 sm:$0xff]   ;;  %v1385_v30 = vld [vmem:[%s1746_s1 + $0xc] ss:$16 sps:$4 sm:$0xff]   ;;  %v1387_v31 = vld [vmem:[%s1746_s1] ss:$16 sps:$4 sm:$0xff]  }
  0x17   : > { %586 = vmatpush1.bf16.msra.mxu0 %v1357_v11  ;;  %629 = vmatpush1.bf16.msra.mxu1 %v1358_v12  ;;  %v1388_v32 = vld [vmem:[%s1746_s1 + $0x8] ss:$16 sps:$4 sm:$0xff]   ;;  %v1615_v33 = vld [vmem:[%s332_s30] sm:$0xff]  ;;  %v1393_v40 = vld [vmem:[%s1748_s3 + $0x70] sm:$0xff]   ;;  %v407_v6 = vsub.s32 1, %v402_v5  ;;  %v415_v7 = vsub.s32 3, %v402_v5 }
  0x18   : > { %587 = vmatprep.subr.bf16.mxu0 %v1359_v13  ;;  %630 = vmatprep.subr.bf16.mxu1 %v1361_v14  ;;  %v1617_v34 = vld [vmem:[%s332_s30 + $0x8] sm:$0xff]  ;;  %v1389_v35 = vld [vmem:[%s1748_s3 + $0x78] sm:$0xff]   ;;  %v1394_v41 = vld [vmem:[%s1748_s3 + $0xf0] sm:$0xff]   ;;  %v403_v8 = vsub.s32 0, %v402_v5  ;;  %v411_v9 = vsub.s32 2, %v402_v5 }
  0x19   : > { %v1390_v36 = vld [vmem:[%s1748_s3 + $0xf8] sm:$0xff]   ;;  %v366_v38 = vpack.c.bf16 %v1617_v34, %v1615_v33  ;;  %v1395_v42 = vld [vmem:[%s1748_s3 + $0x30] sm:$0xff]   ;;  %v1397_v44 = vld [vmem:[%s1748_s3 + $0x68] sm:$0xff]  }
  0x1a   : > { %v1391_v37 = vld [vmem:[%s1748_s3 + $0x38] sm:$0xff]   ;;  %v1396_v43 = vld [vmem:[%s1748_s3 + $0xb0] sm:$0xff]   ;;  %v1398_v45 = vld [vmem:[%s1748_s3 + $0xe8] sm:$0xff]  }
  0x1b   : > { %588 = vmatpush1.bf16.msra.mxu0 %v1363_v15  ;;  %631 = vmatpush1.bf16.msra.mxu1 %v1364_v16  ;;  %v1392_v39 = vld [vmem:[%s1748_s3 + $0xb8] sm:$0xff]   ;;  %v1399_v46 = vld [vmem:[%s1748_s3 + $0x28] sm:$0xff]   ;;  %v1401_v48 = vld [vmem:[%s1748_s3 + $0x60] sm:$0xff]  }
  0x1c   : > { %589 = vmatprep.subr.bf16.mxu0 %v1365_v17  ;;  %632 = vmatprep.subr.bf16.mxu1 %v1367_v18  ;;  %v1400_v47 = vld [vmem:[%s1748_s3 + $0xa8] sm:$0xff]   ;;  %v1402_v49 = vld [vmem:[%s1748_s3 + $0xe0] sm:$0xff]   ;;  %v1405_v52 = vld [vmem:[%s1748_s3 + $0x58] sm:$0xff]  }
  0x1d   : > { %v1403_v50 = vld [vmem:[%s1748_s3 + $0x20] sm:$0xff]   ;;  %v1406_v53 = vld [vmem:[%s1748_s3 + $0xd8] sm:$0xff]   ;;  %v1409_v56 = vld [vmem:[%s1748_s3 + $0x50] sm:$0xff]  }
  0x1e   : > { %v1404_v51 = vld [vmem:[%s1748_s3 + $0xa0] sm:$0xff]   ;;  %v1407_v54 = vld [vmem:[%s1748_s3 + $0x18] sm:$0xff]   ;;  %v1410_v57 = vld [vmem:[%s1748_s3 + $0xd0] sm:$0xff]  }
  0x1f   : > { %590 = vmatpush1.bf16.msra.mxu0 %v1369_v19  ;;  %633 = vmatpush1.bf16.msra.mxu1 %v1370_v20  ;;  %v1408_v55 = vld [vmem:[%s1748_s3 + $0x98] sm:$0xff]   ;;  %v1411_v58 = vld [vmem:[%s1748_s3 + $0x10] sm:$0xff]   ;;  %v1413_v60 = vld [vmem:[%s1748_s3 + $0x48] sm:$0xff]  }
  0x20   : > { %591 = vmatprep.subr.bf16.mxu0 %v1371_v21  ;;  %634 = vmatprep.subr.bf16.mxu1 %v1373_v22  ;;  %v1412_v59 = vld [vmem:[%s1748_s3 + $0x90] sm:$0xff]   ;;  %v1414_v61 = vld [vmem:[%s1748_s3 + $0xc8] sm:$0xff]   ;;  %v1417_v0 = vld [vmem:[%s1748_s3 + $0x40] sm:$0xff]  }
  0x21   : > { %v1415_v62 = vld [vmem:[%s1748_s3 + $0x8] sm:$0xff]   ;;  %v1418_v1 = vld [vmem:[%s1748_s3 + $0xc0] sm:$0xff]  }
  0x22   : > { %v1416_v63 = vld [vmem:[%s1748_s3 + $0x88] sm:$0xff]   ;;  %v1419_v2 = vld [vmem:[%s1748_s3] sm:$0xff]  }
  0x23   : > { %592 = vmatpush1.bf16.msra.mxu0 %v1375_v23  ;;  %635 = vmatpush1.bf16.msra.mxu1 %v1376_v24  ;;  %v1420_v3 = vld [vmem:[%s1748_s3 + $0x80] sm:$0xff]  }
  0x24   : > { %593 = vmatprep.subr.bf16.mxu0 %v1377_v25  ;;  %636 = vmatprep.subr.bf16.mxu1 %v1379_v26  ;;  %v399_v10 = vld [vmem:[%s1747_s2] sm:$0xf] }
  0x25   : > { %v408_v13 = vrot.slane %v399_v10, %v407_v6  ;;  %v416_v14 = vrot.slane %v399_v10, %v415_v7  ;;  %v404_v15 = vrot.slane %v399_v10, %v403_v8  ;;  %v412_v16 = vrot.slane %v399_v10, %v411_v9 }
  0x27   : > { %594 = vmatpush1.bf16.msra.mxu0 %v1381_v27  ;;  %637 = vmatpush1.bf16.msra.mxu1 %v1382_v28 }
  0x28   : > { %595 = vmatprep.subr.bf16.mxu0 %v1383_v29  ;;  %638 = vmatprep.subr.bf16.mxu1 %v1385_v30 }
  0x2b   : > { %596 = vmatpush1.bf16.msra.mxu0 %v1387_v31  ;;  %639 = vmatpush1.bf16.msra.mxu1 %v1388_v32 }
  0x2c   : > { %1272 = vmatprep.subr.bf16.mxu0 %v1389_v35  ;;  %1294 = vmatprep.subr.bf16.mxu1 %v1390_v36 }
  0x2e   : > { %614 = vmatmul.mubr.bf16.vlgmr.msra.gmra.mxu0 %v366_v38  ;;  %657 = vmatmul.mubr.bf16.vlgmr.msra.gmra.mxu1 %v366_v38 }
  0x2f   : > { %1273 = vmatpush3.bf16.msra.mxu0 %v1391_v37  ;;  %1295 = vmatpush3.bf16.msra.mxu1 %v1392_v39 }
  0x30   : > { %1274 = vmatprep.subr.bf16.mxu0 %v1393_v40  ;;  %1296 = vmatprep.subr.bf16.mxu1 %v1394_v41 }
  0x33   : > { %1275 = vmatpush3.bf16.msra.mxu0 %v1395_v42  ;;  %1297 = vmatpush3.bf16.msra.mxu1 %v1396_v43 }
  0x34   : > { %1276 = vmatprep.subr.bf16.mxu0 %v1397_v44  ;;  %1298 = vmatprep.subr.bf16.mxu1 %v1398_v45 }
  0x37   : > { %1277 = vmatpush3.bf16.msra.mxu0 %v1399_v46  ;;  %1299 = vmatpush3.bf16.msra.mxu1 %v1400_v47 }
  0x38   : > { %1278 = vmatprep.subr.bf16.mxu0 %v1401_v48  ;;  %1300 = vmatprep.subr.bf16.mxu1 %v1402_v49 }
  0x3b   : > { %1279 = vmatpush3.bf16.msra.mxu0 %v1403_v50  ;;  %1301 = vmatpush3.bf16.msra.mxu1 %v1404_v51 }
  0x3c   : > { %1280 = vmatprep.subr.bf16.mxu0 %v1405_v52  ;;  %1302 = vmatprep.subr.bf16.mxu1 %v1406_v53  ;;  %v1267_v53 = vld [vmem:[%s1749_s4] ss:$0 sm:$0xff] }
  0x3f   : > { %1281 = vmatpush3.bf16.msra.mxu0 %v1407_v54  ;;  %1303 = vmatpush3.bf16.msra.mxu1 %v1408_v55 }
  0x40   : > { %1282 = vmatprep.subr.bf16.mxu0 %v1409_v56  ;;  %1304 = vmatprep.subr.bf16.mxu1 %v1410_v57 }
  0x43   : > { %1283 = vmatpush3.bf16.msra.mxu0 %v1411_v58  ;;  %1305 = vmatpush3.bf16.msra.mxu1 %v1412_v59 }
  0x44   : > { %1284 = vmatprep.subr.bf16.mxu0 %v1413_v60  ;;  %1306 = vmatprep.subr.bf16.mxu1 %v1414_v61 }
  0x47   : > { %1285 = vmatpush3.bf16.msra.mxu0 %v1415_v62  ;;  %1307 = vmatpush3.bf16.msra.mxu1 %v1416_v63 }
  0x48   : > { %1286 = vmatprep.subr.bf16.mxu0 %v1417_v0  ;;  %1308 = vmatprep.subr.bf16.mxu1 %v1418_v1 }
  0x4b   : > { %1287 = vmatpush3.bf16.msra.mxu0 %v1419_v2  ;;  %1309 = vmatpush3.bf16.msra.mxu1 %v1420_v3 }
  0xee   : > { %v615_v11 = vpop.f32.mrf.mxu0  ;;  %v658_v12 = vpop.f32.mrf.mxu1 }
  0xef   : > { %v616_v25 = vadd.f32 %v615_v11, %v404_v15  ;;  %v659_v26 = vadd.f32 %v658_v12, %v412_v16 }
  0xf0   : > { %v617_v17 = vpop.f32.mrf.mxu0  ;;  %v660_v18 = vpop.f32.mrf.mxu1 }
  0xf1   : > { %v618_v21 = vadd.f32 %v617_v17, %v408_v13  ;;  %v661_v22 = vadd.f32 %v660_v18, %v416_v14  ;;  %v667_v39 = vmax.f32 %v616_v25, 0.0  ;;  %v669_v40 = vmax.f32 %v659_v26, 0.0 }
  0xf2   : > { %v619_v19 = vpop.f32.mrf.mxu0  ;;  %v662_v20 = vpop.f32.mrf.mxu1 }
  0xf3   : > { %v620_v23 = vadd.f32 %v619_v19, %v404_v15  ;;  %v663_v24 = vadd.f32 %v662_v20, %v412_v16  ;;  %v668_v35 = vmax.f32 %v618_v21, 0.0  ;;  %v670_v36 = vmax.f32 %v661_v22, 0.0  ;;  %v1269_v15 = vld [vmem:[%s1751_s6] ss:$0 sm:$0xff] }
  0xf4   : > { %v621_v27 = vpop.f32.mrf.mxu0  ;;  %v664_v28 = vpop.f32.mrf.mxu1 }
  0xf5   : > { %v622_v29 = vadd.f32 %v621_v27, %v408_v13  ;;  %v665_v30 = vadd.f32 %v664_v28, %v416_v14  ;;  %v671_v31 = vmax.f32 %v620_v23, 0.0  ;;  %v673_v32 = vmax.f32 %v663_v24, 0.0  ;;  %v1268_v13 = vld [vmem:[%s1750_s5] ss:$0 sm:$0xff] }
  0xf7   : > { %v672_v37 = vmax.f32 %v622_v29, 0.0  ;;  %v674_v38 = vmax.f32 %v665_v30, 0.0  ;;  %v675_v43 = vpack.c.bf16 %v671_v31, %v667_v39  ;;  %v677_v44 = vpack.c.bf16 %v673_v32, %v669_v40 }
  0xf9   : > { %v676_v41 = vpack.c.bf16 %v672_v37, %v668_v35  ;;  %v678_v42 = vpack.c.bf16 %v674_v38, %v670_v36 }
  0xfb   : > { %969 = vmatprep.mubr.bf16.mxu0 %v676_v41  ;;  %1010 = vmatprep.mubr.bf16.mxu1 %v678_v42 }
  0xfc   : > { %970 = vmatmul.mubr.bf16.vlgmr.msra.gmra.mxu0 %v675_v43  ;;  %1011 = vmatmul.mubr.bf16.vlgmr.msra.gmra.mxu1 %v677_v44 }
 0x1bc   : > { %v1288_v45 = vpop.f32.mrf.mxu0  ;;  %v1310_v46 = vpop.f32.mrf.mxu1 }
 0x1be   : > { %v1289_v47 = vpop.f32.mrf.mxu0  ;;  %v1311_v48 = vpop.f32.mrf.mxu1 }
 0x1bf   : > { %v1290_v49 = vadd.f32 %v1289_v47, %v1288_v45  ;;  %v1312_v50 = vadd.f32 %v1311_v48, %v1310_v46 }
 0x1c0   : > { %v1291_v51 = vpop.f32.mrf.mxu0  ;;  %v1313_v52 = vpop.f32.mrf.mxu1 }
 0x1c1   : > { %v1013_v54 = vadd.f32 %v1312_v50, %v1290_v49 }
 0x1c2   : > { %v1292_v55 = vpop.f32.mrf.mxu0  ;;  %v1314_v56 = vpop.f32.mrf.mxu1 }
 0x1c3   : > { %v1293_v57 = vadd.f32 %v1292_v55, %v1291_v51  ;;  %v1315_v58 = vadd.f32 %v1314_v56, %v1313_v52  ;;  %v1035_v59 = vadd.f32 %v1267_v53, %v1013_v54 }
 0x1c5   : > { %v1016_v60 = vadd.f32 %v1315_v58, %v1293_v57  ;;  %v1039_v61 = vadd.f32 %v1035_v59, %v1615_v33 }
 0x1c7   : > { %1043 = vadd.xlane.f32.xlu0 %v1039_v61  ;;  %v1036_v62 = vadd.f32 %v1267_v53, %v1016_v60 }
 0x1c9   : > { %v1040_v63 = vadd.f32 %v1036_v62, %v1617_v34 }
 0x1cb   : > { %1045 = vadd.xlane.f32.xlu0 %v1040_v63 }
 0x250   : > { %v1044_v0 = vpop.xlane.xlu0 %1043 }
 0x251   : > { %v1048_v1 = vmul.f32 0.0078125, %v1044_v0 }
 0x253   : > { %v1050_v2 = vsub.f32 %v1039_v61, %v1048_v1 }
 0x254   : > { %v1046_v3 = vpop.xlane.xlu0 %1045 }
 0x255   : > { %v1049_v4 = vmul.f32 0.0078125, %v1046_v3  ;;  %v1052_v5 = vmul.f32 %v1050_v2, %v1050_v2 }
 0x257   : > { %v1051_v6 = vsub.f32 %v1040_v63, %v1049_v4  ;;  %1054 = vadd.xlane.f32.xlu1 %v1052_v5 }
 0x259   : > { %v1053_v7 = vmul.f32 %v1051_v6, %v1051_v6 }
 0x25b   : > { %1056 = vadd.xlane.f32.xlu1 %v1053_v7 }
 0x2e0   : > { %v1055_v8 = vpop.xlane.xlu1 %1054 }
 0x2e1   : > { %v1058_v9 = vmul.f32 0.0078125, %v1055_v8 }
 0x2e3   : > { %v1060_v10 = vadd.f32 1e-05, %v1058_v9 }
 0x2e4   : > { %v1057_v33 = vpop.xlane.xlu1 %1056 }
 0x2e5   : > { %1421 = vrsqrt.f32 %v1060_v10  ;;  %v1059_v11 = vmul.f32 0.0078125, %v1057_v33 }
 0x2e7   : > { %v1061_v12 = vadd.f32 1e-05, %v1059_v11 }
 0x2e9   : > { %1423 = vrsqrt.f32 %v1061_v12 }
 0x2f2   : > { %v1422_v34 = vpop.eup %1421 }
 0x2f3   : > { %v1064_v14 = vmul.f32 %v1422_v34, %v1050_v2 }
 0x2f5   : > { %v1072_v16 = vmul.f32 %v1268_v13, %v1064_v14 }
 0x2f6   : > { %v1424_v17 = vpop.eup %1423 }
 0x2f7   : > { %v1080_v18 = vadd.f32 %v1269_v15, %v1072_v16  ;;  %v1065_v19 = vmul.f32 %v1424_v17, %v1051_v6 }
 0x2f9   : > { %1082 = vst [vmem:[%s355_s20] sm:$0xff] %v1080_v18  ;;  %v1073_v20 = vmul.f32 %v1268_v13, %v1065_v19 }
 0x2fb   : > { %v1081_v21 = vadd.f32 %v1269_v15, %v1073_v20 }
 0x2fd   : > { %1083 = vst [vmem:[%s355_s20 + $0x8] sm:$0xff] %v1081_v21 }
 0x2fe PF: > { %s17_s26 = sadd.s32 1, %s1447_s26   ;;  %s1753_s24 = smov %s1443_s25 }
 0x2ff   : > { %p14_p5 = scmp.ge.s32.totalorder %s17_s26, 4   ;;  %s1754_s25 = smov %s1756_s27 }
 0x301   :  { %16 = sbr.rel (!%p14_p5) target bundleno = 2 (0x2), region = 95 }

// kernel: decoder_forward.19
= control target key start
LH: loop header
LB: loop body
LE: loop exit
PB: predicated region body
PF: predicated region fallthrough
CT: control target
= control target key end

     0   :  { %s1759_s13 = smov 0   ;;  %s2019_s0 = inlined_call_operand.vmem [shape: f32[2,16,128], index: 0, kind: input, shape index: {}]   ;;  %s2020_s1 = inlined_call_operand.vmem [shape: f32[2,16,128], index: 1, kind: input, shape index: {}]   ;;  %s2021_s2 = inlined_call_operand.vmem [shape: bf16[128,128], index: 2, kind: input, shape index: {}]   ;;  %s2022_s3 = inlined_call_operand.vmem [shape: f32[1,128], index: 3, kind: input, shape index: {}]   ;;  %s2023_s4 = inlined_call_operand.vmem [shape: bf16[128,256], index: 4, kind: input, shape index: {}]   ;;  %s2024_s5 = inlined_call_operand.vmem [shape: f32[1,256], index: 5, kind: input, shape index: {}]   ;;  %s2025_s6 = inlined_call_operand.vmem [shape: bf16[128,128], index: 6, kind: input, shape index: {}]   ;;  %s2026_s7 = inlined_call_operand.vmem [shape: f32[1,128], index: 7, kind: input, shape index: {}]   ;;  %s2027_s8 = inlined_call_operand.vmem [shape: f32[1,128], index: 8, kind: input, shape index: {}]   ;;  %s2028_s9 = inlined_call_operand.vmem [shape: f32[1,128], index: 9, kind: input, shape index: {}]   ;;  %s2029_s10 = inlined_call_operand.vmem [shape: f32[2,16,128], index: 10, kind: output, shape index: {}]  }
   0x1 LB: > { %s1403_s14 = sadd.s32 4294967295, %s1696_s13   ;;  %p1407_p0 = scmp.ge.s32.totalorder %s1696_s13, 1  ;;  %s1696_s13 = sphi %s1759_s13, %s20_s13  }
   0x2   : > { %p322_p1 = scmp.lt.s32.totalorder %s1696_s13, 3 }
   0x4   : > { %p323_p2 = pnand %p1407_p0, %p322_p1 }
   0x5   : > { %p365_p3 = scmp.lt.s32.totalorder (!%p323_p2), %s1403_s14, 1  ;;  %s1701_s20 = smov (!%p323_p2), 96  }
   0x6   : > { %326 = sbr.rel (%p323_p2) target bundleno = 2144 (0x860), region = 60  ;;  %s1702_s21 = smov (!%p323_p2), 32  }
   0xb   : > { %v1614_v0 = vld [vmem:[%s2023_s4 + $0x74] ss:$8 sps:$4 sm:$0xff]   ;;  %v1698_v1 = vmov 0.0   ;;  %v1616_v2 = vld [vmem:[%s2023_s4 + $0x70] ss:$8 sps:$4 sm:$0xff]   ;;  %v1699_v3 = vmov 0   ;;  %v519_v32 = vlaneseq }
   0xc   : > { %1497 = vmatprep.subr.bf16.mxu0 %v1698_v1  ;;  %641 = vmatprep.mubr.bf16.mxu1 %v1699_v3  ;;  %v1617_v4 = vld [vmem:[%s2021_s2 + $0x38] sm:$0xff]   ;;  %v1618_v5 = vld [vmem:[%s2023_s4 + $0x64] ss:$8 sps:$4 sm:$0xff]   ;;  %v1620_v6 = vld [vmem:[%s2023_s4 + $0x60] ss:$8 sps:$4 sm:$0xff]   ;;  %vm1700_vm0 = vmmov 0  }
   0xd   : > { %609 = vmatprep.subr.bf16.mxu1 %v1614_v0  ;;  %1513 = vmatprep.mubr.msk.bf16.mxu0 %vm1700_vm0, %v1698_v1  ;;  %v1621_v7 = vld [vmem:[%s2021_s2 + $0x30] sm:$0xff]   ;;  %v1625_v10 = vld [vmem:[%s2021_s2 + $0x28] sm:$0xff]   ;;  %v1629_v13 = vld [vmem:[%s2021_s2 + $0x20] sm:$0xff]   ;;  %s2031_s14 = smov (!%p365_p3, %s1403_s14), 1  ;;  %v520_v33 = vshrl.u32 %v519_v32, 7  ;;  %vm664_vm1 = vcmask 261120  }
   0xe   : > { %610 = vmatpush1.bf16.msra.mxu1 %v1616_v2  ;;  %1498 = vmatpush3.bf16.msra.mxu0 %v1617_v4  ;;  %v1622_v8 = vld [vmem:[%s2023_s4 + $0x54] ss:$8 sps:$4 sm:$0xff]   ;;  %v1624_v9 = vld [vmem:[%s2023_s4 + $0x50] ss:$8 sps:$4 sm:$0xff]   ;;  %v1626_v11 = vld [vmem:[%s2023_s4 + $0x44] ss:$8 sps:$4 sm:$0xff]  }
   0xf   : > { %611 = vmatprep.subr.bf16.mxu1 %v1618_v5  ;;  %1499 = vmatprep.subr.bf16.mxu0 %v1698_v1  ;;  %v1628_v12 = vld [vmem:[%s2023_s4 + $0x40] ss:$8 sps:$4 sm:$0xff]   ;;  %v1630_v14 = vld [vmem:[%s2023_s4 + $0x34] ss:$8 sps:$4 sm:$0xff]   ;;  %v1632_v15 = vld [vmem:[%s2023_s4 + $0x30] ss:$8 sps:$4 sm:$0xff]  }
  0x10   : > { %v1633_v16 = vld [vmem:[%s2021_s2 + $0x18] sm:$0xff]   ;;  %v1634_v17 = vld [vmem:[%s2023_s4 + $0x24] ss:$8 sps:$4 sm:$0xff]   ;;  %v1636_v18 = vld [vmem:[%s2023_s4 + $0x20] ss:$8 sps:$4 sm:$0xff]   ;;  %s1832_s15 = sshll.u32 %s2031_s14, 4 }
  0x11   : > { %v1637_v19 = vld [vmem:[%s2021_s2 + $0x10] sm:$0xff]   ;;  %v1641_v22 = vld [vmem:[%s2021_s2 + $0x8] sm:$0xff]   ;;  %s374_s25 = scalar_lea.vmem %s2020_s1, %s1832_s15  ;;  %s369_s28 = scalar_lea.vmem %s2019_s0, %s1832_s15  ;;  %v1645_v27 = vld [vmem:[%s2021_s2] sm:$0xff]   ;;  %v521_v34 = vsub.s32 0, %v520_v33  ;;  %v525_v46 = vsub.s32 1, %v520_v33  ;;  %v656_v60 = vand.u32 127, %v519_v32 }
  0x12   : > { %612 = vmatpush1.bf16.msra.mxu1 %v1620_v6  ;;  %1500 = vmatpush3.bf16.msra.mxu0 %v1621_v7  ;;  %v1638_v20 = vld [vmem:[%s2023_s4 + $0x14] ss:$8 sps:$4 sm:$0xff]   ;;  %v1640_v21 = vld [vmem:[%s2023_s4 + $0x10] ss:$8 sps:$4 sm:$0xff]   ;;  %v1642_v23 = vld [vmem:[%s2023_s4 + $0x4] ss:$8 sps:$4 sm:$0xff]  }
  0x13   : > { %613 = vmatprep.subr.bf16.mxu1 %v1622_v8  ;;  %1501 = vmatprep.subr.bf16.mxu0 %v1698_v1  ;;  %v1644_v24 = vld [vmem:[%s2023_s4] ss:$8 sps:$4 sm:$0xff]   ;;  %vm657_vm2 = vcmp.gt.s32.totalorder %v656_v60, %v520_v33  ;;  %v654_v61 = vadd.s32 8, %v520_v33  ;;  %vm712_vm4 = vcmask 130048   ;;  %s1703_s14 = smov 64   ;;  %vm1172_vm5 = vcmask 523264  }
  0x14   : > { %v383_v25 = vld [vmem:[%s374_s25] sm:$0xff]  ;;  %v384_v26 = vld [vmem:[%s374_s25 + $0x8] sm:$0xff]  ;;  %v1891_v62 = vsel %vm657_vm2, -1e+09, %v1698_v1  ;;  %vm1175_vm6 = vcmask 785408  }
  0x15   : > { %v1862_v28 = vld [vmem:[%s369_s28] sm:$0xff]  ;;  %v1864_v29 = vld [vmem:[%s369_s28 + $0x8] sm:$0xff]  ;;  %v500_v30 = vpack.c.bf16 %v384_v26, %v383_v25  ;;  %vm658_vm3 = vcmp.gt.s32.totalorder %v656_v60, %v654_v61  ;;  %s379_s28 = scalar_lea.vmem %s2029_s10, %s1832_s15 }
  0x16   : > { %614 = vmatpush1.bf16.msra.mxu1 %v1624_v9  ;;  %1502 = vmatpush3.bf16.msra.mxu0 %v1625_v10  ;;  %v385_v31 = vpack.c.bf16 %v1864_v29, %v1862_v28  ;;  %v517_v35 = vld [vmem:[%s2024_s5] sm:$0x3]  ;;  %v1895_v3 = vsel %vm658_vm3, -1e+09, %v1698_v1 }
  0x17   : > { %615 = vmatprep.subr.bf16.mxu1 %v1626_v11  ;;  %1503 = vmatprep.subr.bf16.mxu0 %v1698_v1  ;;  %v522_v37 = vrot.slane %v517_v35, %v521_v34  ;;  %v1414_v41 = vld [vmem:[%s2022_s3] ss:$0 sm:$0xff]  ;;  %v526_v53 = vrot.slane %v517_v35, %v525_v46 }
  0x1a   : > { %616 = vmatpush1.bf16.msra.mxu1 %v1628_v12  ;;  %1504 = vmatpush3.bf16.msra.mxu0 %v1629_v13 }
  0x1b   : > { %617 = vmatprep.subr.bf16.mxu1 %v1630_v14  ;;  %1505 = vmatprep.subr.bf16.mxu0 %v1698_v1 }
  0x1e   : > { %618 = vmatpush1.bf16.msra.mxu1 %v1632_v15  ;;  %1506 = vmatpush3.bf16.msra.mxu0 %v1633_v16 }
  0x1f   : > { %619 = vmatprep.subr.bf16.mxu1 %v1634_v17  ;;  %1507 = vmatprep.subr.bf16.mxu0 %v1698_v1 }
  0x22   : > { %620 = vmatpush1.bf16.msra.mxu1 %v1636_v18  ;;  %1508 = vmatpush3.bf16.msra.mxu0 %v1637_v19 }
  0x23   : > { %621 = vmatprep.subr.bf16.mxu1 %v1638_v20  ;;  %1509 = vmatprep.subr.bf16.mxu0 %v1698_v1 }
  0x26   : > { %622 = vmatpush1.bf16.msra.mxu1 %v1640_v21  ;;  %1510 = vmatpush3.bf16.msra.mxu0 %v1641_v22 }
  0x27   : > { %623 = vmatprep.subr.bf16.mxu1 %v1642_v23  ;;  %1511 = vmatprep.subr.bf16.mxu0 %v1698_v1 }
  0x2a   : > { %624 = vmatpush1.bf16.msra.mxu1 %v1644_v24  ;;  %1512 = vmatpush3.bf16.msra.mxu0 %v1645_v27 }
  0x2b   : > { %1517 = vmatprep.subr.bf16.mxu1 %v1698_v1  ;;  %1541 = vmatprep.subr.bf16.mxu0 %v1698_v1 }
  0x2d   : > { %642 = vmatmul.mubr.bf16.vlgmr.msra.gmra.mxu1 %v500_v30  ;;  %1514 = vmatmul.mubr.bf16.vlgmr.msra.gmra.mxu0 %v385_v31 }
  0x2e   : > { %1519 = vmatprep.mubr.msk.bf16.mxu1 %vm1700_vm0, %v1698_v1  ;;  %1543 = vmatprep.mubr.msk.bf16.mxu0 %vm1700_vm0, %v1698_v1 }
  0xed   : > { %v643_v36 = vpop.f32.mrf.mxu1  ;;  %v491_v38 = vpop.f32.mrf.mxu0 }
  0xee   : > { %v644_v43 = vadd.f32 %v643_v36, %v522_v37  ;;  %v492_v47 = vadd.f32 %v1414_v41, %v491_v38 }
  0xef   : > { %v645_v39 = vpop.f32.mrf.mxu1  ;;  %v1515_v40 = vpop.f32.mrf.mxu0 }
  0xf0   : > { %v498_v54 = vmul.f32 0.17677669, %v492_v47  ;;  %v646_v57 = vadd.f32 %v645_v39, %v526_v53 }
  0xf1   : > { %v647_v42 = vpop.f32.mrf.mxu1  ;;  %v494_v45 = vpop.f32.mrf.mxu0 }
  0xf2   : > { %v648_v44 = vadd.f32 %v647_v42, %v522_v37  ;;  %v495_v49 = vadd.f32 %v1414_v41, %v494_v45 }
  0xf3   : > { %v1516_v50 = vpop.f32.mrf.mxu0  ;;  %v649_v51 = vpop.f32.mrf.mxu1 }
  0xf4   : > { %v662_v48 = vpack.c.bf16 %v648_v44, %v644_v43  ;;  %v499_v55 = vmul.f32 0.17677669, %v495_v49  ;;  %v650_v56 = vadd.f32 %v649_v51, %v526_v53 }
  0xf6   : > { %v669_v52 = vsel %vm664_vm1, %v662_v48, 0  ;;  %v661_v58 = vpack.c.bf16 %v499_v55, %v498_v54  ;;  %v1883_v59 = vpack.c.bf16 %v650_v56, %v646_v57 }
  0xf7   : > { %1518 = vmatpush3.bf16.xpose.msra.mxu1 %v669_v52 }
  0xf8   : > { %1523 = vmatprep.subr.bf16.mxu1 %v1698_v1 }
  0xfe   : > { %1520 = vmatmul.mubr.msk.bf16.vlgmr.msra.gmra.mxu1 %vm664_vm1, %v661_v58 }
  0xff   : > { %1524 = vmatpush3.bf16.msra.mxu1 %v1883_v59  ;;  %1525 = vmatprep.mubr.msk.bf16.mxu1 %vm1700_vm0, %v1698_v1 }
 0x100   : > { %1529 = vmatprep.subr.bf16.mxu1 %v1698_v1 }
 0x1be   : > { %v705_v63 = vpop.f32.mrf.mxu1 }
 0x1bf   : > { %v706_v0 = vadd.f32 %v705_v63, %v1891_v62 }
 0x1c0   : > { %v1521_v2 = vpop.f32.mrf.mxu1 }
 0x1c1   : > { %v713_v4 = vsel %vm712_vm4, %v706_v0, -inf }
 0x1c2   : > { %714 = vmax.xlane.f32.xlu0 %v713_v4  ;;  %v708_v5 = vpop.f32.mrf.mxu1 }
 0x1c3   : > { %v709_v6 = vadd.f32 %v708_v5, %v1895_v3 }
 0x1c4   : > { %v1522_v7 = vpop.f32.mrf.mxu1 }
 0x1c5   : > { %v716_v8 = vsel %vm712_vm4, %v709_v6, -inf }
 0x1c6   : > { %717 = vmax.xlane.f32.xlu0 %v716_v8 }
 0x1dc   : > { %784 = vrot.lane.b32.xlu0 %v662_v48, %s1701_s20 }
 0x1e0   : > { %1027 = vrot.lane.b32.xlu0 %v662_v48, %s1702_s21 }
 0x24b   : > { %v715_v9 = vpop.xlane.xlu0 %714 }
 0x24c   : > { %v719_v10 = vsub.f32 %v706_v0, %v715_v9 }
 0x24e   : > { %v721_v11 = vmul.f32 1.442695, %v719_v10 }
 0x24f   : > { %v718_v12 = vpop.xlane.xlu0 %717 }
 0x250   : > { %1654 = vpow2.f32 %v721_v11  ;;  %v720_v13 = vsub.f32 %v709_v6, %v718_v12 }
 0x252   : > { %v723_v14 = vmul.f32 1.442695, %v720_v13 }
 0x253   : > { %v785_v22 = vpop.permute.xlu0 %784 }
 0x254   : > { %1656 = vpow2.f32 %v723_v14  ;;  %v790_v35 = vsel %vm664_vm1, %v785_v22, 0 }
 0x257   : > { %v1028_v27 = vpop.permute.xlu0 %1027 }
 0x258   : > { %v1033_v33 = vsel %vm664_vm1, %v1028_v27, 0 }
 0x25d   : > { %v1655_v15 = vpop.eup %1654 }
 0x25e   : > { %v725_v16 = vsel %vm712_vm4, %v1655_v15, 0.0 }
 0x25f   : > { %726 = vadd.xlane.f32.xlu1 %v725_v16 }
 0x261   : > { %v1657_v17 = vpop.eup %1656 }
 0x262   : > { %v728_v18 = vsel %vm712_vm4, %v1657_v17, 0.0 }
 0x263   : > { %729 = vadd.xlane.f32.xlu1 %v728_v18 }
 0x274   : > { %781 = vrot.lane.b32.xlu1 %v661_v58, %s1701_s20 }
 0x278   : > { %906 = vrot.lane.b32.xlu1 %v662_v48, %s1703_s14 }
 0x27c   : > { %904 = vrot.lane.b32.xlu1 %v661_v58, %s1703_s14 }
 0x280   : > { %1025 = vrot.lane.b32.xlu1 %v661_v58, %s1702_s21 }
 0x2e8   : > { %v727_v19 = vpop.xlane.xlu1 %726 }
 0x2e9   : > { %1658 = vrcp.f32 %v727_v19 }
 0x2ec   : > { %v730_v20 = vpop.xlane.xlu1 %729 }
 0x2ed   : > { %1660 = vrcp.f32 %v730_v20 }
 0x2f0   : > { %v782_v21 = vpop.permute.xlu1 %781 }
 0x2f4   : > { %v907_v23 = vpop.permute.xlu1 %906 }
 0x2f5   : > { %v912_v24 = vsel %vm664_vm1, %v907_v23, 0 }
 0x2f6   : > { %1542 = vmatpush3.bf16.xpose.msra.mxu0 %v912_v24  ;;  %v1659_v25 = vpop.eup %1658 }
 0x2f7   : > { %1553 = vmatprep.subr.bf16.mxu0 %v1698_v1  ;;  %v733_v30 = vmul.f32 %v1659_v25, %v1655_v15 }
 0x2f8   : > { %v905_v32 = vpop.permute.xlu1 %904 }
 0x2fa   : > { %v1661_v26 = vpop.eup %1660 }
 0x2fb   : > { %v734_v31 = vmul.f32 %v1661_v26, %v1657_v17 }
 0x2fc   : > { %v1026_v36 = vpop.permute.xlu1 %1025 }
 0x2fd   : > { %1544 = vmatmul.mubr.msk.bf16.vlgmr.msra.gmra.mxu0 %vm664_vm1, %v905_v32  ;;  %v735_v34 = vpack.c.bf16 %v734_v31, %v733_v30 }
 0x2fe   : > { %1554 = vmatpush3.bf16.xpose.msra.mxu0 %v1033_v33  ;;  %1555 = vmatprep.mubr.msk.bf16.mxu0 %vm1700_vm0, %v1698_v1 }
 0x2ff   : > { %1526 = vmatmul.mubr.msk.bf16.vlgmr.msra.gmra.mxu1 %vm712_vm4, %v735_v34  ;;  %1565 = vmatprep.subr.bf16.mxu0 %v1698_v1 }
 0x300   : > { %1530 = vmatpush3.bf16.xpose.msra.mxu1 %v790_v35  ;;  %1531 = vmatprep.mubr.msk.bf16.mxu1 %vm1700_vm0, %v1698_v1 }
 0x301   : > { %1535 = vmatprep.subr.bf16.mxu1 %v1698_v1 }
 0x305   : > { %1556 = vmatmul.mubr.msk.bf16.vlgmr.msra.gmra.mxu0 %vm664_vm1, %v1026_v36 }
 0x306   : > { %1581 = vmatprep.mubr.msk.bf16.mxu0 %vm1700_vm0, %v1698_v1 }
 0x307   : > { %1532 = vmatmul.mubr.msk.bf16.vlgmr.msra.gmra.mxu1 %vm664_vm1, %v782_v21 }
 0x308   : > { %1537 = vmatprep.mubr.msk.bf16.mxu1 %vm1700_vm0, %v1698_v1 }
 0x3bd   : > { %v948_v37 = vpop.f32.mrf.mxu0 }
 0x3be   : > { %v949_v51 = vadd.f32 %v948_v37, %v1891_v62 }
 0x3bf   : > { %v1926_v38 = vpop.f32.mrf.mxu1  ;;  %v1545_v39 = vpop.f32.mrf.mxu0 }
 0x3c0   : > { %v955_v61 = vsel %vm712_vm4, %v949_v51, -inf }
 0x3c1   : > { %v1527_v40 = vpop.f32.mrf.mxu1  ;;  %v951_v41 = vpop.f32.mrf.mxu0 }
 0x3c2   : > { %v952_v57 = vadd.f32 %v951_v41, %v1895_v3 }
 0x3c3   : > { %v1928_v42 = vpop.f32.mrf.mxu1  ;;  %v1546_v43 = vpop.f32.mrf.mxu0 }
 0x3c4   : > { %v958_v0 = vsel %vm712_vm4, %v952_v57, -inf }
 0x3c5   : > { %v1528_v44 = vpop.f32.mrf.mxu1  ;;  %v1069_v45 = vpop.f32.mrf.mxu0 }
 0x3c6   : > { %v1070_v63 = vadd.f32 %v1069_v45, %v1891_v62 }
 0x3c7   : > { %v826_v46 = vpop.f32.mrf.mxu1  ;;  %v1557_v47 = vpop.f32.mrf.mxu0 }
 0x3c8   : > { %v827_v48 = vadd.f32 %v826_v46, %v1891_v62  ;;  %v1076_v4 = vsel %vm712_vm4, %v1070_v63, -inf }
 0x3c9   : > { %v1533_v49 = vpop.f32.mrf.mxu1  ;;  %v1072_v50 = vpop.f32.mrf.mxu0 }
 0x3ca   : > { %v833_v52 = vsel %vm712_vm4, %v827_v48, -inf  ;;  %v1073_v58 = vadd.f32 %v1072_v50, %v1895_v3 }
 0x3cb   : > { %834 = vmax.xlane.f32.xlu0 %v833_v52  ;;  %v829_v53 = vpop.f32.mrf.mxu1  ;;  %v1558_v54 = vpop.f32.mrf.mxu0 }
 0x3cc   : > { %v830_v55 = vadd.f32 %v829_v53, %v1895_v3  ;;  %v1079_v2 = vsel %vm712_vm4, %v1073_v58, -inf }
 0x3cd   : > { %v1534_v56 = vpop.f32.mrf.mxu1 }
 0x3ce   : > { %v836_v60 = vsel %vm712_vm4, %v830_v55, -inf }
 0x3cf   : > { %837 = vmax.xlane.f32.xlu1 %v836_v60  ;;  %956 = vmax.xlane.f32.xlu0 %v955_v61  ;;  %v1646_v61 = vld [vmem:[%s2025_s6 + $0x38] sm:$0xff]  }
 0x3d0   : > { %1566 = vmatpush3.bf16.msra.mxu0 %v1646_v61 }
 0x3d1   : > { %1567 = vmatprep.subr.bf16.mxu0 %v1698_v1 }
 0x3d3   : > { %959 = vmax.xlane.f32.xlu0 %v958_v0  ;;  %1080 = vmax.xlane.f32.xlu1 %v1079_v2  ;;  %v1648_v0 = vld [vmem:[%s2025_s6 + $0x28] sm:$0xff]   ;;  %v1649_v2 = vld [vmem:[%s2025_s6 + $0x20] sm:$0xff]  }
 0x3d7   : > { %1077 = vmax.xlane.f32.xlu0 %v1076_v4  ;;  %v1650_v4 = vld [vmem:[%s2025_s6 + $0x18] sm:$0xff]  }
 0x454   : > { %v835_v5 = vpop.xlane.xlu0 %834 }
 0x455   : > { %v839_v13 = vsub.f32 %v827_v48, %v835_v5 }
 0x457   : > { %v841_v18 = vmul.f32 1.442695, %v839_v13  ;;  %v1653_v13 = vld [vmem:[%s2025_s6] sm:$0xff]  }
 0x458   : > { %v838_v6 = vpop.xlane.xlu1 %837  ;;  %v957_v3 = vpop.xlane.xlu0 %956 }
 0x459   : > { %v961_v7 = vsub.f32 %v949_v51, %v957_v3  ;;  %v840_v62 = vsub.f32 %v830_v55, %v838_v6  ;;  %v1651_v3 = vld [vmem:[%s2025_s6 + $0x10] sm:$0xff]  }
 0x45b   : > { %v963_v8 = vmul.f32 1.442695, %v961_v7  ;;  %v843_v19 = vmul.f32 1.442695, %v840_v62 }
 0x45c   : > { %v960_v9 = vpop.xlane.xlu0 %959  ;;  %v1081_v10 = vpop.xlane.xlu1 %1080 }
 0x45d   : > { %v962_v11 = vsub.f32 %v952_v57, %v960_v9  ;;  %v1083_v12 = vsub.f32 %v1073_v58, %v1081_v10  ;;  %1662 = vpow2.f32 %v963_v8  ;;  %v1652_v9 = vld [vmem:[%s2025_s6 + $0x8] sm:$0xff]  }
 0x45f   : > { %v965_v14 = vmul.f32 1.442695, %v962_v11  ;;  %v1086_v15 = vmul.f32 1.442695, %v1083_v12 }
 0x460   : > { %v1078_v16 = vpop.xlane.xlu0 %1077 }
 0x461   : > { %1664 = vpow2.f32 %v965_v14  ;;  %v1082_v17 = vsub.f32 %v1070_v63, %v1078_v16  ;;  %v1647_v63 = vld [vmem:[%s2025_s6 + $0x30] sm:$0xff]  }
 0x462   : > { %1666 = vpow2.f32 %v1086_v15  ;;  %1568 = vmatpush3.bf16.msra.mxu0 %v1647_v63  ;;  %v1457_v63 = vld [vmem:[%s2028_s9] ss:$0 sm:$0xff] }
 0x463   : > { %v1084_v20 = vmul.f32 1.442695, %v1082_v17  ;;  %1569 = vmatprep.subr.bf16.mxu0 %v1698_v1 }
 0x465   : > { %1668 = vpow2.f32 %v1084_v20 }
 0x466   : > { %1670 = vpow2.f32 %v841_v18  ;;  %1570 = vmatpush3.bf16.msra.mxu0 %v1648_v0 }
 0x467   : > { %1672 = vpow2.f32 %v843_v19  ;;  %1571 = vmatprep.subr.bf16.mxu0 %v1698_v1 }
 0x46a   : > { %v1663_v21 = vpop.eup %1662  ;;  %1572 = vmatpush3.bf16.msra.mxu0 %v1649_v2 }
 0x46b   : > { %v967_v22 = vsel %vm712_vm4, %v1663_v21, 0.0  ;;  %1573 = vmatprep.subr.bf16.mxu0 %v1698_v1 }
 0x46c   : > { %968 = vadd.xlane.f32.xlu0 %v967_v22 }
 0x46e   : > { %v1665_v23 = vpop.eup %1664  ;;  %1574 = vmatpush3.bf16.msra.mxu0 %v1650_v4 }
 0x46f   : > { %v970_v24 = vsel %vm712_vm4, %v1665_v23, 0.0  ;;  %v1667_v25 = vpop.eup %1666  ;;  %1575 = vmatprep.subr.bf16.mxu0 %v1698_v1 }
 0x470   : > { %971 = vadd.xlane.f32.xlu1 %v970_v24  ;;  %v1091_v31 = vsel %vm712_vm4, %v1667_v25, 0.0 }
 0x472   : > { %v1669_v26 = vpop.eup %1668  ;;  %1576 = vmatpush3.bf16.msra.mxu0 %v1651_v3 }
 0x473   : > { %v1671_v27 = vpop.eup %1670  ;;  %v1088_v30 = vsel %vm712_vm4, %v1669_v26, 0.0  ;;  %1577 = vmatprep.subr.bf16.mxu0 %v1698_v1 }
 0x474   : > { %v1673_v32 = vpop.eup %1672  ;;  %1089 = vadd.xlane.f32.xlu0 %v1088_v30  ;;  %1092 = vadd.xlane.f32.xlu1 %v1091_v31  ;;  %v845_v33 = vsel %vm712_vm4, %v1671_v27, 0.0 }
 0x475   : > { %v848_v34 = vsel %vm712_vm4, %v1673_v32, 0.0 }
 0x476   : > { %1578 = vmatpush3.bf16.msra.mxu0 %v1652_v9 }
 0x477   : > { %1579 = vmatprep.subr.bf16.mxu0 %v1698_v1 }
 0x478   : > { %846 = vadd.xlane.f32.xlu0 %v845_v33  ;;  %849 = vadd.xlane.f32.xlu1 %v848_v34 }
 0x47a   : > { %1580 = vmatpush3.bf16.msra.mxu0 %v1653_v13 }
 0x489   : > { %978 = vrot.lane.b32.xlu1 %v1883_v59, %s1703_s14 }
 0x48d   : > { %1099 = vrot.lane.b32.xlu1 %v1883_v59, %s1702_s21 }
 0x48e   : > { %857 = vrot.lane.b32.xlu0 %v1883_v59, %s1701_s20 }
 0x4f5   : > { %v969_v35 = vpop.xlane.xlu0 %968 }
 0x4f9   : > { %v972_v36 = vpop.xlane.xlu1 %971 }
 0x4fd   : > { %v1090_v37 = vpop.xlane.xlu0 %1089  ;;  %v1093_v39 = vpop.xlane.xlu1 %1092 }
 0x501   : > { %v847_v40 = vpop.xlane.xlu0 %846  ;;  %v850_v41 = vpop.xlane.xlu1 %849 }
 0x502   : > { %1674 = vrcp.f32 %v847_v40 }
 0x503   : > { %1676 = vrcp.f32 %v850_v41 }
 0x504   : > { %1678 = vrcp.f32 %v972_v36 }
 0x505   : > { %v858_v43 = vpop.permute.xlu0 %857  ;;  %1680 = vrcp.f32 %v969_v35  ;;  %v979_v49 = vpop.permute.xlu1 %978 }
 0x506   : > { %1536 = vmatpush3.bf16.msra.mxu1 %v858_v43  ;;  %1682 = vrcp.f32 %v1090_v37 }
 0x507   : > { %1547 = vmatprep.subr.bf16.mxu1 %v1698_v1  ;;  %1684 = vrcp.f32 %v1093_v39  ;;  %v1447_v39 = vld [vmem:[%s2026_s7] ss:$0 sm:$0xff] }
 0x509   : > { %v1100_v56 = vpop.permute.xlu1 %1099 }
 0x50f   : > { %v1675_v44 = vpop.eup %1674 }
 0x510   : > { %v1677_v45 = vpop.eup %1676  ;;  %v853_v46 = vmul.f32 %v1675_v44, %v1671_v27 }
 0x511   : > { %v854_v59 = vmul.f32 %v1677_v45, %v1673_v32  ;;  %v1679_v48 = vpop.eup %1678 }
 0x512   : > { %v1681_v50 = vpop.eup %1680  ;;  %v976_v51 = vmul.f32 %v1679_v48, %v1665_v23 }
 0x513   : > { %v855_v47 = vpack.c.bf16 %v854_v59, %v853_v46  ;;  %v975_v52 = vmul.f32 %v1681_v50, %v1663_v21  ;;  %v1683_v53 = vpop.eup %1682 }
 0x514   : > { %v1685_v55 = vpop.eup %1684  ;;  %v1096_v57 = vmul.f32 %v1683_v53, %v1669_v26 }
 0x515   : > { %1538 = vmatmul.mubr.msk.bf16.vlgmr.msra.gmra.mxu1 %vm712_vm4, %v855_v47  ;;  %v977_v54 = vpack.c.bf16 %v976_v51, %v975_v52  ;;  %v1097_v58 = vmul.f32 %v1685_v55, %v1667_v25 }
 0x516   : > { %1548 = vmatpush3.bf16.msra.mxu1 %v979_v49  ;;  %1549 = vmatprep.mubr.msk.bf16.mxu1 %vm1700_vm0, %v1698_v1 }
 0x517   : > { %1559 = vmatprep.subr.bf16.mxu1 %v1698_v1  ;;  %v1098_v60 = vpack.c.bf16 %v1097_v58, %v1096_v57 }
 0x51d   : > { %1550 = vmatmul.mubr.msk.bf16.vlgmr.msra.gmra.mxu1 %vm712_vm4, %v977_v54 }
 0x51e   : > { %1560 = vmatpush3.bf16.msra.mxu1 %v1100_v56  ;;  %1561 = vmatprep.mubr.msk.bf16.mxu1 %vm1700_vm0, %v1698_v1 }
 0x525   : > { %1562 = vmatmul.mubr.msk.bf16.vlgmr.msra.gmra.mxu1 %vm712_vm4, %v1098_v60  ;;  %v1456_v60 = vld [vmem:[%s2027_s8] ss:$0 sm:$0xff] }
 0x5d5   : > { %v897_v5 = vpop.f32.mrf.mxu1 }
 0x5d7   : > { %v1539_v6 = vpop.f32.mrf.mxu1 }
 0x5d9   : > { %v900_v7 = vpop.f32.mrf.mxu1 }
 0x5da   : > { %v1599_v8 = vpack.i.bf16 %v900_v7, %v897_v5 }
 0x5db   : > { %v1540_v10 = vpop.f32.mrf.mxu1 }
 0x5dc   : > { %1600 = vrot.lane.b32.xlu1 %v1599_v8, %s1702_s21 }
 0x5dd   : > { %v1018_v11 = vpop.f32.mrf.mxu1 }
 0x5df   : > { %v1551_v12 = vpop.f32.mrf.mxu1 }
 0x5e1   : > { %v1021_v62 = vpop.f32.mrf.mxu1 }
 0x5e2   : > { %v1604_v14 = vpack.i.bf16 %v1021_v62, %v1018_v11 }
 0x5e3   : > { %v1552_v15 = vpop.f32.mrf.mxu1 }
 0x5e4   : > { %1605 = vrot.lane.b32.xlu0 %v1604_v14, %s1703_s14 }
 0x5e5   : > { %v1139_v16 = vpop.f32.mrf.mxu1 }
 0x5e7   : > { %v1563_v17 = vpop.f32.mrf.mxu1 }
 0x5e9   : > { %v1142_v18 = vpop.f32.mrf.mxu1 }
 0x5ea   : > { %v1609_v19 = vpack.i.bf16 %v1142_v18, %v1139_v16 }
 0x5eb   : > { %v1564_v20 = vpop.f32.mrf.mxu1 }
 0x5ec   : > { %1610 = vrot.lane.b32.xlu1 %v1609_v19, %s1701_s20 }
 0x64e   : > { %v1601_v21 = vpop.permute.xlu1 %1600 }
 0x64f   : > { %v1603_v1 = vunpack.i.h.bf16 %v1601_v21  ;;  %v1602_v23 = vunpack.i.l.bf16 %v1601_v21 }
 0x651   : > { %v1171_v27 = vsel %vm664_vm1, %v1928_v42, %v1603_v1  ;;  %v1170_v30 = vsel %vm664_vm1, %v1926_v38, %v1602_v23 }
 0x656   : > { %v1606_v22 = vpop.permute.xlu0 %1605 }
 0x657   : > { %v1608_v24 = vunpack.i.h.bf16 %v1606_v22  ;;  %v1607_v25 = vunpack.i.l.bf16 %v1606_v22 }
 0x659   : > { %v1173_v33 = vsel %vm1172_vm5, %v1170_v30, %v1607_v25  ;;  %v1174_v34 = vsel %vm1172_vm5, %v1171_v27, %v1608_v24 }
 0x65e   : > { %v1611_v26 = vpop.permute.xlu1 %1610 }
 0x65f   : > { %v1613_v31 = vunpack.i.h.bf16 %v1611_v26  ;;  %v1612_v32 = vunpack.i.l.bf16 %v1611_v26 }
 0x661   : > { %v1176_v35 = vsel %vm1175_vm6, %v1173_v33, %v1612_v32  ;;  %v1177_v36 = vsel %vm1175_vm6, %v1174_v34, %v1613_v31 }
 0x662   : > { %v1178_v37 = vpack.c.bf16 %v1177_v36, %v1176_v35 }
 0x664   : > { %1582 = vmatmul.mubr.bf16.vlgmr.msra.gmra.mxu0 %v1178_v37 }
 0x724   : > { %v1284_v40 = vpop.f32.mrf.mxu0 }
 0x725   : > { %v1285_v41 = vadd.f32 %v1447_v39, %v1284_v40 }
 0x726   : > { %v1583_v43 = vpop.f32.mrf.mxu0 }
 0x727   : > { %v1291_v42 = vadd.f32 %v1285_v41, %v1862_v28 }
 0x728   : > { %v1287_v44 = vpop.f32.mrf.mxu0 }
 0x729   : > { %v1288_v45 = vadd.f32 %v1447_v39, %v1287_v44  ;;  %1295 = vadd.xlane.f32.xlu0 %v1291_v42 }
 0x72a   : > { %v1584_v38 = vpop.f32.mrf.mxu0 }
 0x72b   : > { %v1292_v46 = vadd.f32 %v1288_v45, %v1864_v29 }
 0x72d   : > { %1297 = vadd.xlane.f32.xlu1 %v1292_v46 }
 0x7b2   : > { %v1296_v59 = vpop.xlane.xlu0 %1295 }
 0x7b3   : > { %v1300_v47 = vmul.f32 0.0078125, %v1296_v59 }
 0x7b5   : > { %v1302_v48 = vsub.f32 %v1291_v42, %v1300_v47 }
 0x7b6   : > { %v1298_v49 = vpop.xlane.xlu1 %1297 }
 0x7b7   : > { %v1301_v50 = vmul.f32 0.0078125, %v1298_v49  ;;  %v1304_v51 = vmul.f32 %v1302_v48, %v1302_v48 }
 0x7b9   : > { %v1303_v52 = vsub.f32 %v1292_v46, %v1301_v50  ;;  %1306 = vadd.xlane.f32.xlu0 %v1304_v51 }
 0x7bb   : > { %v1305_v53 = vmul.f32 %v1303_v52, %v1303_v52 }
 0x7bd   : > { %1308 = vadd.xlane.f32.xlu0 %v1305_v53 }
 0x842   : > { %v1307_v54 = vpop.xlane.xlu0 %1306 }
 0x843   : > { %v1310_v28 = vmul.f32 0.0078125, %v1307_v54 }
 0x845   : > { %v1312_v55 = vadd.f32 1e-05, %v1310_v28 }
 0x846   : > { %v1309_v56 = vpop.xlane.xlu0 %1308 }
 0x847   : > { %1686 = vrsqrt.f32 %v1312_v55  ;;  %v1311_v57 = vmul.f32 0.0078125, %v1309_v56 }
 0x849   : > { %v1313_v58 = vadd.f32 1e-05, %v1311_v57 }
 0x84b   : > { %1688 = vrsqrt.f32 %v1313_v58 }
 0x854   : > { %v1687_v29 = vpop.eup %1686 }
 0x855   : > { %v1316_v61 = vmul.f32 %v1687_v29, %v1302_v48 }
 0x857   : > { %v1324_v0 = vmul.f32 %v1456_v60, %v1316_v61 }
 0x858   : > { %v1689_v2 = vpop.eup %1688 }
 0x859   : > { %v1332_v4 = vadd.f32 %v1457_v63, %v1324_v0  ;;  %v1317_v5 = vmul.f32 %v1689_v2, %v1303_v52 }
 0x85b   : > { %1334 = vst [vmem:[%s379_s28] sm:$0xff] %v1332_v4  ;;  %v1325_v6 = vmul.f32 %v1456_v60, %v1317_v5 }
 0x85d   : > { %v1333_v3 = vadd.f32 %v1457_v63, %v1325_v6 }
 0x85f   : > { %1335 = vst [vmem:[%s379_s28 + $0x8] sm:$0xff] %v1333_v3 }
 0x860 PF: > { %s20_s13 = sadd.s32 1, %s1696_s13  }
 0x861   : > { %p17_p4 = scmp.ge.s32.totalorder %s20_s13, 4  }
 0x863   :  { %19 = sbr.rel (!%p17_p4) target bundleno = 1 (0x1), region = 93 }

// kernel: decoder_forward.18
= control target key start
LH: loop header
LB: loop body
LE: loop exit
PB: predicated region body
PF: predicated region fallthrough
CT: control target
= control target key end

     0   :  { %s1676_s27 = smov 0   ;;  %s1928_s0 = inlined_call_operand.vmem [shape: f32[2,16,128], index: 0, kind: input, shape index: {}]   ;;  %s1929_s1 = inlined_call_operand.vmem [shape: f32[2,1,16], index: 1, kind: input, shape index: {}]   ;;  %s1930_s2 = inlined_call_operand.vmem [shape: bf16[128,384], index: 2, kind: input, shape index: {}]   ;;  %s1931_s3 = inlined_call_operand.vmem [shape: f32[1,384], index: 3, kind: input, shape index: {}]   ;;  %s1932_s4 = inlined_call_operand.vmem [shape: bf16[128,128], index: 4, kind: input, shape index: {}]   ;;  %s1933_s5 = inlined_call_operand.vmem [shape: f32[1,128], index: 5, kind: input, shape index: {}]   ;;  %s1934_s6 = inlined_call_operand.vmem [shape: f32[1,128], index: 6, kind: input, shape index: {}]   ;;  %s1935_s7 = inlined_call_operand.vmem [shape: f32[1,128], index: 7, kind: input, shape index: {}]   ;;  %s1936_s8 = inlined_call_operand.vmem [shape: f32[2,16,128], index: 8, kind: output, shape index: {}]  }
   0x1 LB: > { %s1333_s28 = sadd.s32 4294967295, %s1623_s27   ;;  %p1337_p0 = scmp.ge.s32.totalorder %s1623_s27, 1  ;;  %s1623_s27 = sphi %s1676_s27, %s18_s27  }
   0x2   : > { %p270_p1 = scmp.lt.s32.totalorder %s1623_s27, 3 }
   0x4   : > { %p271_p2 = pnand %p1337_p0, %p270_p1 }
   0x5   : > { %p307_p3 = scmp.lt.s32.totalorder (!%p271_p2), %s1333_s28, 1  ;;  %s1628_s25 = smov (!%p271_p2), 96  }
   0x6   : > { %274 = sbr.rel (%p271_p2) target bundleno = 2145 (0x861), region = 52  ;;  %s1629_s26 = smov (!%p271_p2), 32  }
   0x7   : > { %s1630_s30 = smov (!%p271_p2), 64  }
   0xb   : > { %v1541_v0 = vld [vmem:[%s1930_s2 + $0xac] ss:$12 sps:$4 sm:$0xff]   ;;  %v1543_v1 = vld [vmem:[%s1930_s2 + $0xa8] ss:$12 sps:$4 sm:$0xff]   ;;  %v1625_v2 = vmov 0   ;;  %v1626_v4 = vmov 0.0   ;;  %v358_v29 = vlaneseq }
   0xc   : > { %533 = vmatprep.mubr.bf16.mxu0 %v1625_v2  ;;  %501 = vmatprep.subr.bf16.mxu0 %v1541_v0  ;;  %v1544_v3 = vld [vmem:[%s1930_s2 + $0x94] ss:$12 sps:$4 sm:$0xff]   ;;  %v1546_v5 = vld [vmem:[%s1930_s2 + $0x90] ss:$12 sps:$4 sm:$0xff]   ;;  %v1549_v7 = vld [vmem:[%s1930_s2 + $0x78] ss:$12 sps:$4 sm:$0xff]  }
   0xd   : > { %1424 = vmatprep.subr.bf16.mxu1 %v1626_v4  ;;  %502 = vmatpush1.bf16.msra.mxu0 %v1543_v1  ;;  %v1547_v6 = vld [vmem:[%s1930_s2 + $0x7c] ss:$12 sps:$4 sm:$0xff]   ;;  %v1550_v8 = vld [vmem:[%s1930_s2 + $0x64] ss:$12 sps:$4 sm:$0xff]   ;;  %s1938_s28 = smov (!%p307_p3, %s1333_s28), 1  ;;  %vm1627_vm0 = vmmov 0  }
   0xe   : > { %503 = vmatprep.subr.bf16.mxu0 %v1544_v3  ;;  %v1552_v9 = vld [vmem:[%s1930_s2 + $0x60] ss:$12 sps:$4 sm:$0xff]   ;;  %v1565_v11 = vld [vmem:[%s1930_s2 + $0xb0] ss:$12 sps:$4 sm:$0xff]   ;;  %s1388_s29 = sshll.u32 %s1938_s28, 4  ;;  %1440 = vmatprep.mubr.msk.bf16.mxu1 %vm1627_vm0, %v1626_v4  ;;  %v359_v30 = vshrl.u32 %v358_v29, 7  ;;  %s314_s24 = scalar_lea.vmem %s1929_s1, %s1938_s28 }
   0xf   : > { %v1553_v10 = vld [vmem:[%s1930_s2 + $0x4c] ss:$12 sps:$4 sm:$0xff]   ;;  %1425 = vmatpush3.bf16.msra.mxu1 %v1565_v11  ;;  %v1555_v13 = vld [vmem:[%s1930_s2 + $0x48] ss:$12 sps:$4 sm:$0xff]   ;;  %v1558_v15 = vld [vmem:[%s1930_s2 + $0x30] ss:$12 sps:$4 sm:$0xff]   ;;  %s311_s9 = scalar_lea.vmem %s1928_s0, %s1388_s29  ;;  %s319_s14 = scalar_lea.vmem %s1936_s8, %s1388_s29 }
  0x10   : > { %v1566_v12 = vld [vmem:[%s1930_s2 + $0x98] ss:$12 sps:$4 sm:$0xff]   ;;  %1426 = vmatprep.subr.bf16.mxu1 %v1626_v4  ;;  %v1556_v14 = vld [vmem:[%s1930_s2 + $0x34] ss:$12 sps:$4 sm:$0xff]   ;;  %v1559_v16 = vld [vmem:[%s1930_s2 + $0x1c] ss:$12 sps:$4 sm:$0xff]  }
  0x11   : > { %504 = vmatpush1.bf16.msra.mxu0 %v1546_v5  ;;  %v1567_v17 = vld [vmem:[%s1930_s2 + $0x80] ss:$12 sps:$4 sm:$0xff]   ;;  %v1568_v18 = vld [vmem:[%s1930_s2 + $0x68] ss:$12 sps:$4 sm:$0xff]   ;;  %v1561_v19 = vld [vmem:[%s1930_s2 + $0x18] ss:$12 sps:$4 sm:$0xff]  }
  0x12   : > { %505 = vmatprep.subr.bf16.mxu0 %v1547_v6  ;;  %v1562_v20 = vld [vmem:[%s1930_s2 + $0x4] ss:$12 sps:$4 sm:$0xff]   ;;  %v1564_v22 = vld [vmem:[%s1930_s2] ss:$12 sps:$4 sm:$0xff]   ;;  %v1572_v28 = vld [vmem:[%s1930_s2 + $0x8] ss:$12 sps:$4 sm:$0xff]  }
  0x13   : > { %1427 = vmatpush3.bf16.msra.mxu1 %v1566_v12  ;;  %v1569_v21 = vld [vmem:[%s1930_s2 + $0x50] ss:$12 sps:$4 sm:$0xff]   ;;  %v1759_v23 = vld [vmem:[%s311_s9] sm:$0xff]  ;;  %v1761_v24 = vld [vmem:[%s311_s9 + $0x8] sm:$0xff]  ;;  %v364_v31 = vsub.s32 1, %v359_v30  ;;  %v360_v35 = vsub.s32 0, %v359_v30 }
  0x14   : > { %1428 = vmatprep.subr.bf16.mxu1 %v1626_v4  ;;  %v323_v25 = vpack.c.bf16 %v1761_v24, %v1759_v23  ;;  %v1570_v26 = vld [vmem:[%s1930_s2 + $0x38] ss:$12 sps:$4 sm:$0xff]   ;;  %v1571_v27 = vld [vmem:[%s1930_s2 + $0x20] ss:$12 sps:$4 sm:$0xff]   ;;  %vm597_vm1 = vcmask 261120   ;;  %v368_v49 = vsub.s32 2, %v359_v30 }
  0x15   : > { %506 = vmatpush1.bf16.msra.mxu0 %v1549_v7  ;;  %v356_v33 = vld [vmem:[%s1931_s3] sm:$0x7]  ;;  %vm645_vm2 = vcmask 130048   ;;  %vm1105_vm3 = vcmask 523264   ;;  %vm1108_vm4 = vcmask 785408  }
  0x16   : > { %507 = vmatprep.subr.bf16.mxu0 %v1550_v8  ;;  %v365_v36 = vrot.slane %v356_v33, %v364_v31  ;;  %v361_v39 = vrot.slane %v356_v33, %v360_v35  ;;  %v369_v50 = vrot.slane %v356_v33, %v368_v49  ;;  %v1802_v58 = vld [vmem:[%s314_s24] ss:$0 sm:$0xff] }
  0x17   : > { %1429 = vmatpush3.bf16.msra.mxu1 %v1567_v17 }
  0x18   : > { %1430 = vmatprep.subr.bf16.mxu1 %v1626_v4 }
  0x19   : > { %508 = vmatpush1.bf16.msra.mxu0 %v1552_v9 }
  0x1a   : > { %509 = vmatprep.subr.bf16.mxu0 %v1553_v10 }
  0x1b   : > { %1431 = vmatpush3.bf16.msra.mxu1 %v1568_v18 }
  0x1c   : > { %1432 = vmatprep.subr.bf16.mxu1 %v1626_v4 }
  0x1d   : > { %510 = vmatpush1.bf16.msra.mxu0 %v1555_v13 }
  0x1e   : > { %511 = vmatprep.subr.bf16.mxu0 %v1556_v14 }
  0x1f   : > { %1433 = vmatpush3.bf16.msra.mxu1 %v1569_v21 }
  0x20   : > { %1434 = vmatprep.subr.bf16.mxu1 %v1626_v4 }
  0x21   : > { %512 = vmatpush1.bf16.msra.mxu0 %v1558_v15 }
  0x22   : > { %513 = vmatprep.subr.bf16.mxu0 %v1559_v16 }
  0x23   : > { %1435 = vmatpush3.bf16.msra.mxu1 %v1570_v26 }
  0x24   : > { %1436 = vmatprep.subr.bf16.mxu1 %v1626_v4 }
  0x25   : > { %514 = vmatpush1.bf16.msra.mxu0 %v1561_v19 }
  0x26   : > { %515 = vmatprep.subr.bf16.mxu0 %v1562_v20 }
  0x27   : > { %1437 = vmatpush3.bf16.msra.mxu1 %v1571_v27 }
  0x28   : > { %1438 = vmatprep.subr.bf16.mxu1 %v1626_v4 }
  0x29   : > { %516 = vmatpush1.bf16.msra.mxu0 %v1564_v22 }
  0x2a   : > { %1468 = vmatprep.subr.bf16.mxu0 %v1626_v4 }
  0x2b   : > { %1439 = vmatpush3.bf16.msra.mxu1 %v1572_v28 }
  0x2c   : > { %534 = vmatmul.mubr.bf16.vlgmr.msra.gmra.mxu0 %v323_v25  ;;  %1444 = vmatprep.subr.bf16.mxu1 %v1626_v4 }
  0x2d   : > { %1470 = vmatprep.mubr.msk.bf16.mxu0 %vm1627_vm0, %v1626_v4 }
  0x2e   : > { %1441 = vmatmul.mubr.bf16.vlgmr.msra.gmra.mxu1 %v323_v25 }
  0x2f   : > { %1446 = vmatprep.mubr.msk.bf16.mxu1 %vm1627_vm0, %v1626_v4 }
  0xec   : > { %v535_v32 = vpop.f32.mrf.mxu0 }
  0xed   : > { %v536_v44 = vadd.f32 %v535_v32, %v361_v39 }
  0xee   : > { %v537_v34 = vpop.f32.mrf.mxu0  ;;  %v578_v51 = vpop.f32.mrf.mxu1 }
  0xef   : > { %v538_v40 = vadd.f32 %v537_v34, %v365_v36  ;;  %v585_v47 = vmul.f32 0.17677669, %v536_v44  ;;  %v579_v53 = vadd.f32 %v578_v51, %v369_v50 }
  0xf0   : > { %v539_v37 = vpop.f32.mrf.mxu0  ;;  %v1442_v52 = vpop.f32.mrf.mxu1 }
  0xf1   : > { %v540_v42 = vadd.f32 %v539_v37, %v361_v39 }
  0xf2   : > { %v541_v38 = vpop.f32.mrf.mxu0  ;;  %v581_v54 = vpop.f32.mrf.mxu1 }
  0xf3   : > { %v542_v41 = vadd.f32 %v541_v38, %v365_v36  ;;  %v586_v46 = vmul.f32 0.17677669, %v540_v42  ;;  %v582_v55 = vadd.f32 %v581_v54, %v369_v50 }
  0xf4   : > { %v1443_v56 = vpop.f32.mrf.mxu1 }
  0xf5   : > { %v589_v43 = vpack.c.bf16 %v542_v41, %v538_v40  ;;  %v588_v48 = vpack.c.bf16 %v586_v46, %v585_v47  ;;  %v1794_v57 = vpack.c.bf16 %v582_v55, %v579_v53 }
  0xf7   : > { %v602_v45 = vsel %vm597_vm1, %v589_v43, 0 }
  0xf8   : > { %1445 = vmatpush3.bf16.xpose.msra.mxu1 %v602_v45 }
  0xf9   : > { %1450 = vmatprep.subr.bf16.mxu1 %v1626_v4 }
  0xff   : > { %1447 = vmatmul.mubr.msk.bf16.vlgmr.msra.gmra.mxu1 %vm597_vm1, %v588_v48 }
 0x100   : > { %1452 = vmatprep.mubr.msk.bf16.mxu1 %vm1627_vm0, %v1626_v4  ;;  %1451 = vmatpush3.bf16.msra.mxu1 %v1794_v57 }
 0x101   : > { %1456 = vmatprep.subr.bf16.mxu1 %v1626_v4 }
 0x1bf   : > { %v638_v59 = vpop.f32.mrf.mxu1 }
 0x1c0   : > { %v639_v60 = vadd.f32 %v1802_v58, %v638_v59 }
 0x1c1   : > { %v1448_v61 = vpop.f32.mrf.mxu1 }
 0x1c2   : > { %v646_v62 = vsel %vm645_vm2, %v639_v60, -inf }
 0x1c3   : > { %647 = vmax.xlane.f32.xlu0 %v646_v62  ;;  %v641_v63 = vpop.f32.mrf.mxu1 }
 0x1c4   : > { %v642_v0 = vadd.f32 %v1802_v58, %v641_v63 }
 0x1c5   : > { %v1449_v1 = vpop.f32.mrf.mxu1 }
 0x1c6   : > { %v649_v2 = vsel %vm645_vm2, %v642_v0, -inf }
 0x1c7   : > { %650 = vmax.xlane.f32.xlu0 %v649_v2 }
 0x1dd   : > { %717 = vrot.lane.b32.xlu0 %v589_v43, %s1628_s25 }
 0x1e1   : > { %960 = vrot.lane.b32.xlu0 %v589_v43, %s1629_s26 }
 0x24c   : > { %v648_v3 = vpop.xlane.xlu0 %647 }
 0x24d   : > { %v652_v5 = vsub.f32 %v639_v60, %v648_v3 }
 0x24f   : > { %v654_v6 = vmul.f32 1.442695, %v652_v5 }
 0x250   : > { %v651_v7 = vpop.xlane.xlu0 %650 }
 0x251   : > { %1581 = vpow2.f32 %v654_v6  ;;  %v653_v8 = vsub.f32 %v642_v0, %v651_v7 }
 0x253   : > { %v656_v9 = vmul.f32 1.442695, %v653_v8 }
 0x254   : > { %v718_v17 = vpop.permute.xlu0 %717 }
 0x255   : > { %1583 = vpow2.f32 %v656_v9  ;;  %v723_v30 = vsel %vm597_vm1, %v718_v17, 0 }
 0x258   : > { %v961_v22 = vpop.permute.xlu0 %960 }
 0x259   : > { %v966_v28 = vsel %vm597_vm1, %v961_v22, 0 }
 0x25e   : > { %v1582_v10 = vpop.eup %1581 }
 0x25f   : > { %v658_v11 = vsel %vm645_vm2, %v1582_v10, 0.0 }
 0x260   : > { %659 = vadd.xlane.f32.xlu1 %v658_v11 }
 0x262   : > { %v1584_v12 = vpop.eup %1583 }
 0x263   : > { %v661_v13 = vsel %vm645_vm2, %v1584_v12, 0.0 }
 0x264   : > { %662 = vadd.xlane.f32.xlu1 %v661_v13 }
 0x275   : > { %714 = vrot.lane.b32.xlu1 %v588_v48, %s1628_s25 }
 0x279   : > { %839 = vrot.lane.b32.xlu1 %v589_v43, %s1630_s30 }
 0x27d   : > { %837 = vrot.lane.b32.xlu1 %v588_v48, %s1630_s30 }
 0x281   : > { %958 = vrot.lane.b32.xlu1 %v588_v48, %s1629_s26 }
 0x2e9   : > { %v660_v14 = vpop.xlane.xlu1 %659 }
 0x2ea   : > { %1585 = vrcp.f32 %v660_v14 }
 0x2ed   : > { %v663_v15 = vpop.xlane.xlu1 %662 }
 0x2ee   : > { %1587 = vrcp.f32 %v663_v15 }
 0x2f1   : > { %v715_v16 = vpop.permute.xlu1 %714 }
 0x2f5   : > { %v840_v18 = vpop.permute.xlu1 %839 }
 0x2f6   : > { %v845_v19 = vsel %vm597_vm1, %v840_v18, 0 }
 0x2f7   : > { %1469 = vmatpush3.bf16.xpose.msra.mxu0 %v845_v19  ;;  %v1586_v20 = vpop.eup %1585 }
 0x2f8   : > { %1480 = vmatprep.subr.bf16.mxu0 %v1626_v4  ;;  %v666_v25 = vmul.f32 %v1586_v20, %v1582_v10 }
 0x2f9   : > { %v838_v27 = vpop.permute.xlu1 %837 }
 0x2fb   : > { %v1588_v21 = vpop.eup %1587 }
 0x2fc   : > { %v667_v26 = vmul.f32 %v1588_v21, %v1584_v12 }
 0x2fd   : > { %v959_v31 = vpop.permute.xlu1 %958 }
 0x2fe   : > { %1471 = vmatmul.mubr.msk.bf16.vlgmr.msra.gmra.mxu0 %vm597_vm1, %v838_v27  ;;  %v668_v29 = vpack.c.bf16 %v667_v26, %v666_v25 }
 0x2ff   : > { %1481 = vmatpush3.bf16.xpose.msra.mxu0 %v966_v28  ;;  %1482 = vmatprep.mubr.msk.bf16.mxu0 %vm1627_vm0, %v1626_v4 }
 0x300   : > { %1453 = vmatmul.mubr.msk.bf16.vlgmr.msra.gmra.mxu1 %vm645_vm2, %v668_v29  ;;  %1492 = vmatprep.subr.bf16.mxu0 %v1626_v4 }
 0x301   : > { %1457 = vmatpush3.bf16.xpose.msra.mxu1 %v723_v30  ;;  %1458 = vmatprep.mubr.msk.bf16.mxu1 %vm1627_vm0, %v1626_v4 }
 0x302   : > { %1462 = vmatprep.subr.bf16.mxu1 %v1626_v4 }
 0x306   : > { %1483 = vmatmul.mubr.msk.bf16.vlgmr.msra.gmra.mxu0 %vm597_vm1, %v959_v31 }
 0x307   : > { %1508 = vmatprep.mubr.msk.bf16.mxu0 %vm1627_vm0, %v1626_v4 }
 0x308   : > { %1459 = vmatmul.mubr.msk.bf16.vlgmr.msra.gmra.mxu1 %vm597_vm1, %v715_v16 }
 0x309   : > { %1464 = vmatprep.mubr.msk.bf16.mxu1 %vm1627_vm0, %v1626_v4 }
 0x3be   : > { %v881_v32 = vpop.f32.mrf.mxu0 }
 0x3bf   : > { %v882_v46 = vadd.f32 %v1802_v58, %v881_v32 }
 0x3c0   : > { %v1834_v33 = vpop.f32.mrf.mxu1  ;;  %v1472_v34 = vpop.f32.mrf.mxu0 }
 0x3c1   : > { %v888_v54 = vsel %vm645_vm2, %v882_v46, -inf }
 0x3c2   : > { %v1454_v35 = vpop.f32.mrf.mxu1  ;;  %v884_v36 = vpop.f32.mrf.mxu0 }
 0x3c3   : > { %v885_v52 = vadd.f32 %v1802_v58, %v884_v36 }
 0x3c4   : > { %v1836_v37 = vpop.f32.mrf.mxu1  ;;  %v1473_v38 = vpop.f32.mrf.mxu0 }
 0x3c5   : > { %v891_v59 = vsel %vm645_vm2, %v885_v52, -inf }
 0x3c6   : > { %v1455_v39 = vpop.f32.mrf.mxu1  ;;  %v1002_v40 = vpop.f32.mrf.mxu0 }
 0x3c7   : > { %v1003_v56 = vadd.f32 %v1802_v58, %v1002_v40 }
 0x3c8   : > { %v759_v41 = vpop.f32.mrf.mxu1  ;;  %v1484_v42 = vpop.f32.mrf.mxu0 }
 0x3c9   : > { %v760_v43 = vadd.f32 %v1802_v58, %v759_v41  ;;  %v1009_v61 = vsel %vm645_vm2, %v1003_v56, -inf }
 0x3ca   : > { %v1460_v44 = vpop.f32.mrf.mxu1  ;;  %v1005_v45 = vpop.f32.mrf.mxu0 }
 0x3cb   : > { %v766_v47 = vsel %vm645_vm2, %v760_v43, -inf  ;;  %v1006_v53 = vadd.f32 %v1802_v58, %v1005_v45 }
 0x3cc   : > { %v1485_v48 = vpop.f32.mrf.mxu0  ;;  %767 = vmax.xlane.f32.xlu0 %v766_v47  ;;  %v762_v49 = vpop.f32.mrf.mxu1 }
 0x3cd   : > { %v763_v50 = vadd.f32 %v1802_v58, %v762_v49  ;;  %v1012_v60 = vsel %vm645_vm2, %v1006_v53, -inf }
 0x3ce   : > { %v1461_v51 = vpop.f32.mrf.mxu1 }
 0x3cf   : > { %v769_v55 = vsel %vm645_vm2, %v763_v50, -inf }
 0x3d0   : > { %889 = vmax.xlane.f32.xlu0 %v888_v54  ;;  %770 = vmax.xlane.f32.xlu1 %v769_v55  ;;  %v1573_v55 = vld [vmem:[%s1932_s4 + $0x38] sm:$0xff]  }
 0x3d1   : > { %1493 = vmatpush3.bf16.msra.mxu0 %v1573_v55 }
 0x3d2   : > { %1494 = vmatprep.subr.bf16.mxu0 %v1626_v4 }
 0x3d4   : > { %892 = vmax.xlane.f32.xlu0 %v891_v59  ;;  %1013 = vmax.xlane.f32.xlu1 %v1012_v60  ;;  %v1575_v59 = vld [vmem:[%s1932_s4 + $0x28] sm:$0xff]   ;;  %v1576_v60 = vld [vmem:[%s1932_s4 + $0x20] sm:$0xff]  }
 0x3d8   : > { %1010 = vmax.xlane.f32.xlu0 %v1009_v61  ;;  %v1577_v61 = vld [vmem:[%s1932_s4 + $0x18] sm:$0xff]  }
 0x455   : > { %v768_v62 = vpop.xlane.xlu0 %767 }
 0x456   : > { %v772_v58 = vsub.f32 %v760_v43, %v768_v62 }
 0x458   : > { %v774_v13 = vmul.f32 1.442695, %v772_v58  ;;  %v1580_v58 = vld [vmem:[%s1932_s4] sm:$0xff]  }
 0x459   : > { %v890_v63 = vpop.xlane.xlu0 %889  ;;  %v771_v0 = vpop.xlane.xlu1 %770 }
 0x45a   : > { %v894_v1 = vsub.f32 %v882_v46, %v890_v63  ;;  %v773_v8 = vsub.f32 %v763_v50, %v771_v0  ;;  %v1578_v0 = vld [vmem:[%s1932_s4 + $0x10] sm:$0xff]  }
 0x45c   : > { %v896_v2 = vmul.f32 1.442695, %v894_v1  ;;  %v776_v14 = vmul.f32 1.442695, %v773_v8 }
 0x45d   : > { %v893_v3 = vpop.xlane.xlu0 %892  ;;  %v1014_v5 = vpop.xlane.xlu1 %1013 }
 0x45e   : > { %1589 = vpow2.f32 %v896_v2  ;;  %v895_v6 = vsub.f32 %v885_v52, %v893_v3  ;;  %v1016_v7 = vsub.f32 %v1006_v53, %v1014_v5  ;;  %v1579_v3 = vld [vmem:[%s1932_s4 + $0x8] sm:$0xff]  }
 0x460   : > { %v898_v9 = vmul.f32 1.442695, %v895_v6  ;;  %v1019_v10 = vmul.f32 1.442695, %v1016_v7 }
 0x461   : > { %v1011_v11 = vpop.xlane.xlu0 %1010 }
 0x462   : > { %1591 = vpow2.f32 %v898_v9  ;;  %v1015_v12 = vsub.f32 %v1003_v56, %v1011_v11  ;;  %v1574_v56 = vld [vmem:[%s1932_s4 + $0x30] sm:$0xff]  }
 0x463   : > { %1593 = vpow2.f32 %v1019_v10  ;;  %1495 = vmatpush3.bf16.msra.mxu0 %v1574_v56  ;;  %v1385_v56 = vld [vmem:[%s1935_s7] ss:$0 sm:$0xff] }
 0x464   : > { %v1017_v15 = vmul.f32 1.442695, %v1015_v12  ;;  %1496 = vmatprep.subr.bf16.mxu0 %v1626_v4 }
 0x466   : > { %1595 = vpow2.f32 %v1017_v15 }
 0x467   : > { %1597 = vpow2.f32 %v774_v13  ;;  %1497 = vmatpush3.bf16.msra.mxu0 %v1575_v59 }
 0x468   : > { %1599 = vpow2.f32 %v776_v14  ;;  %1498 = vmatprep.subr.bf16.mxu0 %v1626_v4 }
 0x46b   : > { %v1590_v16 = vpop.eup %1589  ;;  %1499 = vmatpush3.bf16.msra.mxu0 %v1576_v60 }
 0x46c   : > { %v900_v17 = vsel %vm645_vm2, %v1590_v16, 0.0  ;;  %1500 = vmatprep.subr.bf16.mxu0 %v1626_v4 }
 0x46d   : > { %901 = vadd.xlane.f32.xlu0 %v900_v17 }
 0x46f   : > { %v1592_v18 = vpop.eup %1591  ;;  %1501 = vmatpush3.bf16.msra.mxu0 %v1577_v61 }
 0x470   : > { %v903_v19 = vsel %vm645_vm2, %v1592_v18, 0.0  ;;  %v1594_v20 = vpop.eup %1593  ;;  %1502 = vmatprep.subr.bf16.mxu0 %v1626_v4 }
 0x471   : > { %904 = vadd.xlane.f32.xlu1 %v903_v19  ;;  %v1024_v26 = vsel %vm645_vm2, %v1594_v20, 0.0 }
 0x473   : > { %v1596_v21 = vpop.eup %1595  ;;  %1503 = vmatpush3.bf16.msra.mxu0 %v1578_v0 }
 0x474   : > { %v1598_v22 = vpop.eup %1597  ;;  %v1021_v25 = vsel %vm645_vm2, %v1596_v21, 0.0  ;;  %1504 = vmatprep.subr.bf16.mxu0 %v1626_v4 }
 0x475   : > { %v1600_v27 = vpop.eup %1599  ;;  %1022 = vadd.xlane.f32.xlu0 %v1021_v25  ;;  %1025 = vadd.xlane.f32.xlu1 %v1024_v26  ;;  %v778_v28 = vsel %vm645_vm2, %v1598_v22, 0.0 }
 0x476   : > { %v781_v29 = vsel %vm645_vm2, %v1600_v27, 0.0 }
 0x477   : > { %1505 = vmatpush3.bf16.msra.mxu0 %v1579_v3 }
 0x478   : > { %1506 = vmatprep.subr.bf16.mxu0 %v1626_v4 }
 0x479   : > { %779 = vadd.xlane.f32.xlu0 %v778_v28  ;;  %782 = vadd.xlane.f32.xlu1 %v781_v29 }
 0x47b   : > { %1507 = vmatpush3.bf16.msra.mxu0 %v1580_v58 }
 0x48a   : > { %911 = vrot.lane.b32.xlu1 %v1794_v57, %s1630_s30 }
 0x48e   : > { %1032 = vrot.lane.b32.xlu1 %v1794_v57, %s1629_s26 }
 0x48f   : > { %790 = vrot.lane.b32.xlu0 %v1794_v57, %s1628_s25 }
 0x4f6   : > { %v902_v30 = vpop.xlane.xlu0 %901 }
 0x4fa   : > { %v905_v31 = vpop.xlane.xlu1 %904 }
 0x4fe   : > { %v1023_v32 = vpop.xlane.xlu0 %1022  ;;  %v1026_v34 = vpop.xlane.xlu1 %1025 }
 0x502   : > { %v780_v35 = vpop.xlane.xlu0 %779  ;;  %v783_v36 = vpop.xlane.xlu1 %782 }
 0x503   : > { %1601 = vrcp.f32 %v780_v35 }
 0x504   : > { %1603 = vrcp.f32 %v783_v36 }
 0x505   : > { %1605 = vrcp.f32 %v905_v31 }
 0x506   : > { %v791_v38 = vpop.permute.xlu0 %790  ;;  %1607 = vrcp.f32 %v902_v30  ;;  %v912_v44 = vpop.permute.xlu1 %911 }
 0x507   : > { %1463 = vmatpush3.bf16.msra.mxu1 %v791_v38  ;;  %1609 = vrcp.f32 %v1023_v32 }
 0x508   : > { %1474 = vmatprep.subr.bf16.mxu1 %v1626_v4  ;;  %1611 = vrcp.f32 %v1026_v34  ;;  %v1375_v34 = vld [vmem:[%s1933_s5] ss:$0 sm:$0xff] }
 0x50a   : > { %v1033_v51 = vpop.permute.xlu1 %1032 }
 0x510   : > { %v1602_v39 = vpop.eup %1601 }
 0x511   : > { %v1604_v40 = vpop.eup %1603  ;;  %v786_v41 = vmul.f32 %v1602_v39, %v1598_v22 }
 0x512   : > { %v787_v57 = vmul.f32 %v1604_v40, %v1600_v27  ;;  %v1606_v43 = vpop.eup %1605 }
 0x513   : > { %v1608_v45 = vpop.eup %1607  ;;  %v909_v46 = vmul.f32 %v1606_v43, %v1592_v18 }
 0x514   : > { %v788_v42 = vpack.c.bf16 %v787_v57, %v786_v41  ;;  %v908_v47 = vmul.f32 %v1608_v45, %v1590_v16  ;;  %v1610_v48 = vpop.eup %1609 }
 0x515   : > { %v1612_v50 = vpop.eup %1611  ;;  %v1029_v52 = vmul.f32 %v1610_v48, %v1596_v21 }
 0x516   : > { %1465 = vmatmul.mubr.msk.bf16.vlgmr.msra.gmra.mxu1 %vm645_vm2, %v788_v42  ;;  %v910_v49 = vpack.c.bf16 %v909_v46, %v908_v47  ;;  %v1030_v53 = vmul.f32 %v1612_v50, %v1594_v20 }
 0x517   : > { %1475 = vmatpush3.bf16.msra.mxu1 %v912_v44  ;;  %1476 = vmatprep.mubr.msk.bf16.mxu1 %vm1627_vm0, %v1626_v4 }
 0x518   : > { %1486 = vmatprep.subr.bf16.mxu1 %v1626_v4  ;;  %v1031_v54 = vpack.c.bf16 %v1030_v53, %v1029_v52 }
 0x51e   : > { %1477 = vmatmul.mubr.msk.bf16.vlgmr.msra.gmra.mxu1 %vm645_vm2, %v910_v49 }
 0x51f   : > { %1487 = vmatpush3.bf16.msra.mxu1 %v1033_v51  ;;  %1488 = vmatprep.mubr.msk.bf16.mxu1 %vm1627_vm0, %v1626_v4 }
 0x526   : > { %1489 = vmatmul.mubr.msk.bf16.vlgmr.msra.gmra.mxu1 %vm645_vm2, %v1031_v54  ;;  %v1384_v54 = vld [vmem:[%s1934_s6] ss:$0 sm:$0xff] }
 0x5d6   : > { %v830_v62 = vpop.f32.mrf.mxu1 }
 0x5d8   : > { %v1466_v63 = vpop.f32.mrf.mxu1 }
 0x5da   : > { %v833_v1 = vpop.f32.mrf.mxu1 }
 0x5db   : > { %v1526_v2 = vpack.i.bf16 %v833_v1, %v830_v62 }
 0x5dc   : > { %v1467_v5 = vpop.f32.mrf.mxu1 }
 0x5dd   : > { %1527 = vrot.lane.b32.xlu1 %v1526_v2, %s1629_s26 }
 0x5de   : > { %v951_v6 = vpop.f32.mrf.mxu1 }
 0x5e0   : > { %v1478_v7 = vpop.f32.mrf.mxu1 }
 0x5e2   : > { %v954_v8 = vpop.f32.mrf.mxu1 }
 0x5e3   : > { %v1531_v9 = vpack.i.bf16 %v954_v8, %v951_v6 }
 0x5e4   : > { %v1479_v10 = vpop.f32.mrf.mxu1 }
 0x5e5   : > { %1532 = vrot.lane.b32.xlu0 %v1531_v9, %s1630_s30 }
 0x5e6   : > { %v1072_v11 = vpop.f32.mrf.mxu1 }
 0x5e8   : > { %v1490_v12 = vpop.f32.mrf.mxu1 }
 0x5ea   : > { %v1075_v13 = vpop.f32.mrf.mxu1 }
 0x5eb   : > { %v1536_v14 = vpack.i.bf16 %v1075_v13, %v1072_v11 }
 0x5ec   : > { %v1491_v15 = vpop.f32.mrf.mxu1 }
 0x5ed   : > { %1537 = vrot.lane.b32.xlu1 %v1536_v14, %s1628_s25 }
 0x64f   : > { %v1528_v16 = vpop.permute.xlu1 %1527 }
 0x650   : > { %v1530_v4 = vunpack.i.h.bf16 %v1528_v16  ;;  %v1529_v18 = vunpack.i.l.bf16 %v1528_v16 }
 0x652   : > { %v1104_v22 = vsel %vm597_vm1, %v1836_v37, %v1530_v4  ;;  %v1103_v25 = vsel %vm597_vm1, %v1834_v33, %v1529_v18 }
 0x657   : > { %v1533_v17 = vpop.permute.xlu0 %1532 }
 0x658   : > { %v1535_v19 = vunpack.i.h.bf16 %v1533_v17  ;;  %v1534_v20 = vunpack.i.l.bf16 %v1533_v17 }
 0x65a   : > { %v1107_v28 = vsel %vm1105_vm3, %v1104_v22, %v1535_v19  ;;  %v1106_v29 = vsel %vm1105_vm3, %v1103_v25, %v1534_v20 }
 0x65f   : > { %v1538_v21 = vpop.permute.xlu1 %1537 }
 0x660   : > { %v1540_v26 = vunpack.i.h.bf16 %v1538_v21  ;;  %v1539_v27 = vunpack.i.l.bf16 %v1538_v21 }
 0x662   : > { %v1110_v30 = vsel %vm1108_vm4, %v1107_v28, %v1540_v26  ;;  %v1109_v31 = vsel %vm1108_vm4, %v1106_v29, %v1539_v27 }
 0x663   : > { %v1111_v32 = vpack.c.bf16 %v1110_v30, %v1109_v31 }
 0x665   : > { %1509 = vmatmul.mubr.bf16.vlgmr.msra.gmra.mxu0 %v1111_v32 }
 0x725   : > { %v1217_v35 = vpop.f32.mrf.mxu0 }
 0x726   : > { %v1218_v36 = vadd.f32 %v1375_v34, %v1217_v35 }
 0x727   : > { %v1510_v38 = vpop.f32.mrf.mxu0 }
 0x728   : > { %v1224_v37 = vadd.f32 %v1218_v36, %v1759_v23 }
 0x729   : > { %v1220_v39 = vpop.f32.mrf.mxu0 }
 0x72a   : > { %v1221_v40 = vadd.f32 %v1375_v34, %v1220_v39  ;;  %1228 = vadd.xlane.f32.xlu0 %v1224_v37 }
 0x72b   : > { %v1511_v33 = vpop.f32.mrf.mxu0 }
 0x72c   : > { %v1225_v41 = vadd.f32 %v1221_v40, %v1761_v24 }
 0x72e   : > { %1230 = vadd.xlane.f32.xlu1 %v1225_v41 }
 0x7b3   : > { %v1229_v57 = vpop.xlane.xlu0 %1228 }
 0x7b4   : > { %v1233_v42 = vmul.f32 0.0078125, %v1229_v57 }
 0x7b6   : > { %v1235_v43 = vsub.f32 %v1224_v37, %v1233_v42 }
 0x7b7   : > { %v1231_v44 = vpop.xlane.xlu1 %1230 }
 0x7b8   : > { %v1234_v45 = vmul.f32 0.0078125, %v1231_v44  ;;  %v1237_v46 = vmul.f32 %v1235_v43, %v1235_v43 }
 0x7ba   : > { %v1236_v47 = vsub.f32 %v1225_v41, %v1234_v45  ;;  %1239 = vadd.xlane.f32.xlu0 %v1237_v46 }
 0x7bc   : > { %v1238_v48 = vmul.f32 %v1236_v47, %v1236_v47 }
 0x7be   : > { %1241 = vadd.xlane.f32.xlu0 %v1238_v48 }
 0x843   : > { %v1240_v49 = vpop.xlane.xlu0 %1239 }
 0x844   : > { %v1243_v23 = vmul.f32 0.0078125, %v1240_v49 }
 0x846   : > { %v1245_v50 = vadd.f32 1e-05, %v1243_v23 }
 0x847   : > { %v1242_v51 = vpop.xlane.xlu0 %1241 }
 0x848   : > { %1613 = vrsqrt.f32 %v1245_v50  ;;  %v1244_v52 = vmul.f32 0.0078125, %v1242_v51 }
 0x84a   : > { %v1246_v53 = vadd.f32 1e-05, %v1244_v52 }
 0x84c   : > { %1615 = vrsqrt.f32 %v1246_v53 }
 0x855   : > { %v1614_v24 = vpop.eup %1613 }
 0x856   : > { %v1249_v55 = vmul.f32 %v1614_v24, %v1235_v43 }
 0x858   : > { %v1257_v59 = vmul.f32 %v1384_v54, %v1249_v55 }
 0x859   : > { %v1616_v60 = vpop.eup %1615 }
 0x85a   : > { %v1265_v61 = vadd.f32 %v1385_v56, %v1257_v59  ;;  %v1250_v62 = vmul.f32 %v1616_v60, %v1236_v47 }
 0x85c   : > { %1267 = vst [vmem:[%s319_s14] sm:$0xff] %v1265_v61  ;;  %v1258_v63 = vmul.f32 %v1384_v54, %v1250_v62 }
 0x85e   : > { %v1266_v0 = vadd.f32 %v1385_v56, %v1258_v63 }
 0x860   : > { %1268 = vst [vmem:[%s319_s14 + $0x8] sm:$0xff] %v1266_v0 }
 0x861 PF: > { %s18_s27 = sadd.s32 1, %s1623_s27  }
 0x862   : > { %p15_p4 = scmp.ge.s32.totalorder %s18_s27, 4  }
 0x864   :  { %17 = sbr.rel (!%p15_p4) target bundleno = 1 (0x1), region = 85 }

</bundles_post_ra>
